<compile_context>
chip_gen: v7x
topology: tpu7x:2x2x1
jax: 0.10.0
libtpu: 0.0.40
codegen_flags: <defaults>
</compile_context>

<pallas_src>
import math

import jax
import jax.numpy as jnp
from jax import lax
from jax.experimental import pallas as pl
from jax.experimental.pallas import tpu as pltpu

EPS = 1e-5
NUM_FTRS = 2048        # wide_resnet101_2 fc.in_features
HIDDEN = 1024          # new model.fc output dim
NUM_CLASSES = 17       # fc2 output dim
PADDED_CLASSES = 128   # lane-padded fc2/bn2 width (sliced back to 17 outside)


def _bn_train(h, gamma, beta):
    """BatchNorm1d, training mode: batch mean / biased batch var over axis 0."""
    mean = jnp.mean(h, axis=0, keepdims=True)
    var = jnp.mean(jnp.square(h - mean), axis=0, keepdims=True)
    return (h - mean) * lax.rsqrt(var + EPS) * gamma + beta


# ---------------------------------------------------------------------------
# Fused kernel: backbone stub + Linear(2048->1024) + BN + relu
#               + Linear(1024->17, lane-padded to 128) + BN.
# Single grid step; every matmul is a native bf16 MXU dot with f32 accumulate.
# ---------------------------------------------------------------------------
def wres101_kernel(x_ref, ws_ref, bs_ref, w1_ref, b1_ref, g1_ref, be1_ref,
                   w2_ref, b2_ref, g2_ref, be2_ref, out_ref):
    # Backbone stub: global average pool over spatial + Linear(C -> 2048).
    pooled = jnp.mean(x_ref[...], axis=2)                                # (B, C)
    feat = jnp.dot(pooled.astype(jnp.bfloat16), ws_ref[...],
                   preferred_element_type=jnp.float32) + bs_ref[...]     # (B, 2048)

    # model.fc (2048 -> 1024): bf16 x bf16 -> f32 MXU, bias fused in.
    h = jnp.dot(feat.astype(jnp.bfloat16), w1_ref[...],
                preferred_element_type=jnp.float32) + b1_ref[...]        # (B, 1024)
    h = jnp.maximum(_bn_train(h, g1_ref[...], be1_ref[...]), 0.0)        # relu(bn)

    # fc2 (1024 -> 17, padded to 128 lanes) + bn2 (no relu); lane-dense store.
    o = jnp.dot(h.astype(jnp.bfloat16), w2_ref[...],
                preferred_element_type=jnp.float32) + b2_ref[...]        # (B, 128)
    out_ref[...] = _bn_train(o, g2_ref[...], be2_ref[...])


def wres101_forward(x, params):
    B, C, H, W = x.shape
    x3 = x.reshape(B, C, H * W).astype(jnp.float32)
    K, D = params["w1"].shape            # (2048, 1024)
    P = params["w2"].shape[1]            # 128 (lane-padded class dim)

    flops = 2 * B * (C * K + K * D + D * P)
    bytes_accessed = int(
        sum(int(v.size) * v.dtype.itemsize for v in (
            x3,
            params["w_stub"], params["b_stub"],
            params["w1"], params["b1"], params["g1"], params["be1"],
            params["w2"], params["b2"], params["g2"], params["be2"]))
        + B * P * 4)

    out = pl.pallas_call(
        wres101_kernel,
        out_shape=jax.ShapeDtypeStruct((B, P), jnp.float32),
        grid_spec=pltpu.PrefetchScalarGridSpec(
            num_scalar_prefetch=0,
            grid=(1,),
            in_specs=[
                pl.BlockSpec((B, C, H * W), lambda i: (0, 0, 0)),   # x
                pl.BlockSpec((C, K), lambda i: (0, 0)),             # stub W (bf16)
                pl.BlockSpec((1, K), lambda i: (0, 0)),             # stub b
                pl.BlockSpec((K, D), lambda i: (0, 0)),             # fc W1 (bf16)
                pl.BlockSpec((1, D), lambda i: (0, 0)),             # fc b1
                pl.BlockSpec((1, D), lambda i: (0, 0)),             # bn gamma
                pl.BlockSpec((1, D), lambda i: (0, 0)),             # bn beta
                pl.BlockSpec((D, P), lambda i: (0, 0)),             # fc2 W2 (bf16, padded)
                pl.BlockSpec((1, P), lambda i: (0, 0)),             # fc2 b2 (padded)
                pl.BlockSpec((1, P), lambda i: (0, 0)),             # bn2 gamma (padded)
                pl.BlockSpec((1, P), lambda i: (0, 0)),             # bn2 beta (padded)
            ],
            out_specs=pl.BlockSpec((B, P), lambda i: (0, 0)),
        ),
        compiler_params=pltpu.CompilerParams(
            dimension_semantics=("arbitrary",),
            vmem_limit_bytes=32 * 1024 * 1024,
        ),
        cost_estimate=pl.CostEstimate(
            flops=flops, transcendentals=D + P, bytes_accessed=bytes_accessed),
    )(
        x3,
        params["w_stub"], params["b_stub"],
        params["w1"], params["b1"], params["g1"], params["be1"],
        params["w2"], params["b2"], params["g2"], params["be2"],
    )
    return out[:, :NUM_CLASSES]


# ---------------------------------------------------------------------------
# Deterministic parameter initialization (shapes from the module __init__).
# Weights stored bf16 (bandwidth); biases / BN params stay f32 and are
# pre-shaped (1, D).  fc2 / bn2 parameters are lane-padded to 128 columns
# (zero weight / zero bias, gamma=1, beta=0 in the pad).
# ---------------------------------------------------------------------------
def _init_linear(key, fan_in, fan_out):
    kw, kb = jax.random.split(key)
    bound = 1.0 / math.sqrt(fan_in)
    w = jax.random.uniform(kw, (fan_in, fan_out), jnp.float32, -bound, bound)
    b = jax.random.uniform(kb, (1, fan_out), jnp.float32, -bound, bound)
    return w, b


def init_params(key, in_channels):
    k_stub, k_fc, k_fc2 = jax.random.split(key, 3)
    # TODO(synk): stub replacing the pretrained wide_resnet101_2 conv stack.
    w_stub, b_stub = _init_linear(k_stub, in_channels, NUM_FTRS)
    w1, b1 = _init_linear(k_fc, NUM_FTRS, HIDDEN)        # replaced model.fc
    w2, b2 = _init_linear(k_fc2, HIDDEN, NUM_CLASSES)    # self.fc2

    w2p = jnp.zeros((HIDDEN, PADDED_CLASSES), jnp.float32).at[:, :NUM_CLASSES].set(w2)
    b2p = jnp.zeros((1, PADDED_CLASSES), jnp.float32).at[:, :NUM_CLASSES].set(b2)

    return dict(
        w_stub=w_stub.astype(jnp.bfloat16), b_stub=b_stub,
        w1=w1.astype(jnp.bfloat16), b1=b1,
        g1=jnp.ones((1, HIDDEN), jnp.float32),
        be1=jnp.zeros((1, HIDDEN), jnp.float32),
        w2=w2p.astype(jnp.bfloat16), b2=b2p,
        g2=jnp.ones((1, PADDED_CLASSES), jnp.float32),
        be2=jnp.zeros((1, PADDED_CLASSES), jnp.float32),
    )


if __name__ == "__main__":
    B, C, H, W = 2, 3, 16, 16
    x = jax.random.normal(jax.random.PRNGKey(0), (B, C, H, W), jnp.float32)
    params = init_params(jax.random.PRNGKey(1), C)

    fwd = jax.jit(lambda xx: wres101_forward(xx, params))
    out = jax.block_until_ready(fwd(x))

    assert out.shape == (B, NUM_CLASSES), out.shape
    assert bool(jnp.all(jnp.isfinite(out)))
    print("KERNEL_OK")
</pallas_src>

<mosaic_0001>
module attributes {stable_mosaic.version = 11 : i64} {
  func.func @wres101_kernel(%arg0: i32, %arg1: memref<2x3x256xf32, #tpu.memory_space<vmem>>, %arg2: memref<3x2048xbf16, #tpu.memory_space<vmem>>, %arg3: memref<1x2048xf32, #tpu.memory_space<vmem>>, %arg4: memref<2048x1024xbf16, #tpu.memory_space<vmem>>, %arg5: memref<1x1024xf32, #tpu.memory_space<vmem>>, %arg6: memref<1x1024xf32, #tpu.memory_space<vmem>>, %arg7: memref<1x1024xf32, #tpu.memory_space<vmem>>, %arg8: memref<1024x128xbf16, #tpu.memory_space<vmem>>, %arg9: memref<1x128xf32, #tpu.memory_space<vmem>>, %arg10: memref<1x128xf32, #tpu.memory_space<vmem>>, %arg11: memref<1x128xf32, #tpu.memory_space<vmem>>, %arg12: memref<2x128xf32, #tpu.memory_space<vmem>>) attributes {dimension_semantics = [#tpu.dimension_semantics<arbitrary>], iteration_bounds = array<i64: 1>, scalar_prefetch = 0 : i64, scratch_operands = 0 : i64, tpu.core_type = #tpu.core_type<tc>, window_params = [{pipeline_mode = #tpu.pipeline_mode<synchronous>, transform_indices = @transform_0, window_bounds = array<i64: 2, 3, 256>}, {pipeline_mode = #tpu.pipeline_mode<synchronous>, transform_indices = @transform_1, window_bounds = array<i64: 3, 2048>}, {pipeline_mode = #tpu.pipeline_mode<synchronous>, transform_indices = @transform_2, window_bounds = array<i64: 1, 2048>}, {pipeline_mode = #tpu.pipeline_mode<synchronous>, transform_indices = @transform_3, window_bounds = array<i64: 2048, 1024>}, {pipeline_mode = #tpu.pipeline_mode<synchronous>, transform_indices = @transform_4, window_bounds = array<i64: 1, 1024>}, {pipeline_mode = #tpu.pipeline_mode<synchronous>, transform_indices = @transform_5, window_bounds = array<i64: 1, 1024>}, {pipeline_mode = #tpu.pipeline_mode<synchronous>, transform_indices = @transform_6, window_bounds = array<i64: 1, 1024>}, {pipeline_mode = #tpu.pipeline_mode<synchronous>, transform_indices = @transform_7, window_bounds = array<i64: 1024, 128>}, {pipeline_mode = #tpu.pipeline_mode<synchronous>, transform_indices = @transform_8, window_bounds = array<i64: 1, 128>}, {pipeline_mode = #tpu.pipeline_mode<synchronous>, transform_indices = @transform_9, window_bounds = array<i64: 1, 128>}, {pipeline_mode = #tpu.pipeline_mode<synchronous>, transform_indices = @transform_10, window_bounds = array<i64: 1, 128>}, {pipeline_mode = #tpu.pipeline_mode<synchronous>, transform_indices = @transform_11, window_bounds = array<i64: 2, 128>}]} {
    %c0 = arith.constant 0 : index
    %c0_0 = arith.constant 0 : index
    %c0_1 = arith.constant 0 : index
    %0 = vector.load %arg1[%c0, %c0_0, %c0_1] : memref<2x3x256xf32, #tpu.memory_space<vmem>>, vector<2x3x256xf32>
    %cst = arith.constant dense<0.000000e+00> : vector<2x3xf32>
    %1 = vector.multi_reduction <add>, %0, %cst [2] : vector<2x3x256xf32> to vector<2x3xf32>
    %cst_2 = arith.constant 2.560000e+02 : f32
    %2 = vector.broadcast %cst_2 : f32 to vector<2x3xf32>
    %3 = arith.divf %1, %2 : vector<2x3xf32>
    %4 = arith.truncf %3 : vector<2x3xf32> to vector<2x3xbf16>
    %c0_3 = arith.constant 0 : index
    %c0_4 = arith.constant 0 : index
    %5 = vector.load %arg2[%c0_3, %c0_4] : memref<3x2048xbf16, #tpu.memory_space<vmem>>, vector<3x2048xbf16>
    %cst_5 = arith.constant dense<0.000000e+00> : vector<2x2048xf32>
    %6 = tpu.matmul %4, %5, %cst_5 {dimension_numbers = #tpu.dot_dimension_numbers<[1], [0], [0], [1], [0, 0, 1, 1], [], []>} : vector<2x3xbf16>, vector<3x2048xbf16>, vector<2x2048xf32> -> vector<2x2048xf32>
    %c0_6 = arith.constant 0 : index
    %c0_7 = arith.constant 0 : index
    %7 = vector.load %arg3[%c0_6, %c0_7] : memref<1x2048xf32, #tpu.memory_space<vmem>>, vector<1x2048xf32>
    %8 = vector.broadcast %7 : vector<1x2048xf32> to vector<2x2048xf32>
    %9 = arith.addf %6, %8 : vector<2x2048xf32>
    %10 = arith.truncf %9 : vector<2x2048xf32> to vector<2x2048xbf16>
    %c0_8 = arith.constant 0 : index
    %c0_9 = arith.constant 0 : index
    %11 = vector.load %arg4[%c0_8, %c0_9] : memref<2048x1024xbf16, #tpu.memory_space<vmem>>, vector<2048x1024xbf16>
    %cst_10 = arith.constant dense<0.000000e+00> : vector<2x1024xf32>
    %12 = tpu.matmul %10, %11, %cst_10 {dimension_numbers = #tpu.dot_dimension_numbers<[1], [0], [0], [1], [0, 0, 1, 1], [], []>} : vector<2x2048xbf16>, vector<2048x1024xbf16>, vector<2x1024xf32> -> vector<2x1024xf32>
    %c0_11 = arith.constant 0 : index
    %c0_12 = arith.constant 0 : index
    %13 = vector.load %arg5[%c0_11, %c0_12] : memref<1x1024xf32, #tpu.memory_space<vmem>>, vector<1x1024xf32>
    %14 = vector.broadcast %13 : vector<1x1024xf32> to vector<2x1024xf32>
    %15 = arith.addf %12, %14 : vector<2x1024xf32>
    %c0_13 = arith.constant 0 : index
    %c0_14 = arith.constant 0 : index
    %16 = vector.load %arg6[%c0_13, %c0_14] : memref<1x1024xf32, #tpu.memory_space<vmem>>, vector<1x1024xf32>
    %c0_15 = arith.constant 0 : index
    %c0_16 = arith.constant 0 : index
    %17 = vector.load %arg7[%c0_15, %c0_16] : memref<1x1024xf32, #tpu.memory_space<vmem>>, vector<1x1024xf32>
    %cst_17 = arith.constant dense<0.000000e+00> : vector<1024xf32>
    %18 = vector.multi_reduction <add>, %15, %cst_17 [0] : vector<2x1024xf32> to vector<1024xf32>
    %19 = vector.shape_cast %18 : vector<1024xf32> to vector<1x1024xf32>
    %cst_18 = arith.constant 2.000000e+00 : f32
    %20 = vector.broadcast %cst_18 : f32 to vector<1x1024xf32>
    %21 = arith.divf %19, %20 : vector<1x1024xf32>
    %22 = vector.broadcast %21 : vector<1x1024xf32> to vector<2x1024xf32>
    %23 = arith.subf %15, %22 : vector<2x1024xf32>
    %24 = arith.mulf %23, %23 : vector<2x1024xf32>
    %cst_19 = arith.constant dense<0.000000e+00> : vector<1024xf32>
    %25 = vector.multi_reduction <add>, %24, %cst_19 [0] : vector<2x1024xf32> to vector<1024xf32>
    %26 = vector.shape_cast %25 : vector<1024xf32> to vector<1x1024xf32>
    %cst_20 = arith.constant 2.000000e+00 : f32
    %27 = vector.broadcast %cst_20 : f32 to vector<1x1024xf32>
    %28 = arith.divf %26, %27 : vector<1x1024xf32>
    %29 = vector.broadcast %21 : vector<1x1024xf32> to vector<2x1024xf32>
    %30 = arith.subf %15, %29 : vector<2x1024xf32>
    %cst_21 = arith.constant 9.99999974E-6 : f32
    %31 = vector.broadcast %cst_21 : f32 to vector<1x1024xf32>
    %32 = arith.addf %28, %31 : vector<1x1024xf32>
    %33 = math.rsqrt %32 : vector<1x1024xf32>
    %34 = vector.broadcast %33 : vector<1x1024xf32> to vector<2x1024xf32>
    %35 = arith.mulf %30, %34 : vector<2x1024xf32>
    %36 = vector.broadcast %16 : vector<1x1024xf32> to vector<2x1024xf32>
    %37 = arith.mulf %35, %36 : vector<2x1024xf32>
    %38 = vector.broadcast %17 : vector<1x1024xf32> to vector<2x1024xf32>
    %39 = arith.addf %37, %38 : vector<2x1024xf32>
    %cst_22 = arith.constant 0.000000e+00 : f32
    %40 = vector.broadcast %cst_22 : f32 to vector<2x1024xf32>
    %41 = arith.maximumf %39, %40 : vector<2x1024xf32>
    %42 = arith.truncf %41 : vector<2x1024xf32> to vector<2x1024xbf16>
    %c0_23 = arith.constant 0 : index
    %c0_24 = arith.constant 0 : index
    %43 = vector.load %arg8[%c0_23, %c0_24] : memref<1024x128xbf16, #tpu.memory_space<vmem>>, vector<1024x128xbf16>
    %cst_25 = arith.constant dense<0.000000e+00> : vector<2x128xf32>
    %44 = tpu.matmul %42, %43, %cst_25 {dimension_numbers = #tpu.dot_dimension_numbers<[1], [0], [0], [1], [0, 0, 1, 1], [], []>} : vector<2x1024xbf16>, vector<1024x128xbf16>, vector<2x128xf32> -> vector<2x128xf32>
    %c0_26 = arith.constant 0 : index
    %c0_27 = arith.constant 0 : index
    %45 = vector.load %arg9[%c0_26, %c0_27] : memref<1x128xf32, #tpu.memory_space<vmem>>, vector<1x128xf32>
    %46 = vector.broadcast %45 : vector<1x128xf32> to vector<2x128xf32>
    %47 = arith.addf %44, %46 : vector<2x128xf32>
    %c0_28 = arith.constant 0 : index
    %c0_29 = arith.constant 0 : index
    %48 = vector.load %arg10[%c0_28, %c0_29] : memref<1x128xf32, #tpu.memory_space<vmem>>, vector<1x128xf32>
    %c0_30 = arith.constant 0 : index
    %c0_31 = arith.constant 0 : index
    %49 = vector.load %arg11[%c0_30, %c0_31] : memref<1x128xf32, #tpu.memory_space<vmem>>, vector<1x128xf32>
    %cst_32 = arith.constant dense<0.000000e+00> : vector<128xf32>
    %50 = vector.multi_reduction <add>, %47, %cst_32 [0] : vector<2x128xf32> to vector<128xf32>
    %51 = vector.shape_cast %50 : vector<128xf32> to vector<1x128xf32>
    %cst_33 = arith.constant 2.000000e+00 : f32
    %52 = vector.broadcast %cst_33 : f32 to vector<1x128xf32>
    %53 = arith.divf %51, %52 : vector<1x128xf32>
    %54 = vector.broadcast %53 : vector<1x128xf32> to vector<2x128xf32>
    %55 = arith.subf %47, %54 : vector<2x128xf32>
    %56 = arith.mulf %55, %55 : vector<2x128xf32>
    %cst_34 = arith.constant dense<0.000000e+00> : vector<128xf32>
    %57 = vector.multi_reduction <add>, %56, %cst_34 [0] : vector<2x128xf32> to vector<128xf32>
    %58 = vector.shape_cast %57 : vector<128xf32> to vector<1x128xf32>
    %cst_35 = arith.constant 2.000000e+00 : f32
    %59 = vector.broadcast %cst_35 : f32 to vector<1x128xf32>
    %60 = arith.divf %58, %59 : vector<1x128xf32>
    %61 = vector.broadcast %53 : vector<1x128xf32> to vector<2x128xf32>
    %62 = arith.subf %47, %61 : vector<2x128xf32>
    %cst_36 = arith.constant 9.99999974E-6 : f32
    %63 = vector.broadcast %cst_36 : f32 to vector<1x128xf32>
    %64 = arith.addf %60, %63 : vector<1x128xf32>
    %65 = math.rsqrt %64 : vector<1x128xf32>
    %66 = vector.broadcast %65 : vector<1x128xf32> to vector<2x128xf32>
    %67 = arith.mulf %62, %66 : vector<2x128xf32>
    %68 = vector.broadcast %48 : vector<1x128xf32> to vector<2x128xf32>
    %69 = arith.mulf %67, %68 : vector<2x128xf32>
    %70 = vector.broadcast %49 : vector<1x128xf32> to vector<2x128xf32>
    %71 = arith.addf %69, %70 : vector<2x128xf32>
    %c0_37 = arith.constant 0 : index
    %c0_38 = arith.constant 0 : index
    %72 = vector.load %arg12[%c0_37, %c0_38] : memref<2x128xf32, #tpu.memory_space<vmem>>, vector<2x128xf32>
    tpu.vector_store %arg12[%c0_37, %c0_38], %71 {strides = array<i32>} : memref<2x128xf32, #tpu.memory_space<vmem>>, vector<2x128xf32>,
    return
  }
  func.func @transform_0(%arg0: i32) -> (i32, i32, i32) {
    %c0_i32 = arith.constant 0 : i32
    %c0_i32_0 = arith.constant 0 : i32
    %c0_i32_1 = arith.constant 0 : i32
    %c0_i32_2 = arith.constant 0 : i32
    return %c0_i32, %c0_i32_0, %c0_i32_1 : i32, i32, i32
  }
  func.func @transform_1(%arg0: i32) -> (i32, i32) {
    %c0_i32 = arith.constant 0 : i32
    %c0_i32_0 = arith.constant 0 : i32
    %c0_i32_1 = arith.constant 0 : i32
    return %c0_i32, %c0_i32_0 : i32, i32
  }
  func.func @transform_2(%arg0: i32) -> (i32, i32) {
    %c0_i32 = arith.constant 0 : i32
    %c0_i32_0 = arith.constant 0 : i32
    %c0_i32_1 = arith.constant 0 : i32
    return %c0_i32, %c0_i32_0 : i32, i32
  }
  func.func @transform_3(%arg0: i32) -> (i32, i32) {
    %c0_i32 = arith.constant 0 : i32
    %c0_i32_0 = arith.constant 0 : i32
    %c0_i32_1 = arith.constant 0 : i32
    return %c0_i32, %c0_i32_0 : i32, i32
  }
  func.func @transform_4(%arg0: i32) -> (i32, i32) {
    %c0_i32 = arith.constant 0 : i32
    %c0_i32_0 = arith.constant 0 : i32
    %c0_i32_1 = arith.constant 0 : i32
    return %c0_i32, %c0_i32_0 : i32, i32
  }
  func.func @transform_5(%arg0: i32) -> (i32, i32) {
    %c0_i32 = arith.constant 0 : i32
    %c0_i32_0 = arith.constant 0 : i32
    %c0_i32_1 = arith.constant 0 : i32
    return %c0_i32, %c0_i32_0 : i32, i32
  }
  func.func @transform_6(%arg0: i32) -> (i32, i32) {
    %c0_i32 = arith.constant 0 : i32
    %c0_i32_0 = arith.constant 0 : i32
    %c0_i32_1 = arith.constant 0 : i32
    return %c0_i32, %c0_i32_0 : i32, i32
  }
  func.func @transform_7(%arg0: i32) -> (i32, i32) {
    %c0_i32 = arith.constant 0 : i32
    %c0_i32_0 = arith.constant 0 : i32
    %c0_i32_1 = arith.constant 0 : i32
    return %c0_i32, %c0_i32_0 : i32, i32
  }
  func.func @transform_8(%arg0: i32) -> (i32, i32) {
    %c0_i32 = arith.constant 0 : i32
    %c0_i32_0 = arith.constant 0 : i32
    %c0_i32_1 = arith.constant 0 : i32
    return %c0_i32, %c0_i32_0 : i32, i32
  }
  func.func @transform_9(%arg0: i32) -> (i32, i32) {
    %c0_i32 = arith.constant 0 : i32
    %c0_i32_0 = arith.constant 0 : i32
    %c0_i32_1 = arith.constant 0 : i32
    return %c0_i32, %c0_i32_0 : i32, i32
  }
  func.func @transform_10(%arg0: i32) -> (i32, i32) {
    %c0_i32 = arith.constant 0 : i32
    %c0_i32_0 = arith.constant 0 : i32
    %c0_i32_1 = arith.constant 0 : i32
    return %c0_i32, %c0_i32_0 : i32, i32
  }
  func.func @transform_11(%arg0: i32) -> (i32, i32) {
    %c0_i32 = arith.constant 0 : i32
    %c0_i32_0 = arith.constant 0 : i32
    %c0_i32_1 = arith.constant 0 : i32
    return %c0_i32, %c0_i32_0 : i32, i32
  }
}

</mosaic_0001>

<bundles_post_ra>
// kernel: _lambda_.1
= control target key start
LH: loop header
LB: loop body
LE: loop exit
PB: predicated region body
PF: predicated region fallthrough
CT: control target
= control target key end

     0   :  { %vm48_vm0 = vcmask 1042432   ;;  %v72_v2 = vlaneseq  ;;  %v10581_v12 = vmov 1983009808   ;;  %vm245_vm1 = vcmask 1040384   ;;  %s14351_s0 = inlined_call_operand.vmem [shape: f32[2,3,256], index: 0, kind: input, shape index: {}]   ;;  %s14352_s1 = inlined_call_operand.vmem [shape: bf16[3,2048], index: 1, kind: input, shape index: {}]   ;;  %s14353_s2 = inlined_call_operand.vmem [shape: f32[1,2048], index: 2, kind: input, shape index: {}]   ;;  %s14354_s3 = inlined_call_operand.vmem [shape: bf16[2048,1024], index: 3, kind: input, shape index: {}]   ;;  %s14355_s4 = inlined_call_operand.vmem [shape: f32[1,1024], index: 4, kind: input, shape index: {}]   ;;  %s14356_s5 = inlined_call_operand.vmem [shape: f32[1,1024], index: 5, kind: input, shape index: {}]   ;;  %s14357_s6 = inlined_call_operand.vmem [shape: f32[1,1024], index: 6, kind: input, shape index: {}]   ;;  %s14358_s7 = inlined_call_operand.vmem [shape: bf16[1024,128], index: 7, kind: input, shape index: {}]   ;;  %s14359_s8 = inlined_call_operand.vmem [shape: f32[1,128], index: 8, kind: input, shape index: {}]   ;;  %s14360_s9 = inlined_call_operand.vmem [shape: f32[1,128], index: 9, kind: input, shape index: {}]   ;;  %s14361_s10 = inlined_call_operand.vmem [shape: f32[1,128], index: 10, kind: input, shape index: {}]   ;;  %s14362_s11 = inlined_call_operand.hbm [shape: f32[2,128], index: 11, kind: output, shape index: {}]  }
   0x1   :  { %v40_v0 = vld [vmem:[%s14351_s0] sm:$0x77]  ;;  %v41_v1 = vld [vmem:[%s14351_s0 + $0x8] sm:$0x77]  ;;  %v175_v13 = vunpack.c.l.s4 %v10581_v12  ;;  %vm246_vm2 = vcmask 1041408   ;;  %v10582_v21 = vmov 65535  }
   0x2   :  { %v44_v3 = vcombine.high %v40_v0, %v40_v0  ;;  %v49_v4 = vsel %vm48_vm0, %v40_v0, 0.0  ;;  %v45_v5 = vcombine.high %v41_v1, %v41_v1  ;;  %v54_v6 = vsel %vm48_vm0, %v41_v1, 0.0  ;;  %v64_v15 = vld [vmem:[%s14352_s1] sm:$0xff]  ;;  %v65_v29 = vld [vmem:[%s14352_s1 + $0x8] sm:$0xff]  ;;  %v66_v40 = vld [vmem:[%s14352_s1 + $0x10] sm:$0xff] }
   0x3   :  { %v10652_v7 = vshrl.u32 %v72_v2, 7  ;;  %v176_v14 = vunpack.c.0.s8 %v175_v13  ;;  %v173_v17 = vcombine.high %v64_v15, %v64_v15  ;;  %v247_v22 = vsel %vm245_vm1, 4294967295, %v10582_v21  ;;  %v67_v50 = vld [vmem:[%s14352_s1 + $0x18] sm:$0xff] }
   0x4   :  { %v50_v8 = vsel %vm48_vm0, %v44_v3, 0.0  ;;  %v55_v9 = vsel %vm48_vm0, %v45_v5, 0.0  ;;  %v10659_v24 = vsel %vm246_vm2, %v247_v22, 0  ;;  %v190_v30 = vcombine.high %v65_v29, %v65_v29 }
   0x5   :  { %v51_v10 = vadd.f32 %v50_v8, %v49_v4  ;;  %v56_v11 = vadd.f32 %v55_v9, %v54_v6  ;;  %v179_v16 = vsub.s32 %v176_v14, %v10652_v7  ;;  %v10583_v33 = vmov 0  }
   0x6   :  { %329 = vmatprep.mubr.bf16.mxu0 %v10583_v33  ;;  %370 = vmatprep.mubr.bf16.mxu1 %v10583_v33  ;;  %v207_v41 = vcombine.high %v66_v40, %v66_v40  ;;  %v224_v51 = vcombine.high %v67_v50, %v67_v50 }
   0x7   :  { %52 = vadd.xlane.f32.xlu0 %v51_v10  ;;  %v180_v18 = vrot.slane %v64_v15, %v179_v16  ;;  %v187_v19 = vrot.slane %v173_v17, %v179_v16  ;;  %v197_v31 = vrot.slane %v65_v29, %v179_v16  ;;  %v204_v32 = vrot.slane %v190_v30, %v179_v16 }
   0x8   :  { %v214_v42 = vrot.slane %v66_v40, %v179_v16  ;;  %v221_v43 = vrot.slane %v207_v41, %v179_v16 }
   0x9   :  { %v188_v20 = vcombine.high %v180_v18, %v180_v18  ;;  %v189_v23 = vcombine.high %v187_v19, %v187_v19  ;;  %v250_v27 = vand.u32 %v10659_v24, %v180_v18  ;;  %v256_v28 = vand.u32 %v10659_v24, %v187_v19 }
   0xa   :  { %v205_v34 = vcombine.high %v197_v31, %v197_v31  ;;  %v206_v35 = vcombine.high %v204_v32, %v204_v32  ;;  %v262_v36 = vand.u32 %v10659_v24, %v197_v31  ;;  %v268_v37 = vand.u32 %v10659_v24, %v204_v32 }
   0xb   :  { %57 = vadd.xlane.f32.xlu0 %v56_v11  ;;  %v253_v25 = vand.u32 %v10659_v24, %v188_v20  ;;  %v259_v26 = vand.u32 %v10659_v24, %v189_v23  ;;  %v222_v44 = vcombine.high %v214_v42, %v214_v42  ;;  %v223_v45 = vcombine.high %v221_v43, %v221_v43 }
   0xc   :  { %v265_v38 = vand.u32 %v10659_v24, %v205_v34  ;;  %v271_v39 = vand.u32 %v10659_v24, %v206_v35  ;;  %v274_v46 = vand.u32 %v10659_v24, %v214_v42  ;;  %v280_v47 = vand.u32 %v10659_v24, %v221_v43 }
   0xd   :  { %297 = vmatprep.subr.bf16.mxu0 %v253_v25  ;;  %338 = vmatprep.subr.bf16.mxu1 %v259_v26  ;;  %v277_v48 = vand.u32 %v10659_v24, %v222_v44  ;;  %v283_v49 = vand.u32 %v10659_v24, %v223_v45 }
   0xe   :  { %298 = vmatpush1.bf16.msra.mxu0 %v250_v27  ;;  %339 = vmatpush1.bf16.msra.mxu1 %v256_v28 }
   0xf   :  { %379 = vmatprep.subr.bf16.mxu0 %v265_v38  ;;  %420 = vmatprep.subr.bf16.mxu1 %v271_v39 }
  0x10   :  { %16 = vsyncpa [#allocation3], 0  ;;  %v231_v52 = vrot.slane %v67_v50, %v179_v16  ;;  %v238_v53 = vrot.slane %v224_v51, %v179_v16  ;;  %v157_v62 = vand.u32 127, %v72_v2  ;;  %vm166_vm3 = vcmask 1041409   ;;  %v641_v2 = vld [vmem:[%s14354_s3] sm:$0xff]  ;;  %v642_v13 = vld [vmem:[%s14354_s3 + $0x8] sm:$0xff] }
  0x11   :  { %vm241_vm4 = vcmask 23552   ;;  %v645_v12 = vld [vmem:[%s14354_s3 + $0x20] sm:$0xff]  ;;  %v646_v14 = vld [vmem:[%s14354_s3 + $0x28] sm:$0xff]  ;;  %s10584_s29 = smov [#allocation2]  }
  0x12   :  { %v239_v54 = vcombine.high %v231_v52, %v231_v52  ;;  %v240_v55 = vcombine.high %v238_v53, %v238_v53  ;;  %v286_v56 = vand.u32 %v10659_v24, %v231_v52  ;;  %v292_v57 = vand.u32 %v10659_v24, %v238_v53  ;;  %v649_v17 = vld [vmem:[%s14354_s3 + $0x40] sm:$0xff]  ;;  %v650_v19 = vld [vmem:[%s14354_s3 + $0x48] sm:$0xff] }
  0x13   :  { %v160_v3 = vsub.s32 %v157_v62, %v10652_v7  ;;  %v9164_v15 = vcombine.high %v641_v2, %v645_v12  ;;  %v9166_v16 = vcombine.high %v642_v13, %v646_v14  ;;  %v653_v18 = vld [vmem:[%s14354_s3 + $0x60] sm:$0xff]  ;;  %v654_v20 = vld [vmem:[%s14354_s3 + $0x68] sm:$0xff]  ;;  %v9163_v21 = vcombine.low %v641_v2, %v645_v12 }
  0x14   :  { %v289_v58 = vand.u32 %v10659_v24, %v239_v54  ;;  %v295_v59 = vand.u32 %v10659_v24, %v240_v55  ;;  %v9165_v22 = vcombine.low %v642_v13, %v646_v14  ;;  %v9172_v23 = vcombine.high %v649_v17, %v653_v18  ;;  %v657_v25 = vld [vmem:[%s14354_s3 + $0x80] sm:$0xff]  ;;  %v658_v27 = vld [vmem:[%s14354_s3 + $0x88] sm:$0xff] }
  0x15   :  { %v9174_v24 = vcombine.high %v650_v19, %v654_v20  ;;  %v661_v26 = vld [vmem:[%s14354_s3 + $0xa0] sm:$0xff]  ;;  %v662_v28 = vld [vmem:[%s14354_s3 + $0xa8] sm:$0xff]  ;;  %v9171_v29 = vcombine.low %v649_v17, %v653_v18  ;;  %v9173_v30 = vcombine.low %v650_v19, %v654_v20 }
  0x16   :  { %v9180_v31 = vcombine.high %v657_v25, %v661_v26  ;;  %v9182_v32 = vcombine.high %v658_v27, %v662_v28  ;;  %v669_v34 = vld [vmem:[%s14354_s3 + $0xe0] sm:$0xff]  ;;  %v666_v35 = vld [vmem:[%s14354_s3 + $0xc8] sm:$0xff]  ;;  %v9181_v38 = vcombine.low %v658_v27, %v662_v28 }
  0x17   :  { %v673_v41 = vld [vmem:[%s14354_s3 + $0x100] sm:$0xff]  ;;  %v674_v43 = vld [vmem:[%s14354_s3 + $0x108] sm:$0xff] }
  0x18   :  { %v677_v42 = vld [vmem:[%s14354_s3 + $0x120] sm:$0xff]  ;;  %v678_v44 = vld [vmem:[%s14354_s3 + $0x128] sm:$0xff] }
  0x19   :  { %v685_v50 = vld [vmem:[%s14354_s3 + $0x160] sm:$0xff]  ;;  %v682_v51 = vld [vmem:[%s14354_s3 + $0x148] sm:$0xff]  ;;  %v9195_v53 = vcombine.low %v673_v41, %v677_v42  ;;  %v9197_v54 = vcombine.low %v674_v43, %v678_v44 }
  0x1a   :  { %v686_v52 = vld [vmem:[%s14354_s3 + $0x168] sm:$0xff]  ;;  %v709_v2 = vld [vmem:[%s14354_s3 + $0x220] sm:$0xff] }
  0x1b   :  { %v9205_v62 = vcombine.low %v682_v51, %v686_v52  ;;  %v706_v12 = vld [vmem:[%s14354_s3 + $0x208] sm:$0xff]  ;;  %v713_v18 = vld [vmem:[%s14354_s3 + $0x240] sm:$0xff] }
  0x1c   :  { %v710_v13 = vld [vmem:[%s14354_s3 + $0x228] sm:$0xff]  ;;  %v717_v19 = vld [vmem:[%s14354_s3 + $0x260] sm:$0xff] }
  0x1d   :  { %v9230_v17 = vcombine.high %v706_v12, %v710_v13  ;;  %v714_v20 = vld [vmem:[%s14354_s3 + $0x248] sm:$0xff]  ;;  %v725_v27 = vld [vmem:[%s14354_s3 + $0x2a0] sm:$0xff] }
  0x1e   :  { %v722_v28 = vld [vmem:[%s14354_s3 + $0x288] sm:$0xff] }
  0x94   :  { %v53_v60 = vpop.xlane.xlu0 %52 }
  0x95   :  { %v60_v61 = vmul.f32 0.00390625, %v53_v60  ;;  %v694_v60 = vld [vmem:[%s14354_s3 + $0x1a8] sm:$0xff] }
  0x97   :  { %v62_v63 = vpack.c.bf16 %v60_v61, %v60_v61 }
  0x98   :  { %v58_v0 = vpop.xlane.xlu0 %57 }
  0x99   :  { %v61_v1 = vmul.f32 0.00390625, %v58_v0  ;;  %v154_v4 = vunpack.c.l.b16 %v62_v63 }
  0x9b   :  { %v63_v5 = vpack.c.bf16 %v61_v1, %v61_v1  ;;  %v161_v8 = vrot.slane %v154_v4, %v160_v3  ;;  %v697_v1 = vld [vmem:[%s14354_s3 + $0x1c0] sm:$0xff]  ;;  %v698_v4 = vld [vmem:[%s14354_s3 + $0x1c8] sm:$0xff] }
  0x9d   :  { %v155_v6 = vunpack.c.l.b16 %v63_v5  ;;  %v702_v5 = vld [vmem:[%s14354_s3 + $0x1e8] sm:$0xff] }
  0x9f   :  { %v165_v9 = vrot.slane %v155_v6, %v160_v3  ;;  %v701_v3 = vld [vmem:[%s14354_s3 + $0x1e0] sm:$0xff] }
  0xa0   :  { %v9219_v14 = vcombine.low %v697_v1, %v701_v3 }
  0xa1   :  { %v167_v10 = vsel %vm166_vm3, %v165_v9, %v161_v8  ;;  %v9220_v9 = vcombine.high %v697_v1, %v701_v3 }
  0xa2   :  { %v168_v11 = vpack.c.b16 %v167_v10, %v167_v10  ;;  %v9222_v10 = vcombine.high %v698_v4, %v702_v5 }
  0xa4   :  { %9155 = vmatmul.mubr.msk.bf16.vlgmr.msra.gmra.mrb[0].mxu0 %vm241_vm4, %v168_v11  ;;  %9156 = vmatmul.mubr.msk.bf16.vlgmr.msra.gmra.mrb[0].mxu1 %vm241_vm4, %v168_v11 }
  0xa5   :  { %380 = vmatpush1.bf16.msra.mxu0 %v262_v36  ;;  %421 = vmatpush1.bf16.msra.mxu1 %v268_v37  ;;  %v670_v36 = vld [vmem:[%s14354_s3 + $0xe8] sm:$0xff]  ;;  %v9179_v37 = vcombine.low %v657_v25, %v661_v26  ;;  %v721_v26 = vld [vmem:[%s14354_s3 + $0x280] sm:$0xff] }
  0xa6   :  { %411 = vmatprep.mubr.bf16.mxu0 %v10583_v33  ;;  %452 = vmatprep.mubr.bf16.mxu1 %v10583_v33  ;;  %v9190_v40 = vcombine.high %v666_v35, %v670_v36 }
  0xa7   :  { %461 = vmatprep.subr.bf16.mxu0 %v277_v48  ;;  %502 = vmatprep.subr.bf16.mxu1 %v283_v49  ;;  %v9198_v48 = vcombine.high %v674_v43, %v678_v44  ;;  %v681_v49 = vld [vmem:[%s14354_s3 + $0x140] sm:$0xff]  ;;  %v738_v44 = vld [vmem:[%s14354_s3 + $0x308] sm:$0xff] }
  0xa8   :  { %v9204_v55 = vcombine.high %v681_v49, %v685_v50  ;;  %v9203_v61 = vcombine.low %v681_v49, %v685_v50  ;;  %v741_v43 = vld [vmem:[%s14354_s3 + $0x320] sm:$0xff] }
  0xa9   :  { %v745_v50 = vld [vmem:[%s14354_s3 + $0x340] sm:$0xff] }
  0xac   :  { %9157 = vmatmul.mubr.msk.bf16.vlgmr.msra.gmra.mrb[4].mxu0 %vm241_vm4, %v168_v11  ;;  %9158 = vmatmul.mubr.msk.bf16.vlgmr.msra.gmra.mrb[4].mxu1 %vm241_vm4, %v168_v11 }
  0xad   :  { %462 = vmatpush1.bf16.msra.mxu0 %v274_v46  ;;  %503 = vmatpush1.bf16.msra.mxu1 %v280_v47  ;;  %v9189_v46 = vcombine.low %v666_v35, %v670_v36  ;;  %v9196_v47 = vcombine.high %v673_v41, %v677_v42  ;;  %v733_v35 = vld [vmem:[%s14354_s3 + $0x2e0] sm:$0xff]  ;;  %v730_v36 = vld [vmem:[%s14354_s3 + $0x2c8] sm:$0xff] }
  0xae   :  { %493 = vmatprep.mubr.bf16.mxu0 %v10583_v33  ;;  %534 = vmatprep.mubr.bf16.mxu1 %v10583_v33  ;;  %v737_v42 = vld [vmem:[%s14354_s3 + $0x300] sm:$0xff] }
  0xaf   :  { %543 = vmatprep.subr.bf16.mxu0 %v289_v58  ;;  %584 = vmatprep.subr.bf16.mxu1 %v295_v59  ;;  %v693_v58 = vld [vmem:[%s14354_s3 + $0x1a0] sm:$0xff]  ;;  %v690_v59 = vld [vmem:[%s14354_s3 + $0x188] sm:$0xff] }
  0xb0   :  { %v9214_v0 = vcombine.high %v690_v59, %v694_v60  ;;  %v9213_v8 = vcombine.low %v690_v59, %v694_v60  ;;  %v757_v59 = vld [vmem:[%s14354_s3 + $0x3a0] sm:$0xff]  ;;  %v754_v60 = vld [vmem:[%s14354_s3 + $0x388] sm:$0xff] }
  0xb4   :  { %9159 = vmatmul.mubr.msk.bf16.vlgmr.msra.gmra.mrb[8].mxu0 %vm241_vm4, %v168_v11  ;;  %9160 = vmatmul.mubr.msk.bf16.vlgmr.msra.gmra.mrb[8].mxu1 %vm241_vm4, %v168_v11 }
  0xb5   :  { %544 = vmatpush1.bf16.msra.mxu0 %v286_v56  ;;  %585 = vmatpush1.bf16.msra.mxu1 %v292_v57  ;;  %v9206_v56 = vcombine.high %v682_v51, %v686_v52  ;;  %v689_v57 = vld [vmem:[%s14354_s3 + $0x180] sm:$0xff]  ;;  %v746_v52 = vld [vmem:[%s14354_s3 + $0x348] sm:$0xff] }
  0xb6   :  { %575 = vmatprep.mubr.bf16.mxu0 %v10583_v33  ;;  %616 = vmatprep.mubr.bf16.mxu1 %v10583_v33  ;;  %v665_v33 = vld [vmem:[%s14354_s3 + $0xc0] sm:$0xff]  ;;  %v9212_v63 = vcombine.high %v689_v57, %v693_v58  ;;  %v9211_v6 = vcombine.low %v689_v57, %v693_v58 }
  0xb7   :  { %6827 = vmatprep.subr.bf16.mxu0 %v9164_v15  ;;  %7155 = vmatprep.subr.bf16.mxu1 %v9166_v16  ;;  %v9188_v39 = vcombine.high %v665_v33, %v669_v34  ;;  %v9187_v45 = vcombine.low %v665_v33, %v669_v34  ;;  %v9221_v15 = vcombine.low %v698_v4, %v702_v5  ;;  %v729_v34 = vld [vmem:[%s14354_s3 + $0x2c0] sm:$0xff] }
  0xb8   :  { %v749_v51 = vld [vmem:[%s14354_s3 + $0x360] sm:$0xff] }
  0xb9   :  { %v753_v58 = vld [vmem:[%s14354_s3 + $0x380] sm:$0xff] }
  0xba   :  { %v9275_v3 = vcombine.low %v753_v58, %v757_v59  ;;  %v761_v5 = vld [vmem:[%s14354_s3 + $0x3c0] sm:$0xff] }
  0xbc   :  { %9161 = vmatmul.mubr.msk.bf16.vlgmr.msra.gmra.mrb[12].mxu0 %vm241_vm4, %v168_v11  ;;  %9162 = vmatmul.mubr.msk.bf16.vlgmr.msra.gmra.mrb[12].mxu1 %vm241_vm4, %v168_v11  ;;  %v705_v11 = vld [vmem:[%s14354_s3 + $0x200] sm:$0xff] }
  0xbd   :  { %6828 = vmatpush1.bf16.msra.mxu0 %v9163_v21  ;;  %7156 = vmatpush1.bf16.msra.mxu1 %v9165_v22  ;;  %v9228_v16 = vcombine.high %v705_v11, %v709_v2  ;;  %v718_v21 = vld [vmem:[%s14354_s3 + $0x268] sm:$0xff]  ;;  %v9227_v22 = vcombine.low %v705_v11, %v709_v2 }
  0xbe   :  { %6829 = vmatprep.subr.bf16.mxu0 %v9172_v23  ;;  %7157 = vmatprep.subr.bf16.mxu1 %v9174_v24  ;;  %v9229_v23 = vcombine.low %v706_v12, %v710_v13  ;;  %v9236_v24 = vcombine.high %v713_v18, %v717_v19  ;;  %v9238_v25 = vcombine.high %v714_v20, %v718_v21  ;;  %v769_v13 = vld [vmem:[%s14354_s3 + $0x400] sm:$0xff] }
  0xc1   :  { %6830 = vmatpush1.bf16.msra.mxu0 %v9171_v29  ;;  %7158 = vmatpush1.bf16.msra.mxu1 %v9173_v30  ;;  %v726_v29 = vld [vmem:[%s14354_s3 + $0x2a8] sm:$0xff]  ;;  %v9235_v30 = vcombine.low %v713_v18, %v717_v19 }
  0xc2   :  { %6831 = vmatprep.subr.bf16.mxu0 %v9180_v31  ;;  %7159 = vmatprep.subr.bf16.mxu1 %v9182_v32  ;;  %v9237_v31 = vcombine.low %v714_v20, %v718_v21  ;;  %v9244_v32 = vcombine.high %v721_v26, %v725_v27  ;;  %v9246_v33 = vcombine.high %v722_v28, %v726_v29  ;;  %v10909_v21 = vsub.s32 0, %v10652_v7 }
  0xc5   :  { %6832 = vmatpush1.bf16.msra.mxu0 %v9179_v37  ;;  %7160 = vmatpush1.bf16.msra.mxu1 %v9181_v38  ;;  %v734_v37 = vld [vmem:[%s14354_s3 + $0x2e8] sm:$0xff]  ;;  %v9243_v38 = vcombine.low %v721_v26, %v725_v27 }
  0xc6   :  { %6833 = vmatprep.subr.bf16.mxu0 %v9188_v39  ;;  %7161 = vmatprep.subr.bf16.mxu1 %v9190_v40  ;;  %v9245_v39 = vcombine.low %v722_v28, %v726_v29  ;;  %v9252_v40 = vcombine.high %v729_v34, %v733_v35  ;;  %v9254_v41 = vcombine.high %v730_v36, %v734_v37 }
  0xc9   :  { %6834 = vmatpush1.bf16.msra.mxu0 %v9187_v45  ;;  %7162 = vmatpush1.bf16.msra.mxu1 %v9189_v46  ;;  %v742_v45 = vld [vmem:[%s14354_s3 + $0x328] sm:$0xff]  ;;  %v9251_v46 = vcombine.low %v729_v34, %v733_v35 }
  0xca   :  { %6835 = vmatprep.subr.bf16.mxu0 %v9196_v47  ;;  %7163 = vmatprep.subr.bf16.mxu1 %v9198_v48  ;;  %v9253_v47 = vcombine.low %v730_v36, %v734_v37  ;;  %v9260_v48 = vcombine.high %v737_v42, %v741_v43  ;;  %v9262_v49 = vcombine.high %v738_v44, %v742_v45  ;;  %v777_v36 = vld [vmem:[%s14354_s3 + $0x440] sm:$0xff] }
  0xcd   :  { %6836 = vmatpush1.bf16.msra.mxu0 %v9195_v53  ;;  %7164 = vmatpush1.bf16.msra.mxu1 %v9197_v54  ;;  %v750_v53 = vld [vmem:[%s14354_s3 + $0x368] sm:$0xff]  ;;  %v9259_v54 = vcombine.low %v737_v42, %v741_v43 }
  0xce   :  { %6837 = vmatprep.subr.bf16.mxu0 %v9204_v55  ;;  %7165 = vmatprep.subr.bf16.mxu1 %v9206_v56  ;;  %v9261_v55 = vcombine.low %v738_v44, %v742_v45  ;;  %v9268_v56 = vcombine.high %v745_v50, %v749_v51  ;;  %v9270_v57 = vcombine.high %v746_v52, %v750_v53  ;;  %v782_v42 = vld [vmem:[%s14354_s3 + $0x468] sm:$0xff]  ;;  %v785_v45 = vld [vmem:[%s14354_s3 + $0x480] sm:$0xff] }
  0xd1   :  { %6838 = vmatpush1.bf16.msra.mxu0 %v9203_v61  ;;  %7166 = vmatpush1.bf16.msra.mxu1 %v9205_v62  ;;  %v758_v61 = vld [vmem:[%s14354_s3 + $0x3a8] sm:$0xff]  ;;  %v9267_v62 = vcombine.low %v745_v50, %v749_v51 }
  0xd2   :  { %6839 = vmatprep.subr.bf16.mxu0 %v9212_v63  ;;  %7167 = vmatprep.subr.bf16.mxu1 %v9214_v0  ;;  %v9269_v63 = vcombine.low %v746_v52, %v750_v53  ;;  %v9276_v0 = vcombine.high %v753_v58, %v757_v59  ;;  %v9278_v1 = vcombine.high %v754_v60, %v758_v61  ;;  %v790_v50 = vld [vmem:[%s14354_s3 + $0x4a8] sm:$0xff] }
  0xd3   :  { %v9277_v4 = vcombine.low %v754_v60, %v758_v61  ;;  %v10977_v60 = vld [vmem:[%s14353_s2 + $0x8] sm:$0xff]  ;;  %v793_v61 = vld [vmem:[%s14354_s3 + $0x4c0] sm:$0xff] }
  0xd5   :  { %6840 = vmatpush1.bf16.msra.mxu0 %v9211_v6  ;;  %7168 = vmatpush1.bf16.msra.mxu1 %v9213_v8  ;;  %v765_v6 = vld [vmem:[%s14354_s3 + $0x3e0] sm:$0xff]  ;;  %v762_v8 = vld [vmem:[%s14354_s3 + $0x3c8] sm:$0xff] }
  0xd6   :  { %6841 = vmatprep.subr.bf16.mxu0 %v9220_v9  ;;  %7169 = vmatprep.subr.bf16.mxu1 %v9222_v10  ;;  %v9284_v9 = vcombine.high %v761_v5, %v765_v6  ;;  %v766_v10 = vld [vmem:[%s14354_s3 + $0x3e8] sm:$0xff]  ;;  %v9283_v11 = vcombine.low %v761_v5, %v765_v6 }
  0xd7   :  { %v9285_v2 = vcombine.low %v762_v8, %v766_v10  ;;  %v9286_v12 = vcombine.high %v762_v8, %v766_v10 }
  0xd9   :  { %6842 = vmatpush1.bf16.msra.mxu0 %v9219_v14  ;;  %7170 = vmatpush1.bf16.msra.mxu1 %v9221_v15  ;;  %v773_v14 = vld [vmem:[%s14354_s3 + $0x420] sm:$0xff]  ;;  %v770_v15 = vld [vmem:[%s14354_s3 + $0x408] sm:$0xff] }
  0xda   :  { %6843 = vmatprep.subr.bf16.mxu0 %v9228_v16  ;;  %7171 = vmatprep.subr.bf16.mxu1 %v9230_v17  ;;  %v9292_v16 = vcombine.high %v769_v13, %v773_v14  ;;  %v774_v17 = vld [vmem:[%s14354_s3 + $0x428] sm:$0xff]  ;;  %v9291_v18 = vcombine.low %v769_v13, %v773_v14  ;;  %v805_v14 = vld [vmem:[%s14354_s3 + $0x520] sm:$0xff] }
  0xdb   :  { %v9293_v19 = vcombine.low %v770_v15, %v774_v17  ;;  %v9294_v20 = vcombine.high %v770_v15, %v774_v17  ;;  %v802_v15 = vld [vmem:[%s14354_s3 + $0x508] sm:$0xff] }
  0xdd   :  { %6844 = vmatpush1.bf16.msra.mxu0 %v9227_v22  ;;  %7172 = vmatpush1.bf16.msra.mxu1 %v9229_v23  ;;  %v10914_v22 = vld [vmem:[%s14353_s2] sm:$0xff]  ;;  %v10917_v23 = vsub.s32 1, %v10652_v7 }
  0xde   :  { %6845 = vmatprep.subr.bf16.mxu0 %v9236_v24  ;;  %7173 = vmatprep.subr.bf16.mxu1 %v9238_v25  ;;  %v10920_v24 = vsub.s32 3, %v10652_v7  ;;  %v75_v25 = vrot.slane %v10914_v22, %v10909_v21 }
  0xdf   :  { %v79_v26 = vrot.slane %v10914_v22, %v10917_v23 }
  0xe0   :  { %v87_v27 = vrot.slane %v10914_v22, %v10920_v24  ;;  %v119_v13 = vrot.slane %v10977_v60, %v10920_v24 }
  0xe1   :  { %6846 = vmatpush1.bf16.msra.mxu0 %v9235_v30  ;;  %7174 = vmatpush1.bf16.msra.mxu1 %v9237_v31 }
  0xe2   :  { %6847 = vmatprep.subr.bf16.mxu0 %v9244_v32  ;;  %7175 = vmatprep.subr.bf16.mxu1 %v9246_v33 }
  0xe5   :  { %6848 = vmatpush1.bf16.msra.mxu0 %v9243_v38  ;;  %7176 = vmatpush1.bf16.msra.mxu1 %v9245_v39 }
  0xe6   :  { %6849 = vmatprep.subr.bf16.mxu0 %v9252_v40  ;;  %7177 = vmatprep.subr.bf16.mxu1 %v9254_v41  ;;  %v781_v40 = vld [vmem:[%s14354_s3 + $0x460] sm:$0xff]  ;;  %v778_v41 = vld [vmem:[%s14354_s3 + $0x448] sm:$0xff] }
  0xe9   :  { %6850 = vmatpush1.bf16.msra.mxu0 %v9251_v46  ;;  %7178 = vmatpush1.bf16.msra.mxu1 %v9253_v47  ;;  %v9300_v46 = vcombine.high %v777_v36, %v781_v40  ;;  %v9302_v47 = vcombine.high %v778_v41, %v782_v42 }
  0xea   :  { %6851 = vmatprep.subr.bf16.mxu0 %v9260_v48  ;;  %7179 = vmatprep.subr.bf16.mxu1 %v9262_v49  ;;  %v789_v48 = vld [vmem:[%s14354_s3 + $0x4a0] sm:$0xff]  ;;  %v786_v49 = vld [vmem:[%s14354_s3 + $0x488] sm:$0xff] }
  0xeb   :  { %v9308_v58 = vcombine.high %v785_v45, %v789_v48  ;;  %v9310_v59 = vcombine.high %v786_v49, %v790_v50  ;;  %v9307_v8 = vcombine.low %v785_v45, %v789_v48  ;;  %v11040_v45 = vsub.s32 7, %v10652_v7 }
  0xed   :  { %6852 = vmatpush1.bf16.msra.mxu0 %v9259_v54  ;;  %7180 = vmatpush1.bf16.msra.mxu1 %v9261_v55  ;;  %v9299_v54 = vcombine.low %v777_v36, %v781_v40  ;;  %v9301_v55 = vcombine.low %v778_v41, %v782_v42  ;;  %v813_v36 = vld [vmem:[%s14354_s3 + $0x560] sm:$0xff]  ;;  %v11037_v40 = vsub.s32 5, %v10652_v7 }
  0xee   :  { %6853 = vmatprep.subr.bf16.mxu0 %v9268_v56  ;;  %7181 = vmatprep.subr.bf16.mxu1 %v9270_v57 }
  0xf1   :  { %6854 = vmatpush1.bf16.msra.mxu0 %v9267_v62  ;;  %7182 = vmatpush1.bf16.msra.mxu1 %v9269_v63 }
  0xf2   :  { %6855 = vmatprep.subr.bf16.mxu0 %v9276_v0  ;;  %7183 = vmatprep.subr.bf16.mxu1 %v9278_v1  ;;  %v797_v0 = vld [vmem:[%s14354_s3 + $0x4e0] sm:$0xff]  ;;  %v794_v1 = vld [vmem:[%s14354_s3 + $0x4c8] sm:$0xff] }
  0xf5   :  { %6856 = vmatpush1.bf16.msra.mxu0 %v9275_v3  ;;  %7184 = vmatpush1.bf16.msra.mxu1 %v9277_v4  ;;  %v798_v3 = vld [vmem:[%s14354_s3 + $0x4e8] sm:$0xff]  ;;  %v10992_v4 = vsub.s32 2, %v10652_v7 }
  0xf6   :  { %6857 = vmatprep.subr.bf16.mxu0 %v9284_v9  ;;  %7185 = vmatprep.subr.bf16.mxu1 %v9286_v12  ;;  %v9309_v9 = vcombine.low %v786_v49, %v790_v50  ;;  %v801_v12 = vld [vmem:[%s14354_s3 + $0x500] sm:$0xff] }
  0xf7   :  { %v115_v10 = vrot.slane %v10977_v60, %v10992_v4 }
  0xf9   :  { %6858 = vmatpush1.bf16.msra.mxu0 %v9283_v11  ;;  %7186 = vmatpush1.bf16.msra.mxu1 %v9285_v2  ;;  %v9316_v11 = vcombine.high %v793_v61, %v797_v0  ;;  %v9318_v2 = vcombine.high %v794_v1, %v798_v3 }
  0xfa   :  { %6868 = vmatprep.subr.bf16.mxu0 %v9292_v16  ;;  %7196 = vmatprep.subr.bf16.mxu1 %v9294_v20  ;;  %v806_v16 = vld [vmem:[%s14354_s3 + $0x528] sm:$0xff]  ;;  %v9317_v20 = vcombine.low %v794_v1, %v798_v3 }
 0x177   :  { %v331_v28 = vpop.f32.mrb[0].mxu0  ;;  %v10928_v29 = vpop.f32.mrb[0].mxu1 }
 0x178   :  { %v332_v30 = vadd.f32 %v331_v28, %v75_v25  ;;  %v333_v31 = vpop.f32.mrb[1].mxu0  ;;  %v374_v32 = vpop.f32.mrb[1].mxu1  ;;  %v9324_v28 = vcombine.high %v801_v12, %v805_v14 }
 0x179   :  { %v334_v33 = vadd.f32 %v333_v31, %v79_v26  ;;  %v335_v34 = vpop.f32.mrb[2].mxu0  ;;  %v376_v35 = vpop.f32.mrb[2].mxu1  ;;  %v375_v37 = vadd.f32 %v374_v32, %v87_v27  ;;  %v809_v31 = vld [vmem:[%s14354_s3 + $0x540] sm:$0xff]  ;;  %v11020_v32 = vsub.s32 4, %v10652_v7 }
 0x17a   :  { %v336_v38 = vpop.f32.mrb[3].mxu0  ;;  %v377_v39 = vpop.f32.mrb[3].mxu1  ;;  %v10944_v44 = vpack.c.bf16 %v332_v30, %v332_v30  ;;  %v9326_v30 = vcombine.high %v802_v15, %v806_v16  ;;  %v9332_v50 = vcombine.high %v809_v31, %v813_v36  ;;  %v9331_v1 = vcombine.low %v809_v31, %v813_v36  ;;  %v834_v36 = vld [vmem:[%s14354_s3 + $0x608] sm:$0xff] }
 0x17b   :  { %v10942_v43 = vpack.c.bf16 %v334_v33, %v334_v33  ;;  %v10960_v51 = vpack.c.bf16 %v375_v37, %v375_v37  ;;  %v810_v37 = vld [vmem:[%s14354_s3 + $0x548] sm:$0xff]  ;;  %v11034_v39 = vsub.s32 6, %v10652_v7  ;;  %v123_v48 = vrot.slane %v10977_v60, %v11020_v32  ;;  %v821_v7 = vld [vmem:[%s14354_s3 + $0x5a0] sm:$0xff] }
 0x17c   :  { %v814_v38 = vld [vmem:[%s14354_s3 + $0x568] sm:$0xff] }
 0x17d   :  { %6859 = vmatprep.mubr.bf16.mxu0 %v10942_v43  ;;  %7187 = vmatprep.mubr.bf16.mxu1 %v10942_v43  ;;  %v131_v49 = vrot.slane %v10977_v60, %v11034_v39  ;;  %v9333_v3 = vcombine.low %v810_v37, %v814_v38 }
 0x17e   :  { %6860 = vmatmul.mubr.bf16.vlgmr.msra.gmra.mrb[16].mxu0 %v10944_v44  ;;  %7188 = vmatmul.mubr.bf16.vlgmr.msra.gmra.mrb[16].mxu1 %v10944_v44 }
 0x17f   :  { %6869 = vmatpush1.bf16.msra.mxu0 %v9291_v18  ;;  %7197 = vmatpush1.bf16.msra.mxu1 %v9293_v19  ;;  %v10964_v52 = vpop.f32.mrb[4].mxu0  ;;  %v10966_v53 = vpop.f32.mrb[4].mxu1  ;;  %v9315_v19 = vcombine.low %v793_v61, %v797_v0  ;;  %v818_v61 = vld [vmem:[%s14354_s3 + $0x588] sm:$0xff] }
 0x180   :  { %6900 = vmatprep.mubr.bf16.mxu0 %v10960_v51  ;;  %7228 = vmatprep.mubr.bf16.mxu1 %v10960_v51  ;;  %v10970_v56 = vpop.f32.mrb[5].mxu0  ;;  %v10972_v57 = vpop.f32.mrb[5].mxu1 }
 0x181   :  { %v417_v62 = vpop.f32.mrb[6].mxu0  ;;  %v458_v63 = vpop.f32.mrb[6].mxu1  ;;  %6870 = vmatprep.subr.bf16.mxu0 %v9300_v46  ;;  %7198 = vmatprep.subr.bf16.mxu1 %v9302_v47  ;;  %v9323_v46 = vcombine.low %v801_v12, %v805_v14  ;;  %v9325_v47 = vcombine.low %v802_v15, %v806_v16  ;;  %v829_v15 = vld [vmem:[%s14354_s3 + $0x5e0] sm:$0xff]  ;;  %v826_v16 = vld [vmem:[%s14354_s3 + $0x5c8] sm:$0xff] }
 0x182   :  { %v418_v5 = vpop.f32.mrb[7].mxu0  ;;  %v459_v6 = vpop.f32.mrb[7].mxu1  ;;  %v822_v62 = vld [vmem:[%s14354_s3 + $0x5a8] sm:$0xff] }
 0x183   :  { %6871 = vmatpush1.bf16.msra.mxu0 %v9299_v54  ;;  %7199 = vmatpush1.bf16.msra.mxu1 %v9301_v55  ;;  %v9334_v54 = vcombine.high %v810_v37, %v814_v38  ;;  %v817_v55 = vld [vmem:[%s14354_s3 + $0x580] sm:$0xff]  ;;  %v838_v37 = vld [vmem:[%s14354_s3 + $0x628] sm:$0xff] }
 0x184   :  { %6872 = vmatprep.subr.bf16.mxu0 %v9308_v58  ;;  %7200 = vmatprep.subr.bf16.mxu1 %v9310_v59  ;;  %v127_v58 = vrot.slane %v10977_v60, %v11037_v40  ;;  %v135_v59 = vrot.slane %v10977_v60, %v11040_v45  ;;  %v9340_v5 = vcombine.high %v817_v55, %v821_v7 }
 0x187   :  { %6873 = vmatpush1.bf16.msra.mxu0 %v9307_v8  ;;  %7201 = vmatpush1.bf16.msra.mxu1 %v9309_v9  ;;  %v11010_v17 = vpop.f32.mrb[8].mxu0  ;;  %v536_v18 = vpop.f32.mrb[8].mxu1 }
 0x188   :  { %v11012_v25 = vadd.f32 %v536_v18, %v115_v10  ;;  %v11014_v26 = vpop.f32.mrb[9].mxu0  ;;  %v538_v27 = vpop.f32.mrb[9].mxu1  ;;  %6874 = vmatprep.subr.bf16.mxu0 %v9316_v11  ;;  %7202 = vmatprep.subr.bf16.mxu1 %v9318_v2  ;;  %v9342_v10 = vcombine.high %v818_v61, %v822_v62  ;;  %v825_v11 = vld [vmem:[%s14354_s3 + $0x5c0] sm:$0xff]  ;;  %v830_v18 = vld [vmem:[%s14354_s3 + $0x5e8] sm:$0xff] }
 0x189   :  { %v11022_v33 = vadd.f32 %v538_v27, %v119_v13  ;;  %v499_v34 = vpop.f32.mrb[10].mxu0  ;;  %v540_v35 = vpop.f32.mrb[10].mxu1  ;;  %v9339_v27 = vcombine.low %v817_v55, %v821_v7  ;;  %v9350_v31 = vcombine.high %v826_v16, %v830_v18  ;;  %v9347_v38 = vcombine.low %v825_v11, %v829_v15 }
 0x18a   :  { %v500_v41 = vpop.f32.mrb[11].mxu0  ;;  %v541_v42 = vpop.f32.mrb[11].mxu1  ;;  %v833_v34 = vld [vmem:[%s14354_s3 + $0x600] sm:$0xff]  ;;  %v9357_v55 = vcombine.low %v834_v36, %v838_v37 }
 0x18b   :  { %6875 = vmatpush1.bf16.msra.mxu0 %v9315_v19  ;;  %7203 = vmatpush1.bf16.msra.mxu1 %v9317_v20  ;;  %v837_v35 = vld [vmem:[%s14354_s3 + $0x620] sm:$0xff]  ;;  %v9349_v41 = vcombine.low %v826_v16, %v830_v18 }
 0x18c   :  { %6876 = vmatprep.subr.bf16.mxu0 %v9324_v28  ;;  %7204 = vmatprep.subr.bf16.mxu1 %v9326_v30  ;;  %v9341_v28 = vcombine.low %v818_v61, %v822_v62  ;;  %v9348_v30 = vcombine.high %v825_v11, %v829_v15  ;;  %v9356_v42 = vcombine.high %v833_v34, %v837_v35  ;;  %v853_v61 = vld [vmem:[%s14354_s3 + $0x6a0] sm:$0xff]  ;;  %v850_v62 = vld [vmem:[%s14354_s3 + $0x688] sm:$0xff] }
 0x18d   :  { %v862_v11 = vld [vmem:[%s14354_s3 + $0x6e8] sm:$0xff]  ;;  %v865_v18 = vld [vmem:[%s14354_s3 + $0x700] sm:$0xff] }
 0x18f   :  { %6877 = vmatpush1.bf16.msra.mxu0 %v9323_v46  ;;  %7205 = vmatpush1.bf16.msra.mxu1 %v9325_v47  ;;  %v577_v63 = vpop.f32.mrb[12].mxu0  ;;  %v618_v0 = vpop.f32.mrb[12].mxu1  ;;  %v9358_v46 = vcombine.high %v834_v36, %v838_v37  ;;  %v841_v47 = vld [vmem:[%s14354_s3 + $0x640] sm:$0xff]  ;;  %v874_v37 = vld [vmem:[%s14354_s3 + $0x748] sm:$0xff] }
 0x190   :  { %v11062_v6 = vadd.f32 %v577_v63, %v123_v48  ;;  %v11064_v8 = vadd.f32 %v618_v0, %v131_v49  ;;  %v579_v60 = vpop.f32.mrb[13].mxu0  ;;  %v620_v9 = vpop.f32.mrb[13].mxu1  ;;  %6878 = vmatprep.subr.bf16.mxu0 %v9332_v50  ;;  %7206 = vmatprep.subr.bf16.mxu1 %v9334_v54  ;;  %v845_v48 = vld [vmem:[%s14354_s3 + $0x660] sm:$0xff]  ;;  %v842_v49 = vld [vmem:[%s14354_s3 + $0x648] sm:$0xff]  ;;  %v9355_v54 = vcombine.low %v833_v34, %v837_v35 }
 0x191   :  { %v11069_v2 = vadd.f32 %v579_v60, %v127_v58  ;;  %v11071_v12 = vadd.f32 %v620_v9, %v135_v59  ;;  %v581_v13 = vpop.f32.mrb[14].mxu0  ;;  %v622_v14 = vpop.f32.mrb[14].mxu1  ;;  %v846_v50 = vld [vmem:[%s14354_s3 + $0x668] sm:$0xff]  ;;  %v9364_v7 = vcombine.high %v841_v47, %v845_v48  ;;  %v849_v59 = vld [vmem:[%s14354_s3 + $0x680] sm:$0xff]  ;;  %v9363_v0 = vcombine.low %v841_v47, %v845_v48 }
 0x192   :  { %v582_v19 = vpop.f32.mrb[15].mxu0  ;;  %v623_v20 = vpop.f32.mrb[15].mxu1  ;;  %v9366_v58 = vcombine.high %v842_v49, %v846_v50  ;;  %v854_v63 = vld [vmem:[%s14354_s3 + $0x6a8] sm:$0xff]  ;;  %v857_v60 = vld [vmem:[%s14354_s3 + $0x6c0] sm:$0xff]  ;;  %v9371_v13 = vcombine.low %v849_v59, %v853_v61 }
 0x193   :  { %6879 = vmatpush1.bf16.msra.mxu0 %v9331_v1  ;;  %7207 = vmatpush1.bf16.msra.mxu1 %v9333_v3  ;;  %v9365_v1 = vcombine.low %v842_v49, %v846_v50  ;;  %v9372_v3 = vcombine.high %v849_v59, %v853_v61  ;;  %v861_v9 = vld [vmem:[%s14354_s3 + $0x6e0] sm:$0xff]  ;;  %v9373_v14 = vcombine.low %v850_v62, %v854_v63  ;;  %v866_v20 = vld [vmem:[%s14354_s3 + $0x708] sm:$0xff] }
 0x194   :  { %6880 = vmatprep.subr.bf16.mxu0 %v9340_v5  ;;  %7208 = vmatprep.subr.bf16.mxu1 %v9342_v10  ;;  %v9374_v5 = vcombine.high %v850_v62, %v854_v63  ;;  %v858_v10 = vld [vmem:[%s14354_s3 + $0x6c8] sm:$0xff]  ;;  %v9380_v15 = vcombine.high %v857_v60, %v861_v9  ;;  %v869_v19 = vld [vmem:[%s14354_s3 + $0x720] sm:$0xff] }
 0x195   :  { %v9382_v16 = vcombine.high %v858_v10, %v862_v11  ;;  %v873_v35 = vld [vmem:[%s14354_s3 + $0x740] sm:$0xff]  ;;  %v882_v50 = vld [vmem:[%s14354_s3 + $0x788] sm:$0xff] }
 0x196   :  { %v877_v36 = vld [vmem:[%s14354_s3 + $0x760] sm:$0xff]  ;;  %v890_v63 = vld [vmem:[%s14354_s3 + $0x7c8] sm:$0xff] }
 0x197   :  { %6881 = vmatpush1.bf16.msra.mxu0 %v9339_v27  ;;  %7209 = vmatpush1.bf16.msra.mxu1 %v9341_v28  ;;  %v870_v27 = vld [vmem:[%s14354_s3 + $0x728] sm:$0xff]  ;;  %v9379_v28 = vcombine.low %v857_v60, %v861_v9  ;;  %v881_v48 = vld [vmem:[%s14354_s3 + $0x780] sm:$0xff] }
 0x198   :  { %6882 = vmatprep.subr.bf16.mxu0 %v9348_v30  ;;  %7210 = vmatprep.subr.bf16.mxu1 %v9350_v31  ;;  %v9381_v30 = vcombine.low %v858_v10, %v862_v11  ;;  %v9388_v31 = vcombine.high %v865_v18, %v869_v19  ;;  %v9390_v34 = vcombine.high %v866_v20, %v870_v27  ;;  %v885_v49 = vld [vmem:[%s14354_s3 + $0x7a0] sm:$0xff] }
 0x199   :  { %v889_v61 = vld [vmem:[%s14354_s3 + $0x7c0] sm:$0xff]  ;;  %v95_v11 = vrot.slane %v10914_v22, %v11037_v40 }
 0x19a   :  { %v893_v62 = vld [vmem:[%s14354_s3 + $0x7e0] sm:$0xff] }
 0x19b   :  { %6883 = vmatpush1.bf16.msra.mxu0 %v9347_v38  ;;  %7211 = vmatpush1.bf16.msra.mxu1 %v9349_v41  ;;  %v878_v38 = vld [vmem:[%s14354_s3 + $0x768] sm:$0xff]  ;;  %v9387_v41 = vcombine.low %v865_v18, %v869_v19  ;;  %v9412_v60 = vcombine.high %v889_v61, %v893_v62  ;;  %v897_v10 = vld [vmem:[%s14354_s3 + $0x800] sm:$0xff] }
 0x19c   :  { %6884 = vmatprep.subr.bf16.mxu0 %v9356_v42  ;;  %7212 = vmatprep.subr.bf16.mxu1 %v9358_v46  ;;  %v9389_v42 = vcombine.low %v866_v20, %v870_v27  ;;  %v9396_v46 = vcombine.high %v873_v35, %v877_v36  ;;  %v9398_v47 = vcombine.high %v874_v37, %v878_v38 }
 0x19f   :  { %6885 = vmatpush1.bf16.msra.mxu0 %v9355_v54  ;;  %7213 = vmatpush1.bf16.msra.mxu1 %v9357_v55  ;;  %v886_v54 = vld [vmem:[%s14354_s3 + $0x7a8] sm:$0xff]  ;;  %v9395_v55 = vcombine.low %v873_v35, %v877_v36 }
 0x1a0   :  { %6886 = vmatprep.subr.bf16.mxu0 %v9364_v7  ;;  %7214 = vmatprep.subr.bf16.mxu1 %v9366_v58  ;;  %v9397_v7 = vcombine.low %v874_v37, %v878_v38  ;;  %v9404_v58 = vcombine.high %v881_v48, %v885_v49  ;;  %v9406_v59 = vcombine.high %v882_v50, %v886_v54 }
 0x1a3   :  { %6887 = vmatpush1.bf16.msra.mxu0 %v9363_v0  ;;  %7215 = vmatpush1.bf16.msra.mxu1 %v9365_v1  ;;  %v894_v0 = vld [vmem:[%s14354_s3 + $0x7e8] sm:$0xff]  ;;  %v9403_v1 = vcombine.low %v881_v48, %v885_v49 }
 0x1a4   :  { %6888 = vmatprep.subr.bf16.mxu0 %v9372_v3  ;;  %7216 = vmatprep.subr.bf16.mxu1 %v9374_v5  ;;  %v9405_v3 = vcombine.low %v882_v50, %v886_v54  ;;  %v83_v5 = vrot.slane %v10914_v22, %v10992_v4  ;;  %v9414_v9 = vcombine.high %v890_v63, %v894_v0  ;;  %v918_v48 = vld [vmem:[%s14354_s3 + $0x8a8] sm:$0xff] }
 0x1a5   :  { %v9413_v18 = vcombine.low %v890_v63, %v894_v0 }
 0x1a6   :  { %v373_v19 = vadd.f32 %v10928_v29, %v83_v5  ;;  %v910_v29 = vld [vmem:[%s14354_s3 + $0x868] sm:$0xff]  ;;  %v933_v5 = vld [vmem:[%s14354_s3 + $0x920] sm:$0xff] }
 0x1a7   :  { %6889 = vmatpush1.bf16.msra.mxu0 %v9371_v13  ;;  %7217 = vmatpush1.bf16.msra.mxu1 %v9373_v14  ;;  %v901_v13 = vld [vmem:[%s14354_s3 + $0x820] sm:$0xff]  ;;  %v898_v14 = vld [vmem:[%s14354_s3 + $0x808] sm:$0xff] }
 0x1a8   :  { %6890 = vmatprep.subr.bf16.mxu0 %v9380_v15  ;;  %7218 = vmatprep.subr.bf16.mxu1 %v9382_v16  ;;  %v902_v15 = vld [vmem:[%s14354_s3 + $0x828] sm:$0xff]  ;;  %v9411_v16 = vcombine.low %v889_v61, %v893_v62  ;;  %v9420_v20 = vcombine.high %v897_v10, %v901_v13  ;;  %v9419_v35 = vcombine.low %v897_v10, %v901_v13 }
 0x1a9   :  { %v9422_v27 = vcombine.high %v898_v14, %v902_v15  ;;  %v9421_v36 = vcombine.low %v898_v14, %v902_v15  ;;  %v926_v61 = vld [vmem:[%s14354_s3 + $0x8e8] sm:$0xff]  ;;  %v937_v15 = vld [vmem:[%s14354_s3 + $0x940] sm:$0xff] }
 0x1ab   :  { %6891 = vmatpush1.bf16.msra.mxu0 %v9379_v28  ;;  %7219 = vmatpush1.bf16.msra.mxu1 %v9381_v30  ;;  %v416_v28 = vadd.f32 %v10970_v56, %v95_v11  ;;  %v905_v30 = vld [vmem:[%s14354_s3 + $0x840] sm:$0xff]  ;;  %v11208_v56 = vpack.c.bf16 %v373_v19, %v373_v19  ;;  %v942_v19 = vld [vmem:[%s14354_s3 + $0x968] sm:$0xff] }
 0x1ac   :  { %6892 = vmatprep.subr.bf16.mxu0 %v9388_v31  ;;  %7220 = vmatprep.subr.bf16.mxu1 %v9390_v34  ;;  %v909_v31 = vld [vmem:[%s14354_s3 + $0x860] sm:$0xff]  ;;  %v906_v34 = vld [vmem:[%s14354_s3 + $0x848] sm:$0xff] }
 0x1ad   :  { %v11210_v37 = vpack.c.bf16 %v416_v28, %v416_v28  ;;  %v9428_v38 = vcombine.high %v905_v30, %v909_v31  ;;  %v9427_v49 = vcombine.low %v905_v30, %v909_v31  ;;  %v9429_v50 = vcombine.low %v906_v34, %v910_v29  ;;  %v945_v31 = vld [vmem:[%s14354_s3 + $0x980] sm:$0xff] }
 0x1af   :  { %6893 = vmatpush1.bf16.msra.mxu0 %v9387_v41  ;;  %7221 = vmatpush1.bf16.msra.mxu1 %v9389_v42  ;;  %v9430_v41 = vcombine.high %v906_v34, %v910_v29  ;;  %v913_v42 = vld [vmem:[%s14354_s3 + $0x880] sm:$0xff]  ;;  %v946_v29 = vld [vmem:[%s14354_s3 + $0x988] sm:$0xff] }
 0x1b0   :  { %6894 = vmatprep.subr.bf16.mxu0 %v9396_v46  ;;  %7222 = vmatprep.subr.bf16.mxu1 %v9398_v47  ;;  %v917_v46 = vld [vmem:[%s14354_s3 + $0x8a0] sm:$0xff]  ;;  %v914_v47 = vld [vmem:[%s14354_s3 + $0x888] sm:$0xff] }
 0x1b1   :  { %v9436_v54 = vcombine.high %v913_v42, %v917_v46  ;;  %v9435_v62 = vcombine.low %v913_v42, %v917_v46  ;;  %v9437_v63 = vcombine.low %v914_v47, %v918_v48  ;;  %v949_v34 = vld [vmem:[%s14354_s3 + $0x9a0] sm:$0xff] }
 0x1b2   :  { %v953_v46 = vld [vmem:[%s14354_s3 + $0x9c0] sm:$0xff] }
 0x1b3   :  { %6895 = vmatpush1.bf16.msra.mxu0 %v9395_v55  ;;  %7223 = vmatpush1.bf16.msra.mxu1 %v9397_v7  ;;  %v9438_v55 = vcombine.high %v914_v47, %v918_v48  ;;  %v921_v7 = vld [vmem:[%s14354_s3 + $0x8c0] sm:$0xff]  ;;  %v954_v48 = vld [vmem:[%s14354_s3 + $0x9c8] sm:$0xff] }
 0x1b4   :  { %6896 = vmatprep.subr.bf16.mxu0 %v9404_v58  ;;  %7224 = vmatprep.subr.bf16.mxu1 %v9406_v59  ;;  %v925_v58 = vld [vmem:[%s14354_s3 + $0x8e0] sm:$0xff]  ;;  %v922_v59 = vld [vmem:[%s14354_s3 + $0x8c8] sm:$0xff] }
 0x1b5   :  { %v9444_v0 = vcombine.high %v921_v7, %v925_v58  ;;  %v9443_v10 = vcombine.low %v921_v7, %v925_v58  ;;  %v9445_v11 = vcombine.low %v922_v59, %v926_v61  ;;  %v957_v47 = vld [vmem:[%s14354_s3 + $0x9e0] sm:$0xff] }
 0x1b6   :  { %v961_v58 = vld [vmem:[%s14354_s3 + $0xa00] sm:$0xff] }
 0x1b7   :  { %6897 = vmatpush1.bf16.msra.mxu0 %v9403_v1  ;;  %7225 = vmatpush1.bf16.msra.mxu1 %v9405_v3  ;;  %v9446_v1 = vcombine.high %v922_v59, %v926_v61  ;;  %v929_v3 = vld [vmem:[%s14354_s3 + $0x900] sm:$0xff]  ;;  %v962_v61 = vld [vmem:[%s14354_s3 + $0xa08] sm:$0xff] }
 0x1b8   :  { %6898 = vmatprep.subr.bf16.mxu0 %v9412_v60  ;;  %7226 = vmatprep.subr.bf16.mxu1 %v9414_v9  ;;  %v930_v60 = vld [vmem:[%s14354_s3 + $0x908] sm:$0xff]  ;;  %v9452_v13 = vcombine.high %v929_v3, %v933_v5  ;;  %v965_v59 = vld [vmem:[%s14354_s3 + $0xa20] sm:$0xff] }
 0x1b9   :  { %v934_v9 = vld [vmem:[%s14354_s3 + $0x928] sm:$0xff] }
 0x1ba   :  { %v9454_v14 = vcombine.high %v930_v60, %v934_v9 }
 0x1bb   :  { %6899 = vmatpush1.bf16.msra.mxu0 %v9411_v16  ;;  %7227 = vmatpush1.bf16.msra.mxu1 %v9413_v18  ;;  %v941_v16 = vld [vmem:[%s14354_s3 + $0x960] sm:$0xff]  ;;  %v938_v18 = vld [vmem:[%s14354_s3 + $0x948] sm:$0xff] }
 0x1bc   :  { %6909 = vmatprep.subr.bf16.mxu0 %v9420_v20  ;;  %7237 = vmatprep.subr.bf16.mxu1 %v9422_v27  ;;  %v9451_v20 = vcombine.low %v929_v3, %v933_v5  ;;  %v9453_v27 = vcombine.low %v930_v60, %v934_v9  ;;  %v9460_v28 = vcombine.high %v937_v15, %v941_v16  ;;  %v969_v5 = vld [vmem:[%s14354_s3 + $0xa40] sm:$0xff]  ;;  %v970_v9 = vld [vmem:[%s14354_s3 + $0xa48] sm:$0xff] }
 0x1bd   :  { %v9462_v30 = vcombine.high %v938_v18, %v942_v19  ;;  %v973_v60 = vld [vmem:[%s14354_s3 + $0xa60] sm:$0xff] }
 0x1be   :  { %6901 = vmatmul.mubr.bf16.vlgmr.msra.gmra.mrb[16].mxu0 %v11208_v56  ;;  %7229 = vmatmul.mubr.bf16.vlgmr.msra.gmra.mrb[16].mxu1 %v11208_v56 }
 0x1bf   :  { %6910 = vmatpush1.bf16.msra.mxu0 %v9419_v35  ;;  %6941 = vmatprep.mubr.bf16.mxu0 %v11210_v37  ;;  %v950_v35 = vld [vmem:[%s14354_s3 + $0x9a8] sm:$0xff] }
 0x1c0   :  { %7238 = vmatpush1.bf16.msra.mxu1 %v9421_v36  ;;  %7269 = vmatprep.mubr.bf16.mxu1 %v11210_v37  ;;  %v9459_v36 = vcombine.low %v937_v15, %v941_v16  ;;  %v9470_v42 = vcombine.high %v946_v29, %v950_v35  ;;  %v977_v16 = vld [vmem:[%s14354_s3 + $0xa80] sm:$0xff] }
 0x1c1   :  { %6911 = vmatprep.subr.bf16.mxu0 %v9428_v38  ;;  %7239 = vmatprep.subr.bf16.mxu1 %v9430_v41  ;;  %v9461_v38 = vcombine.low %v938_v18, %v942_v19  ;;  %v9468_v41 = vcombine.high %v945_v31, %v949_v34  ;;  %v981_v18 = vld [vmem:[%s14354_s3 + $0xaa0] sm:$0xff]  ;;  %v978_v19 = vld [vmem:[%s14354_s3 + $0xa88] sm:$0xff] }
 0x1c3   :  { %6912 = vmatpush1.bf16.msra.mxu0 %v9427_v49  ;;  %v958_v49 = vld [vmem:[%s14354_s3 + $0x9e8] sm:$0xff] }
 0x1c4   :  { %7240 = vmatpush1.bf16.msra.mxu1 %v9429_v50  ;;  %6913 = vmatprep.subr.bf16.mxu0 %v9436_v54  ;;  %v9467_v50 = vcombine.low %v945_v31, %v949_v34  ;;  %v9469_v54 = vcombine.low %v946_v29, %v950_v35  ;;  %v9478_v7 = vcombine.high %v954_v48, %v958_v49  ;;  %v985_v34 = vld [vmem:[%s14354_s3 + $0xac0] sm:$0xff]  ;;  %v986_v35 = vld [vmem:[%s14354_s3 + $0xac8] sm:$0xff] }
 0x1c5   :  { %7241 = vmatprep.subr.bf16.mxu1 %v9438_v55  ;;  %v9476_v55 = vcombine.high %v953_v46, %v957_v47  ;;  %v989_v29 = vld [vmem:[%s14354_s3 + $0xae0] sm:$0xff] }
 0x1c7   :  { %6914 = vmatpush1.bf16.msra.mxu0 %v9435_v62  ;;  %v966_v62 = vld [vmem:[%s14354_s3 + $0xa28] sm:$0xff] }
 0x1c8   :  { %7242 = vmatpush1.bf16.msra.mxu1 %v9437_v63  ;;  %6915 = vmatprep.subr.bf16.mxu0 %v9444_v0  ;;  %v9475_v63 = vcombine.low %v953_v46, %v957_v47  ;;  %v9477_v0 = vcombine.low %v954_v48, %v958_v49  ;;  %v9486_v3 = vcombine.high %v962_v61, %v966_v62  ;;  %v993_v47 = vld [vmem:[%s14354_s3 + $0xb00] sm:$0xff]  ;;  %v994_v49 = vld [vmem:[%s14354_s3 + $0xb08] sm:$0xff] }
 0x1c9   :  { %7243 = vmatprep.subr.bf16.mxu1 %v9446_v1  ;;  %v9484_v1 = vcombine.high %v961_v58, %v965_v59  ;;  %v997_v48 = vld [vmem:[%s14354_s3 + $0xb20] sm:$0xff] }
 0x1cb   :  { %6916 = vmatpush1.bf16.msra.mxu0 %v9443_v10  ;;  %v974_v10 = vld [vmem:[%s14354_s3 + $0xa68] sm:$0xff] }
 0x1cc   :  { %7244 = vmatpush1.bf16.msra.mxu1 %v9445_v11  ;;  %6917 = vmatprep.subr.bf16.mxu0 %v9452_v13  ;;  %v9483_v11 = vcombine.low %v961_v58, %v965_v59  ;;  %v9485_v13 = vcombine.low %v962_v61, %v966_v62  ;;  %v9494_v15 = vcombine.high %v970_v9, %v974_v10  ;;  %v1001_v59 = vld [vmem:[%s14354_s3 + $0xb40] sm:$0xff]  ;;  %v1002_v62 = vld [vmem:[%s14354_s3 + $0xb48] sm:$0xff] }
 0x1cd   :  { %7245 = vmatprep.subr.bf16.mxu1 %v9454_v14  ;;  %v9492_v14 = vcombine.high %v969_v5, %v973_v60  ;;  %v1005_v61 = vld [vmem:[%s14354_s3 + $0xb60] sm:$0xff] }
 0x1cf   :  { %6918 = vmatpush1.bf16.msra.mxu0 %v9451_v20  ;;  %v982_v20 = vld [vmem:[%s14354_s3 + $0xaa8] sm:$0xff] }
 0x1d0   :  { %7246 = vmatpush1.bf16.msra.mxu1 %v9453_v27  ;;  %6919 = vmatprep.subr.bf16.mxu0 %v9460_v28  ;;  %v9491_v27 = vcombine.low %v969_v5, %v973_v60  ;;  %v9493_v28 = vcombine.low %v970_v9, %v974_v10  ;;  %v9502_v31 = vcombine.high %v978_v19, %v982_v20  ;;  %v1009_v60 = vld [vmem:[%s14354_s3 + $0xb80] sm:$0xff]  ;;  %v1010_v10 = vld [vmem:[%s14354_s3 + $0xb88] sm:$0xff] }
 0x1d1   :  { %7247 = vmatprep.subr.bf16.mxu1 %v9462_v30  ;;  %v9500_v30 = vcombine.high %v977_v16, %v981_v18  ;;  %v1013_v9 = vld [vmem:[%s14354_s3 + $0xba0] sm:$0xff] }
 0x1d3   :  { %6920 = vmatpush1.bf16.msra.mxu0 %v9459_v36  ;;  %v990_v36 = vld [vmem:[%s14354_s3 + $0xae8] sm:$0xff] }
 0x1d4   :  { %7248 = vmatpush1.bf16.msra.mxu1 %v9461_v38  ;;  %6921 = vmatprep.subr.bf16.mxu0 %v9468_v41  ;;  %v9499_v38 = vcombine.low %v977_v16, %v981_v18  ;;  %v9501_v41 = vcombine.low %v978_v19, %v982_v20  ;;  %v9510_v46 = vcombine.high %v986_v35, %v990_v36  ;;  %v1017_v18 = vld [vmem:[%s14354_s3 + $0xbc0] sm:$0xff]  ;;  %v1018_v20 = vld [vmem:[%s14354_s3 + $0xbc8] sm:$0xff] }
 0x1d5   :  { %7249 = vmatprep.subr.bf16.mxu1 %v9470_v42  ;;  %v9508_v42 = vcombine.high %v985_v34, %v989_v29  ;;  %v1021_v19 = vld [vmem:[%s14354_s3 + $0xbe0] sm:$0xff] }
 0x1d7   :  { %6922 = vmatpush1.bf16.msra.mxu0 %v9467_v50  ;;  %v998_v50 = vld [vmem:[%s14354_s3 + $0xb28] sm:$0xff] }
 0x1d8   :  { %7250 = vmatpush1.bf16.msra.mxu1 %v9469_v54  ;;  %6923 = vmatprep.subr.bf16.mxu0 %v9476_v55  ;;  %v9507_v54 = vcombine.low %v985_v34, %v989_v29  ;;  %v9509_v55 = vcombine.low %v986_v35, %v990_v36  ;;  %v9518_v58 = vcombine.high %v994_v49, %v998_v50  ;;  %v1025_v35 = vld [vmem:[%s14354_s3 + $0xc00] sm:$0xff] }
 0x1d9   :  { %7251 = vmatprep.subr.bf16.mxu1 %v9478_v7  ;;  %v9516_v7 = vcombine.high %v993_v47, %v997_v48  ;;  %v9540_v34 = vcombine.high %v1017_v18, %v1021_v19  ;;  %v1029_v36 = vld [vmem:[%s14354_s3 + $0xc20] sm:$0xff] }
 0x1db   :  { %6924 = vmatpush1.bf16.msra.mxu0 %v9475_v63  ;;  %v1006_v63 = vld [vmem:[%s14354_s3 + $0xb68] sm:$0xff] }
 0x1dc   :  { %7252 = vmatpush1.bf16.msra.mxu1 %v9477_v0  ;;  %6925 = vmatprep.subr.bf16.mxu0 %v9484_v1  ;;  %v9515_v0 = vcombine.low %v993_v47, %v997_v48  ;;  %v9517_v1 = vcombine.low %v994_v49, %v998_v50  ;;  %v9526_v5 = vcombine.high %v1002_v62, %v1006_v63 }
 0x1dd   :  { %7253 = vmatprep.subr.bf16.mxu1 %v9486_v3  ;;  %v9524_v3 = vcombine.high %v1001_v59, %v1005_v61  ;;  %v9548_v49 = vcombine.high %v1025_v35, %v1029_v36 }
 0x1df   :  { %6926 = vmatpush1.bf16.msra.mxu0 %v9483_v11  ;;  %v1014_v11 = vld [vmem:[%s14354_s3 + $0xba8] sm:$0xff] }
 0x1e0   :  { %7254 = vmatpush1.bf16.msra.mxu1 %v9485_v13  ;;  %6927 = vmatprep.subr.bf16.mxu0 %v9492_v14  ;;  %v9523_v13 = vcombine.low %v1001_v59, %v1005_v61  ;;  %v9525_v14 = vcombine.low %v1002_v62, %v1006_v63  ;;  %v9534_v16 = vcombine.high %v1010_v10, %v1014_v11  ;;  %v1041_v62 = vld [vmem:[%s14354_s3 + $0xc80] sm:$0xff] }
 0x1e1   :  { %7255 = vmatprep.subr.bf16.mxu1 %v9494_v15  ;;  %v9532_v15 = vcombine.high %v1009_v60, %v1013_v9  ;;  %v1045_v63 = vld [vmem:[%s14354_s3 + $0xca0] sm:$0xff] }
 0x1e3   :  { %6928 = vmatpush1.bf16.msra.mxu0 %v9491_v27  ;;  %v1022_v27 = vld [vmem:[%s14354_s3 + $0xbe8] sm:$0xff] }
 0x1e4   :  { %7256 = vmatpush1.bf16.msra.mxu1 %v9493_v28  ;;  %6929 = vmatprep.subr.bf16.mxu0 %v9500_v30  ;;  %v9531_v28 = vcombine.low %v1009_v60, %v1013_v9  ;;  %v91_v30 = vrot.slane %v10914_v22, %v11020_v32  ;;  %v9542_v29 = vcombine.high %v1018_v20, %v1022_v27 }
 0x1e5   :  { %7257 = vmatprep.subr.bf16.mxu1 %v9502_v31  ;;  %v9533_v31 = vcombine.low %v1010_v10, %v1014_v11  ;;  %v9541_v48 = vcombine.low %v1018_v20, %v1022_v27  ;;  %v9564_v10 = vcombine.high %v1041_v62, %v1045_v63 }
 0x1e6   :  { %v414_v47 = vadd.f32 %v10964_v52, %v91_v30  ;;  %v1034_v52 = vld [vmem:[%s14354_s3 + $0xc48] sm:$0xff]  ;;  %v1061_v30 = vld [vmem:[%s14354_s3 + $0xd20] sm:$0xff] }
 0x1e7   :  { %6930 = vmatpush1.bf16.msra.mxu0 %v9499_v38  ;;  %v103_v38 = vrot.slane %v10914_v22, %v11040_v45 }
 0x1e8   :  { %7258 = vmatpush1.bf16.msra.mxu1 %v9501_v41  ;;  %6931 = vmatprep.subr.bf16.mxu0 %v9508_v42  ;;  %v1026_v41 = vld [vmem:[%s14354_s3 + $0xc08] sm:$0xff]  ;;  %v11414_v59 = vpack.c.bf16 %v414_v47, %v414_v47 }
 0x1e9   :  { %7259 = vmatprep.subr.bf16.mxu1 %v9510_v46  ;;  %v1030_v42 = vld [vmem:[%s14354_s3 + $0xc28] sm:$0xff]  ;;  %v9539_v46 = vcombine.low %v1017_v18, %v1021_v19  ;;  %v457_v22 = vadd.f32 %v10972_v57, %v103_v38  ;;  %v9563_v18 = vcombine.low %v1041_v62, %v1045_v63  ;;  %v1081_v63 = vld [vmem:[%s14354_s3 + $0xdc0] sm:$0xff] }
 0x1ea   :  { %v9550_v50 = vcombine.high %v1026_v41, %v1030_v42  ;;  %v9549_v57 = vcombine.low %v1026_v41, %v1030_v42  ;;  %v1065_v41 = vld [vmem:[%s14354_s3 + $0xd40] sm:$0xff]  ;;  %v1070_v47 = vld [vmem:[%s14354_s3 + $0xd68] sm:$0xff] }
 0x1eb   :  { %6932 = vmatpush1.bf16.msra.mxu0 %v9507_v54  ;;  %v1033_v54 = vld [vmem:[%s14354_s3 + $0xc40] sm:$0xff] }
 0x1ec   :  { %7260 = vmatpush1.bf16.msra.mxu1 %v9509_v55  ;;  %6933 = vmatprep.subr.bf16.mxu0 %v9516_v7  ;;  %v1037_v55 = vld [vmem:[%s14354_s3 + $0xc60] sm:$0xff]  ;;  %v9547_v7 = vcombine.low %v1025_v35, %v1029_v36 }
 0x1ed   :  { %7261 = vmatprep.subr.bf16.mxu1 %v9518_v58  ;;  %v1038_v58 = vld [vmem:[%s14354_s3 + $0xc68] sm:$0xff]  ;;  %v9556_v61 = vcombine.high %v1033_v54, %v1037_v55  ;;  %v9555_v60 = vcombine.low %v1033_v54, %v1037_v55  ;;  %v1069_v42 = vld [vmem:[%s14354_s3 + $0xd60] sm:$0xff] }
 0x1ee   :  { %v9557_v9 = vcombine.low %v1034_v52, %v1038_v58  ;;  %v1073_v54 = vld [vmem:[%s14354_s3 + $0xd80] sm:$0xff] }
 0x1ef   :  { %6934 = vmatpush1.bf16.msra.mxu0 %v9515_v0  ;;  %v11422_v0 = vpack.c.bf16 %v457_v22, %v457_v22  ;;  %v1077_v55 = vld [vmem:[%s14354_s3 + $0xda0] sm:$0xff] }
 0x1f0   :  { %7262 = vmatpush1.bf16.msra.mxu1 %v9517_v1  ;;  %6935 = vmatprep.subr.bf16.mxu0 %v9524_v3  ;;  %v9558_v1 = vcombine.high %v1034_v52, %v1038_v58  ;;  %v1042_v3 = vld [vmem:[%s14354_s3 + $0xc88] sm:$0xff]  ;;  %v9587_v58 = vcombine.low %v1065_v41, %v1069_v42 }
 0x1f1   :  { %7263 = vmatprep.subr.bf16.mxu1 %v9526_v5  ;;  %v1046_v5 = vld [vmem:[%s14354_s3 + $0xca8] sm:$0xff] }
 0x1f2   :  { %v9566_v11 = vcombine.high %v1042_v3, %v1046_v5  ;;  %v9565_v19 = vcombine.low %v1042_v3, %v1046_v5  ;;  %v1078_v52 = vld [vmem:[%s14354_s3 + $0xda8] sm:$0xff] }
 0x1f3   :  { %6936 = vmatpush1.bf16.msra.mxu0 %v9523_v13  ;;  %v1049_v13 = vld [vmem:[%s14354_s3 + $0xcc0] sm:$0xff]  ;;  %v1082_v3 = vld [vmem:[%s14354_s3 + $0xdc8] sm:$0xff] }
 0x1f4   :  { %7264 = vmatpush1.bf16.msra.mxu1 %v9525_v14  ;;  %6937 = vmatprep.subr.bf16.mxu0 %v9532_v15  ;;  %v1053_v14 = vld [vmem:[%s14354_s3 + $0xce0] sm:$0xff]  ;;  %v1050_v15 = vld [vmem:[%s14354_s3 + $0xcc8] sm:$0xff] }
 0x1f5   :  { %7265 = vmatprep.subr.bf16.mxu1 %v9534_v16  ;;  %v1054_v16 = vld [vmem:[%s14354_s3 + $0xce8] sm:$0xff]  ;;  %v9572_v20 = vcombine.high %v1049_v13, %v1053_v14 }
 0x1f6   :  { %v9574_v27 = vcombine.high %v1050_v15, %v1054_v16  ;;  %v9573_v35 = vcombine.low %v1050_v15, %v1054_v16  ;;  %v1086_v5 = vld [vmem:[%s14354_s3 + $0xde8] sm:$0xff] }
 0x1f7   :  { %6938 = vmatpush1.bf16.msra.mxu0 %v9531_v28  ;;  %v1057_v28 = vld [vmem:[%s14354_s3 + $0xd00] sm:$0xff]  ;;  %v1090_v15 = vld [vmem:[%s14354_s3 + $0xe08] sm:$0xff] }
 0x1f8   :  { %7266 = vmatpush1.bf16.msra.mxu1 %v9533_v31  ;;  %6939 = vmatprep.subr.bf16.mxu0 %v9540_v34  ;;  %v1058_v31 = vld [vmem:[%s14354_s3 + $0xd08] sm:$0xff]  ;;  %v9580_v36 = vcombine.high %v1057_v28, %v1061_v30 }
 0x1f9   :  { %7267 = vmatprep.subr.bf16.mxu1 %v9542_v29  ;;  %v1062_v34 = vld [vmem:[%s14354_s3 + $0xd28] sm:$0xff]  ;;  %v9571_v29 = vcombine.low %v1049_v13, %v1053_v14  ;;  %v1089_v13 = vld [vmem:[%s14354_s3 + $0xe00] sm:$0xff] }
 0x1fa   :  { %v9582_v38 = vcombine.high %v1058_v31, %v1062_v34  ;;  %v1093_v14 = vld [vmem:[%s14354_s3 + $0xe20] sm:$0xff]  ;;  %v1094_v16 = vld [vmem:[%s14354_s3 + $0xe28] sm:$0xff] }
 0x1fb   :  { %6940 = vmatpush1.bf16.msra.mxu0 %v9539_v46  ;;  %v1066_v46 = vld [vmem:[%s14354_s3 + $0xd48] sm:$0xff] }
 0x1fc   :  { %7268 = vmatpush1.bf16.msra.mxu1 %v9541_v48  ;;  %6950 = vmatprep.subr.bf16.mxu0 %v9548_v49  ;;  %v9579_v48 = vcombine.low %v1057_v28, %v1061_v30  ;;  %v9581_v49 = vcombine.low %v1058_v31, %v1062_v34  ;;  %v9590_v22 = vcombine.high %v1066_v46, %v1070_v47  ;;  %v1097_v28 = vld [vmem:[%s14354_s3 + $0xe40] sm:$0xff]  ;;  %v1098_v31 = vld [vmem:[%s14354_s3 + $0xe48] sm:$0xff] }
 0x1fd   :  { %7278 = vmatprep.subr.bf16.mxu1 %v9550_v50  ;;  %v9588_v50 = vcombine.high %v1065_v41, %v1069_v42  ;;  %v1101_v30 = vld [vmem:[%s14354_s3 + $0xe60] sm:$0xff]  ;;  %v1102_v34 = vld [vmem:[%s14354_s3 + $0xe68] sm:$0xff] }
 0x1fe   :  { %6942 = vmatmul.mubr.bf16.vlgmr.msra.gmra.mrb[16].mxu0 %v11414_v59  ;;  %v1105_v41 = vld [vmem:[%s14354_s3 + $0xe80] sm:$0xff] }
 0x1ff   :  { %7270 = vmatmul.mubr.bf16.vlgmr.msra.gmra.mrb[16].mxu1 %v11414_v59  ;;  %6951 = vmatpush1.bf16.msra.mxu0 %v9547_v7  ;;  %v1074_v7 = vld [vmem:[%s14354_s3 + $0xd88] sm:$0xff]  ;;  %v1109_v42 = vld [vmem:[%s14354_s3 + $0xea0] sm:$0xff] }
 0x200   :  { %6982 = vmatprep.mubr.bf16.mxu0 %v11422_v0  ;;  %7279 = vmatpush1.bf16.msra.mxu1 %v9549_v57  ;;  %v9589_v57 = vcombine.low %v1066_v46, %v1070_v47  ;;  %v9598_v62 = vcombine.high %v1074_v7, %v1078_v52  ;;  %v1106_v46 = vld [vmem:[%s14354_s3 + $0xe88] sm:$0xff] }
 0x201   :  { %7310 = vmatprep.mubr.bf16.mxu1 %v11422_v0  ;;  %6952 = vmatprep.subr.bf16.mxu0 %v9556_v61  ;;  %v9596_v61 = vcombine.high %v1073_v54, %v1077_v55  ;;  %v1110_v47 = vld [vmem:[%s14354_s3 + $0xea8] sm:$0xff] }
 0x202   :  { %7280 = vmatprep.subr.bf16.mxu1 %v9558_v1  ;;  %v1085_v1 = vld [vmem:[%s14354_s3 + $0xde0] sm:$0xff] }
 0x203   :  { %6953 = vmatpush1.bf16.msra.mxu0 %v9555_v60  ;;  %v9595_v60 = vcombine.low %v1073_v54, %v1077_v55  ;;  %v1113_v54 = vld [vmem:[%s14354_s3 + $0xec0] sm:$0xff] }
 0x204   :  { %7281 = vmatpush1.bf16.msra.mxu1 %v9557_v9  ;;  %6954 = vmatprep.subr.bf16.mxu0 %v9564_v10  ;;  %v9597_v9 = vcombine.low %v1074_v7, %v1078_v52  ;;  %v9604_v10 = vcombine.high %v1081_v63, %v1085_v1  ;;  %v1117_v55 = vld [vmem:[%s14354_s3 + $0xee0] sm:$0xff]  ;;  %v1114_v7 = vld [vmem:[%s14354_s3 + $0xec8] sm:$0xff] }
 0x205   :  { %7282 = vmatprep.subr.bf16.mxu1 %v9566_v11  ;;  %v9606_v11 = vcombine.high %v1082_v3, %v1086_v5  ;;  %v1118_v52 = vld [vmem:[%s14354_s3 + $0xee8] sm:$0xff] }
 0x207   :  { %6955 = vmatpush1.bf16.msra.mxu0 %v9563_v18  ;;  %v9603_v18 = vcombine.low %v1081_v63, %v1085_v1  ;;  %v1121_v63 = vld [vmem:[%s14354_s3 + $0xf00] sm:$0xff] }
 0x208   :  { %7283 = vmatpush1.bf16.msra.mxu1 %v9565_v19  ;;  %6956 = vmatprep.subr.bf16.mxu0 %v9572_v20  ;;  %v9605_v19 = vcombine.low %v1082_v3, %v1086_v5  ;;  %v9612_v20 = vcombine.high %v1089_v13, %v1093_v14  ;;  %v1125_v1 = vld [vmem:[%s14354_s3 + $0xf20] sm:$0xff]  ;;  %v1122_v3 = vld [vmem:[%s14354_s3 + $0xf08] sm:$0xff] }
 0x209   :  { %7284 = vmatprep.subr.bf16.mxu1 %v9574_v27  ;;  %v9614_v27 = vcombine.high %v1090_v15, %v1094_v16  ;;  %v1126_v5 = vld [vmem:[%s14354_s3 + $0xf28] sm:$0xff] }
 0x20b   :  { %6957 = vmatpush1.bf16.msra.mxu0 %v9571_v29  ;;  %v9611_v29 = vcombine.low %v1089_v13, %v1093_v14  ;;  %v1129_v13 = vld [vmem:[%s14354_s3 + $0xf40] sm:$0xff] }
 0x20c   :  { %7285 = vmatpush1.bf16.msra.mxu1 %v9573_v35  ;;  %6958 = vmatprep.subr.bf16.mxu0 %v9580_v36  ;;  %v9613_v35 = vcombine.low %v1090_v15, %v1094_v16  ;;  %v9620_v36 = vcombine.high %v1097_v28, %v1101_v30  ;;  %v1133_v14 = vld [vmem:[%s14354_s3 + $0xf60] sm:$0xff]  ;;  %v1130_v15 = vld [vmem:[%s14354_s3 + $0xf48] sm:$0xff] }
 0x20d   :  { %7286 = vmatprep.subr.bf16.mxu1 %v9582_v38  ;;  %v9622_v38 = vcombine.high %v1098_v31, %v1102_v34  ;;  %v1134_v16 = vld [vmem:[%s14354_s3 + $0xf68] sm:$0xff] }
 0x20f   :  { %6959 = vmatpush1.bf16.msra.mxu0 %v9579_v48  ;;  %v9619_v48 = vcombine.low %v1097_v28, %v1101_v30  ;;  %v1137_v28 = vld [vmem:[%s14354_s3 + $0xf80] sm:$0xff] }
 0x210   :  { %7287 = vmatpush1.bf16.msra.mxu1 %v9581_v49  ;;  %6960 = vmatprep.subr.bf16.mxu0 %v9588_v50  ;;  %v9621_v49 = vcombine.low %v1098_v31, %v1102_v34  ;;  %v9628_v50 = vcombine.high %v1105_v41, %v1109_v42  ;;  %v1141_v30 = vld [vmem:[%s14354_s3 + $0xfa0] sm:$0xff]  ;;  %v1138_v31 = vld [vmem:[%s14354_s3 + $0xf88] sm:$0xff] }
 0x211   :  { %7288 = vmatprep.subr.bf16.mxu1 %v9590_v22  ;;  %v9630_v22 = vcombine.high %v1106_v46, %v1110_v47  ;;  %v1142_v34 = vld [vmem:[%s14354_s3 + $0xfa8] sm:$0xff] }
 0x213   :  { %6961 = vmatpush1.bf16.msra.mxu0 %v9587_v58  ;;  %v9627_v58 = vcombine.low %v1105_v41, %v1109_v42  ;;  %v1145_v41 = vld [vmem:[%s14354_s3 + $0xfc0] sm:$0xff] }
 0x214   :  { %7289 = vmatpush1.bf16.msra.mxu1 %v9589_v57  ;;  %6962 = vmatprep.subr.bf16.mxu0 %v9596_v61  ;;  %v9629_v57 = vcombine.low %v1106_v46, %v1110_v47  ;;  %v9636_v61 = vcombine.high %v1113_v54, %v1117_v55  ;;  %v1149_v42 = vld [vmem:[%s14354_s3 + $0xfe0] sm:$0xff]  ;;  %v1146_v46 = vld [vmem:[%s14354_s3 + $0xfc8] sm:$0xff] }
 0x215   :  { %7290 = vmatprep.subr.bf16.mxu1 %v9598_v62  ;;  %v9638_v62 = vcombine.high %v1114_v7, %v1118_v52  ;;  %v1150_v47 = vld [vmem:[%s14354_s3 + $0xfe8] sm:$0xff] }
 0x217   :  { %6963 = vmatpush1.bf16.msra.mxu0 %v9595_v60  ;;  %v9635_v60 = vcombine.low %v1113_v54, %v1117_v55  ;;  %v9668_v54 = vcombine.high %v1145_v41, %v1149_v42  ;;  %v9670_v55 = vcombine.high %v1146_v46, %v1150_v47 }
 0x218   :  { %7291 = vmatpush1.bf16.msra.mxu1 %v9597_v9  ;;  %6964 = vmatprep.subr.bf16.mxu0 %v9604_v10  ;;  %v9637_v9 = vcombine.low %v1114_v7, %v1118_v52  ;;  %v9644_v10 = vcombine.high %v1121_v63, %v1125_v1  ;;  %v1153_v7 = vld [vmem:[%s14354_s3 + $0x1000] sm:$0xff] }
 0x219   :  { %7292 = vmatprep.subr.bf16.mxu1 %v9606_v11  ;;  %v9646_v11 = vcombine.high %v1122_v3, %v1126_v5  ;;  %v1157_v52 = vld [vmem:[%s14354_s3 + $0x1020] sm:$0xff] }
 0x21b   :  { %6965 = vmatpush1.bf16.msra.mxu0 %v9603_v18  ;;  %v9643_v18 = vcombine.low %v1121_v63, %v1125_v1  ;;  %v9667_v63 = vcombine.low %v1145_v41, %v1149_v42  ;;  %v1178_v41 = vld [vmem:[%s14354_s3 + $0x10c8] sm:$0xff] }
 0x21c   :  { %7293 = vmatpush1.bf16.msra.mxu1 %v9605_v19  ;;  %6966 = vmatprep.subr.bf16.mxu0 %v9612_v20  ;;  %v9645_v19 = vcombine.low %v1122_v3, %v1126_v5  ;;  %v9652_v20 = vcombine.high %v1129_v13, %v1133_v14  ;;  %v9669_v3 = vcombine.low %v1146_v46, %v1150_v47  ;;  %v1182_v42 = vld [vmem:[%s14354_s3 + $0x10e8] sm:$0xff] }
 0x21d   :  { %7294 = vmatprep.subr.bf16.mxu1 %v9614_v27  ;;  %v9654_v27 = vcombine.high %v1130_v15, %v1134_v16  ;;  %v9676_v5 = vcombine.high %v1153_v7, %v1157_v52 }
 0x21f   :  { %6967 = vmatpush1.bf16.msra.mxu0 %v9611_v29  ;;  %v9651_v29 = vcombine.low %v1129_v13, %v1133_v14  ;;  %v9675_v13 = vcombine.low %v1153_v7, %v1157_v52  ;;  %v1166_v14 = vld [vmem:[%s14354_s3 + $0x1068] sm:$0xff]  ;;  %v9701_v52 = vcombine.low %v1178_v41, %v1182_v42 }
 0x220   :  { %7295 = vmatpush1.bf16.msra.mxu1 %v9613_v35  ;;  %6968 = vmatprep.subr.bf16.mxu0 %v9620_v36  ;;  %v9653_v35 = vcombine.low %v1130_v15, %v1134_v16  ;;  %v9660_v36 = vcombine.high %v1137_v28, %v1141_v30 }
 0x221   :  { %7296 = vmatprep.subr.bf16.mxu1 %v9622_v38  ;;  %v9662_v38 = vcombine.high %v1138_v31, %v1142_v34 }
 0x223   :  { %6969 = vmatpush1.bf16.msra.mxu0 %v9619_v48  ;;  %v9659_v48 = vcombine.low %v1137_v28, %v1141_v30  ;;  %v1170_v28 = vld [vmem:[%s14354_s3 + $0x1088] sm:$0xff] }
 0x224   :  { %7297 = vmatpush1.bf16.msra.mxu1 %v9621_v49  ;;  %6970 = vmatprep.subr.bf16.mxu0 %v9628_v50  ;;  %v10554_v49 = vld [vmem:[%s14353_s2] sm:$0xff]  ;;  %v1174_v30 = vld [vmem:[%s14354_s3 + $0x10a8] sm:$0xff] }
 0x225   :  { %7298 = vmatprep.subr.bf16.mxu1 %v9630_v22  ;;  %v99_v50 = vrot.slane %v10554_v49, %v11034_v39  ;;  %v9661_v22 = vcombine.low %v1138_v31, %v1142_v34  ;;  %v9693_v47 = vcombine.low %v1170_v28, %v1174_v30  ;;  %v9702_v49 = vcombine.high %v1178_v41, %v1182_v42  ;;  %v1221_v41 = vld [vmem:[%s14354_s3 + $0x1220] sm:$0xff]  ;;  %v1218_v42 = vld [vmem:[%s14354_s3 + $0x1208] sm:$0xff] }
 0x227   :  { %6971 = vmatpush1.bf16.msra.mxu0 %v9627_v58  ;;  %v11603_v58 = vld [vmem:[%s14353_s2 + $0x8] sm:$0xff]  ;;  %v455_v1 = vadd.f32 %v10966_v53, %v99_v50  ;;  %v1185_v50 = vld [vmem:[%s14354_s3 + $0x1100] sm:$0xff]  ;;  %s9147_s2 = sshll.u32 %s10584_s29, 4  ;;  %s9148_s2 = int_to_ptr.vmem [resolvable:$true] %s9147_s2 }
 0x228   :  { %7299 = vmatpush1.bf16.msra.mxu1 %v9629_v57  ;;  %6972 = vmatprep.subr.bf16.mxu0 %v9636_v61  ;;  %v111_v57 = vrot.slane %v11603_v58, %v10917_v23  ;;  %v1154_v61 = vld [vmem:[%s14354_s3 + $0x1008] sm:$0xff]  ;;  %s10557_s30 = scalar_lea.vmem %s9148_s2, 32  ;;  %p10562_p1 = scmp.lt.s32.totalorder %s9148_s2, %s9148_s2 }
 0x229   :  { %7300 = vmatprep.subr.bf16.mxu1 %v9638_v62  ;;  %v1158_v62 = vld [vmem:[%s14354_s3 + $0x1028] sm:$0xff]  ;;  %v11627_v15 = vpack.c.bf16 %v455_v1, %v455_v1  ;;  %p10558_p0 = scmp.ne.s32.totalorder %s9148_s2, %s10557_s30  ;;  %p10563_p2 = scmp.lt.s32.totalorder %s10557_s30, %s10557_s30 }
 0x22a   :  { %v1162_v53 = vld [vmem:[%s14354_s3 + $0x1048] sm:$0xff] }
 0x22b   :  { %6973 = vmatpush1.bf16.msra.mxu0 %v9635_v60  ;;  %v9678_v60 = vcombine.high %v1154_v61, %v1158_v62  ;;  %v9685_v34 = vcombine.low %v1162_v53, %v1166_v14  ;;  %v1194_v1 = vld [vmem:[%s14354_s3 + $0x1148] sm:$0xff]  ;;  %p10564_p3 = por %p10563_p2, %p10562_p1 }
 0x22c   :  { %7301 = vmatpush1.bf16.msra.mxu1 %v9637_v9  ;;  %6974 = vmatprep.subr.bf16.mxu0 %v9644_v10  ;;  %v498_v9 = vadd.f32 %v11014_v26, %v111_v57  ;;  %v1161_v10 = vld [vmem:[%s14354_s3 + $0x1040] sm:$0xff]  ;;  %v9677_v26 = vcombine.low %v1154_v61, %v1158_v62 }
 0x22d   :  { %7302 = vmatprep.subr.bf16.mxu1 %v9646_v11  ;;  %v1165_v11 = vld [vmem:[%s14354_s3 + $0x1060] sm:$0xff]  ;;  %p10565_p4 = pnand %p10564_p3, %p10558_p0 }
 0x22e   :  { %v9684_v16 = vcombine.high %v1161_v10, %v1165_v11  ;;  %v9683_v31 = vcombine.low %v1161_v10, %v1165_v11  ;;  %v1193_v62 = vld [vmem:[%s14354_s3 + $0x1140] sm:$0xff] }
 0x22f   :  { %6975 = vmatpush1.bf16.msra.mxu0 %v9643_v18  ;;  %v1169_v18 = vld [vmem:[%s14354_s3 + $0x1080] sm:$0xff] }
 0x230   :  { %7303 = vmatpush1.bf16.msra.mxu1 %v9645_v19  ;;  %6976 = vmatprep.subr.bf16.mxu0 %v9652_v20  ;;  %v1173_v19 = vld [vmem:[%s14354_s3 + $0x10a0] sm:$0xff]  ;;  %v11635_v20 = vpack.c.bf16 %v498_v9, %v498_v9 }
 0x231   :  { %7304 = vmatprep.subr.bf16.mxu1 %v9654_v27  ;;  %v9686_v27 = vcombine.high %v1162_v53, %v1166_v14  ;;  %v9691_v46 = vcombine.low %v1169_v18, %v1173_v19  ;;  %v1201_v11 = vld [vmem:[%s14354_s3 + $0x1180] sm:$0xff]  ;;  %v1202_v53 = vld [vmem:[%s14354_s3 + $0x1188] sm:$0xff] }
 0x232   :  { %v1206_v14 = vld [vmem:[%s14354_s3 + $0x11a8] sm:$0xff] }
 0x233   :  { %6977 = vmatpush1.bf16.msra.mxu0 %v9651_v29  ;;  %v9692_v29 = vcombine.high %v1169_v18, %v1173_v19  ;;  %v9726_v19 = vcombine.high %v1202_v53, %v1206_v14 }
 0x234   :  { %7305 = vmatpush1.bf16.msra.mxu1 %v9653_v35  ;;  %6978 = vmatprep.subr.bf16.mxu0 %v9660_v36  ;;  %v9694_v35 = vcombine.high %v1170_v28, %v1174_v30  ;;  %v1177_v36 = vld [vmem:[%s14354_s3 + $0x10c0] sm:$0xff]  ;;  %v1210_v30 = vld [vmem:[%s14354_s3 + $0x11c8] sm:$0xff] }
 0x235   :  { %7306 = vmatprep.subr.bf16.mxu1 %v9662_v38  ;;  %v1181_v38 = vld [vmem:[%s14354_s3 + $0x10e0] sm:$0xff] }
 0x236   :  { %v9699_v7 = vcombine.low %v1177_v36, %v1181_v38  ;;  %v1213_v28 = vld [vmem:[%s14354_s3 + $0x11e0] sm:$0xff] }
 0x237   :  { %6979 = vmatpush1.bf16.msra.mxu0 %v9659_v48  ;;  %v9700_v48 = vcombine.high %v1177_v36, %v1181_v38  ;;  %v1217_v38 = vld [vmem:[%s14354_s3 + $0x1200] sm:$0xff] }
 0x238   :  { %7307 = vmatpush1.bf16.msra.mxu1 %v9661_v22  ;;  %6980 = vmatprep.subr.bf16.mxu0 %v9668_v54  ;;  %v1189_v22 = vld [vmem:[%s14354_s3 + $0x1120] sm:$0xff]  ;;  %v1186_v54 = vld [vmem:[%s14354_s3 + $0x1108] sm:$0xff] }
 0x239   :  { %7308 = vmatprep.subr.bf16.mxu1 %v9670_v55  ;;  %v1190_v55 = vld [vmem:[%s14354_s3 + $0x1128] sm:$0xff]  ;;  %v9708_v57 = vcombine.high %v1185_v50, %v1189_v22 }
 0x23a   :  { %v9710_v61 = vcombine.high %v1186_v54, %v1190_v55 }
 0x23b   :  { %6981 = vmatpush1.bf16.msra.mxu0 %v9667_v63  ;;  %v1197_v63 = vld [vmem:[%s14354_s3 + $0x1160] sm:$0xff] }
 0x23c   :  { %7309 = vmatpush1.bf16.msra.mxu1 %v9669_v3  ;;  %6991 = vmatprep.subr.bf16.mxu0 %v9676_v5  ;;  %v1198_v3 = vld [vmem:[%s14354_s3 + $0x1168] sm:$0xff]  ;;  %v9707_v5 = vcombine.low %v1185_v50, %v1189_v22  ;;  %v9716_v9 = vcombine.high %v1193_v62, %v1197_v63  ;;  %v1225_v22 = vld [vmem:[%s14354_s3 + $0x1240] sm:$0xff] }
 0x23d   :  { %7319 = vmatprep.subr.bf16.mxu1 %v9678_v60  ;;  %v9709_v60 = vcombine.low %v1186_v54, %v1190_v55  ;;  %v9718_v10 = vcombine.high %v1194_v1, %v1198_v3  ;;  %v1229_v54 = vld [vmem:[%s14354_s3 + $0x1260] sm:$0xff]  ;;  %v1226_v55 = vld [vmem:[%s14354_s3 + $0x1248] sm:$0xff] }
 0x23e   :  { %6983 = vmatmul.mubr.bf16.vlgmr.msra.gmra.mrb[16].mxu0 %v11627_v15 }
 0x23f   :  { %7311 = vmatmul.mubr.bf16.vlgmr.msra.gmra.mrb[16].mxu1 %v11627_v15  ;;  %6992 = vmatpush1.bf16.msra.mxu0 %v9675_v13  ;;  %v1205_v13 = vld [vmem:[%s14354_s3 + $0x11a0] sm:$0xff] }
 0x240   :  { %7023 = vmatprep.mubr.bf16.mxu0 %v11635_v20  ;;  %7320 = vmatpush1.bf16.msra.mxu1 %v9677_v26  ;;  %v9715_v26 = vcombine.low %v1193_v62, %v1197_v63  ;;  %v9724_v18 = vcombine.high %v1201_v11, %v1205_v13  ;;  %v1233_v63 = vld [vmem:[%s14354_s3 + $0x1280] sm:$0xff] }
 0x241   :  { %7351 = vmatprep.mubr.bf16.mxu1 %v11635_v20  ;;  %6993 = vmatprep.subr.bf16.mxu0 %v9684_v16  ;;  %v9717_v16 = vcombine.low %v1194_v1, %v1198_v3  ;;  %v1237_v1 = vld [vmem:[%s14354_s3 + $0x12a0] sm:$0xff]  ;;  %v1234_v3 = vld [vmem:[%s14354_s3 + $0x1288] sm:$0xff] }
 0x242   :  { %7321 = vmatprep.subr.bf16.mxu1 %v9686_v27  ;;  %v1209_v27 = vld [vmem:[%s14354_s3 + $0x11c0] sm:$0xff] }
 0x243   :  { %6994 = vmatpush1.bf16.msra.mxu0 %v9683_v31  ;;  %v1214_v31 = vld [vmem:[%s14354_s3 + $0x11e8] sm:$0xff] }
 0x244   :  { %7322 = vmatpush1.bf16.msra.mxu1 %v9685_v34  ;;  %6995 = vmatprep.subr.bf16.mxu0 %v9692_v29  ;;  %v9723_v34 = vcombine.low %v1201_v11, %v1205_v13  ;;  %v9725_v29 = vcombine.low %v1202_v53, %v1206_v14  ;;  %v9734_v36 = vcombine.high %v1210_v30, %v1214_v31  ;;  %v1241_v13 = vld [vmem:[%s14354_s3 + $0x12c0] sm:$0xff]  ;;  %v1242_v14 = vld [vmem:[%s14354_s3 + $0x12c8] sm:$0xff] }
 0x245   :  { %7323 = vmatprep.subr.bf16.mxu1 %v9694_v35  ;;  %v9732_v35 = vcombine.high %v1209_v27, %v1213_v28  ;;  %v1245_v53 = vld [vmem:[%s14354_s3 + $0x12e0] sm:$0xff] }
 0x247   :  { %6996 = vmatpush1.bf16.msra.mxu0 %v9691_v46  ;;  %v1222_v46 = vld [vmem:[%s14354_s3 + $0x1228] sm:$0xff] }
 0x248   :  { %7324 = vmatpush1.bf16.msra.mxu1 %v9693_v47  ;;  %6997 = vmatprep.subr.bf16.mxu0 %v9700_v48  ;;  %v9731_v47 = vcombine.low %v1209_v27, %v1213_v28  ;;  %v9733_v48 = vcombine.low %v1210_v30, %v1214_v31  ;;  %v9742_v50 = vcombine.high %v1218_v42, %v1222_v46  ;;  %v1249_v28 = vld [vmem:[%s14354_s3 + $0x1300] sm:$0xff]  ;;  %v1250_v31 = vld [vmem:[%s14354_s3 + $0x1308] sm:$0xff] }
 0x249   :  { %7325 = vmatprep.subr.bf16.mxu1 %v9702_v49  ;;  %v9740_v49 = vcombine.high %v1217_v38, %v1221_v41  ;;  %v1253_v30 = vld [vmem:[%s14354_s3 + $0x1320] sm:$0xff] }
 0x24b   :  { %6998 = vmatpush1.bf16.msra.mxu0 %v9699_v7  ;;  %v1230_v7 = vld [vmem:[%s14354_s3 + $0x1268] sm:$0xff] }
 0x24c   :  { %7326 = vmatpush1.bf16.msra.mxu1 %v9701_v52  ;;  %6999 = vmatprep.subr.bf16.mxu0 %v9708_v57  ;;  %v9739_v52 = vcombine.low %v1217_v38, %v1221_v41  ;;  %v9741_v57 = vcombine.low %v1218_v42, %v1222_v46  ;;  %v9750_v62 = vcombine.high %v1226_v55, %v1230_v7  ;;  %v1257_v41 = vld [vmem:[%s14354_s3 + $0x1340] sm:$0xff]  ;;  %v1258_v46 = vld [vmem:[%s14354_s3 + $0x1348] sm:$0xff] }
 0x24d   :  { %7327 = vmatprep.subr.bf16.mxu1 %v9710_v61  ;;  %v9748_v61 = vcombine.high %v1225_v22, %v1229_v54  ;;  %v1261_v42 = vld [vmem:[%s14354_s3 + $0x1360] sm:$0xff] }
 0x24f   :  { %7000 = vmatpush1.bf16.msra.mxu0 %v9707_v5  ;;  %v1238_v5 = vld [vmem:[%s14354_s3 + $0x12a8] sm:$0xff] }
 0x250   :  { %7328 = vmatpush1.bf16.msra.mxu1 %v9709_v60  ;;  %7001 = vmatprep.subr.bf16.mxu0 %v9716_v9  ;;  %v9747_v60 = vcombine.low %v1225_v22, %v1229_v54  ;;  %v9749_v9 = vcombine.low %v1226_v55, %v1230_v7  ;;  %v9758_v11 = vcombine.high %v1234_v3, %v1238_v5  ;;  %v1265_v54 = vld [vmem:[%s14354_s3 + $0x1380] sm:$0xff]  ;;  %v1266_v7 = vld [vmem:[%s14354_s3 + $0x1388] sm:$0xff] }
 0x251   :  { %7329 = vmatprep.subr.bf16.mxu1 %v9718_v10  ;;  %v9756_v10 = vcombine.high %v1233_v63, %v1237_v1  ;;  %v1269_v55 = vld [vmem:[%s14354_s3 + $0x13a0] sm:$0xff] }
 0x253   :  { %7002 = vmatpush1.bf16.msra.mxu0 %v9715_v26  ;;  %v1246_v26 = vld [vmem:[%s14354_s3 + $0x12e8] sm:$0xff] }
 0x254   :  { %7330 = vmatpush1.bf16.msra.mxu1 %v9717_v16  ;;  %7003 = vmatprep.subr.bf16.mxu0 %v9724_v18  ;;  %v9755_v16 = vcombine.low %v1233_v63, %v1237_v1  ;;  %v9757_v18 = vcombine.low %v1234_v3, %v1238_v5  ;;  %v9766_v27 = vcombine.high %v1242_v14, %v1246_v26  ;;  %v1273_v1 = vld [vmem:[%s14354_s3 + $0x13c0] sm:$0xff]  ;;  %v1274_v5 = vld [vmem:[%s14354_s3 + $0x13c8] sm:$0xff] }
 0x255   :  { %7331 = vmatprep.subr.bf16.mxu1 %v9726_v19  ;;  %v9764_v19 = vcombine.high %v1241_v13, %v1245_v53  ;;  %v1277_v3 = vld [vmem:[%s14354_s3 + $0x13e0] sm:$0xff] }
 0x257   :  { %7004 = vmatpush1.bf16.msra.mxu0 %v9723_v34  ;;  %v1254_v34 = vld [vmem:[%s14354_s3 + $0x1328] sm:$0xff] }
 0x258   :  { %7332 = vmatpush1.bf16.msra.mxu1 %v9725_v29  ;;  %7005 = vmatprep.subr.bf16.mxu0 %v9732_v35  ;;  %v9763_v29 = vcombine.low %v1241_v13, %v1245_v53  ;;  %v9765_v35 = vcombine.low %v1242_v14, %v1246_v26  ;;  %v9774_v38 = vcombine.high %v1250_v31, %v1254_v34  ;;  %v1281_v14 = vld [vmem:[%s14354_s3 + $0x1400] sm:$0xff] }
 0x259   :  { %7333 = vmatprep.subr.bf16.mxu1 %v9734_v36  ;;  %v9772_v36 = vcombine.high %v1249_v28, %v1253_v30  ;;  %v9796_v13 = vcombine.high %v1273_v1, %v1277_v3  ;;  %v1285_v26 = vld [vmem:[%s14354_s3 + $0x1420] sm:$0xff] }
 0x25b   :  { %7006 = vmatpush1.bf16.msra.mxu0 %v9731_v47  ;;  %v1262_v47 = vld [vmem:[%s14354_s3 + $0x1368] sm:$0xff] }
 0x25c   :  { %7334 = vmatpush1.bf16.msra.mxu1 %v9733_v48  ;;  %7007 = vmatprep.subr.bf16.mxu0 %v9740_v49  ;;  %v9771_v48 = vcombine.low %v1249_v28, %v1253_v30  ;;  %v9773_v49 = vcombine.low %v1250_v31, %v1254_v34  ;;  %v9782_v22 = vcombine.high %v1258_v46, %v1262_v47  ;;  %v1289_v31 = vld [vmem:[%s14354_s3 + $0x1440] sm:$0xff] }
 0x25d   :  { %7335 = vmatprep.subr.bf16.mxu1 %v9742_v50  ;;  %v9780_v50 = vcombine.high %v1257_v41, %v1261_v42  ;;  %v9804_v28 = vcombine.high %v1281_v14, %v1285_v26  ;;  %v1293_v34 = vld [vmem:[%s14354_s3 + $0x1460] sm:$0xff] }
 0x25f   :  { %7008 = vmatpush1.bf16.msra.mxu0 %v9739_v52  ;;  %v1270_v52 = vld [vmem:[%s14354_s3 + $0x13a8] sm:$0xff] }
 0x260   :  { %7336 = vmatpush1.bf16.msra.mxu1 %v9741_v57  ;;  %7009 = vmatprep.subr.bf16.mxu0 %v9748_v61  ;;  %v9779_v57 = vcombine.low %v1257_v41, %v1261_v42  ;;  %v9781_v61 = vcombine.low %v1258_v46, %v1262_v47  ;;  %v9790_v63 = vcombine.high %v1266_v7, %v1270_v52  ;;  %v1297_v42 = vld [vmem:[%s14354_s3 + $0x1480] sm:$0xff] }
 0x261   :  { %7337 = vmatprep.subr.bf16.mxu1 %v9750_v62  ;;  %v9788_v62 = vcombine.high %v1265_v54, %v1269_v55  ;;  %v9812_v41 = vcombine.high %v1289_v31, %v1293_v34  ;;  %v1301_v46 = vld [vmem:[%s14354_s3 + $0x14a0] sm:$0xff]  ;;  %v11840_v47 = vpack.c.bf16 %v11022_v33, %v11022_v33 }
 0x263   :  { %7010 = vmatpush1.bf16.msra.mxu0 %v9747_v60  ;;  %v1278_v60 = vld [vmem:[%s14354_s3 + $0x13e8] sm:$0xff] }
 0x264   :  { %7338 = vmatpush1.bf16.msra.mxu1 %v9749_v9  ;;  %7011 = vmatprep.subr.bf16.mxu0 %v9756_v10  ;;  %v9787_v9 = vcombine.low %v1265_v54, %v1269_v55  ;;  %v107_v10 = vrot.slane %v11603_v58, %v10909_v21  ;;  %v9798_v53 = vcombine.high %v1274_v5, %v1278_v60  ;;  %v1286_v58 = vld [vmem:[%s14354_s3 + $0x1428] sm:$0xff] }
 0x265   :  { %7339 = vmatprep.subr.bf16.mxu1 %v9758_v11  ;;  %v9789_v11 = vcombine.low %v1266_v7, %v1270_v52  ;;  %v9820_v54 = vcombine.high %v1297_v42, %v1301_v46  ;;  %v1305_v7 = vld [vmem:[%s14354_s3 + $0x14c0] sm:$0xff] }
 0x266   :  { %v1309_v52 = vld [vmem:[%s14354_s3 + $0x14e0] sm:$0xff] }
 0x267   :  { %7012 = vmatpush1.bf16.msra.mxu0 %v9755_v16  ;;  %v1282_v16 = vld [vmem:[%s14354_s3 + $0x1408] sm:$0xff] }
 0x268   :  { %7340 = vmatpush1.bf16.msra.mxu1 %v9757_v18  ;;  %7013 = vmatprep.subr.bf16.mxu0 %v9764_v19  ;;  %v9795_v18 = vcombine.low %v1273_v1, %v1277_v3  ;;  %v496_v19 = vadd.f32 %v11010_v17, %v107_v10  ;;  %v9806_v30 = vcombine.high %v1282_v16, %v1286_v58  ;;  %v1290_v17 = vld [vmem:[%s14354_s3 + $0x1448] sm:$0xff] }
 0x269   :  { %7341 = vmatprep.subr.bf16.mxu1 %v9766_v27  ;;  %v9797_v27 = vcombine.low %v1274_v5, %v1278_v60  ;;  %v9828_v1 = vcombine.high %v1305_v7, %v1309_v52  ;;  %v1313_v5 = vld [vmem:[%s14354_s3 + $0x1500] sm:$0xff]  ;;  %v1318_v10 = vld [vmem:[%s14354_s3 + $0x1528] sm:$0xff] }
 0x26a   :  { %v1317_v60 = vld [vmem:[%s14354_s3 + $0x1520] sm:$0xff] }
 0x26b   :  { %7014 = vmatpush1.bf16.msra.mxu0 %v9763_v29  ;;  %v9803_v29 = vcombine.low %v1281_v14, %v1285_v26  ;;  %v1321_v26 = vld [vmem:[%s14354_s3 + $0x1540] sm:$0xff] }
 0x26c   :  { %7342 = vmatpush1.bf16.msra.mxu1 %v9765_v35  ;;  %7015 = vmatprep.subr.bf16.mxu0 %v9772_v36  ;;  %v1294_v35 = vld [vmem:[%s14354_s3 + $0x1468] sm:$0xff]  ;;  %v11830_v36 = vpack.c.bf16 %v496_v19, %v496_v19  ;;  %v9835_v19 = vcombine.low %v1313_v5, %v1317_v60 }
 0x26d   :  { %7343 = vmatprep.subr.bf16.mxu1 %v9774_v38  ;;  %v9805_v38 = vcombine.low %v1282_v16, %v1286_v58  ;;  %v9813_v33 = vcombine.low %v1290_v17, %v1294_v35  ;;  %v1325_v16 = vld [vmem:[%s14354_s3 + $0x1560] sm:$0xff]  ;;  %v1322_v58 = vld [vmem:[%s14354_s3 + $0x1548] sm:$0xff] }
 0x26f   :  { %7016 = vmatpush1.bf16.msra.mxu0 %v9771_v48  ;;  %v9814_v48 = vcombine.high %v1290_v17, %v1294_v35  ;;  %v1334_v17 = vld [vmem:[%s14354_s3 + $0x15a8] sm:$0xff]  ;;  %v9843_v35 = vcombine.low %v1321_v26, %v1325_v16 }
 0x270   :  { %7344 = vmatpush1.bf16.msra.mxu1 %v9773_v49  ;;  %7017 = vmatprep.subr.bf16.mxu0 %v9780_v50  ;;  %v1298_v49 = vld [vmem:[%s14354_s3 + $0x1488] sm:$0xff] }
 0x271   :  { %7345 = vmatprep.subr.bf16.mxu1 %v9782_v22  ;;  %v1302_v50 = vld [vmem:[%s14354_s3 + $0x14a8] sm:$0xff]  ;;  %v9811_v22 = vcombine.low %v1289_v31, %v1293_v34  ;;  %v1329_v31 = vld [vmem:[%s14354_s3 + $0x1580] sm:$0xff] }
 0x272   :  { %v9822_v55 = vcombine.high %v1298_v49, %v1302_v50  ;;  %v1333_v34 = vld [vmem:[%s14354_s3 + $0x15a0] sm:$0xff] }
 0x273   :  { %7018 = vmatpush1.bf16.msra.mxu0 %v9779_v57  ;;  %v1306_v57 = vld [vmem:[%s14354_s3 + $0x14c8] sm:$0xff] }
 0x274   :  { %7346 = vmatpush1.bf16.msra.mxu1 %v9781_v61  ;;  %7019 = vmatprep.subr.bf16.mxu0 %v9788_v62  ;;  %v1310_v61 = vld [vmem:[%s14354_s3 + $0x14e8] sm:$0xff]  ;;  %v9819_v62 = vcombine.low %v1297_v42, %v1301_v46  ;;  %v1337_v46 = vld [vmem:[%s14354_s3 + $0x15c0] sm:$0xff] }
 0x275   :  { %7347 = vmatprep.subr.bf16.mxu1 %v9790_v63  ;;  %v9821_v63 = vcombine.low %v1298_v49, %v1302_v50  ;;  %v9830_v3 = vcombine.high %v1306_v57, %v1310_v61  ;;  %v1338_v49 = vld [vmem:[%s14354_s3 + $0x15c8] sm:$0xff] }
 0x276   :  { %v1342_v50 = vld [vmem:[%s14354_s3 + $0x15e8] sm:$0xff] }
 0x277   :  { %7020 = vmatpush1.bf16.msra.mxu0 %v9787_v9  ;;  %v1314_v9 = vld [vmem:[%s14354_s3 + $0x1508] sm:$0xff] }
 0x278   :  { %7348 = vmatpush1.bf16.msra.mxu1 %v9789_v11  ;;  %7021 = vmatprep.subr.bf16.mxu0 %v9796_v13  ;;  %v9827_v11 = vcombine.low %v1305_v7, %v1309_v52  ;;  %v9829_v13 = vcombine.low %v1306_v57, %v1310_v61  ;;  %v9838_v14 = vcombine.high %v1314_v9, %v1318_v10  ;;  %v1345_v7 = vld [vmem:[%s14354_s3 + $0x1600] sm:$0xff]  ;;  %v1346_v57 = vld [vmem:[%s14354_s3 + $0x1608] sm:$0xff] }
 0x279   :  { %7349 = vmatprep.subr.bf16.mxu1 %v9798_v53  ;;  %v9836_v53 = vcombine.high %v1313_v5, %v1317_v60  ;;  %v1349_v52 = vld [vmem:[%s14354_s3 + $0x1620] sm:$0xff]  ;;  %v1350_v61 = vld [vmem:[%s14354_s3 + $0x1628] sm:$0xff] }
 0x27a   :  { %v1353_v5 = vld [vmem:[%s14354_s3 + $0x1640] sm:$0xff] }
 0x27b   :  { %7022 = vmatpush1.bf16.msra.mxu0 %v9795_v18  ;;  %v1326_v18 = vld [vmem:[%s14354_s3 + $0x1568] sm:$0xff]  ;;  %v1357_v60 = vld [vmem:[%s14354_s3 + $0x1660] sm:$0xff] }
 0x27c   :  { %7350 = vmatpush1.bf16.msra.mxu1 %v9797_v27  ;;  %7032 = vmatprep.subr.bf16.mxu0 %v9804_v28  ;;  %v9837_v27 = vcombine.low %v1314_v9, %v1318_v10  ;;  %v9844_v28 = vcombine.high %v1321_v26, %v1325_v16  ;;  %v1354_v9 = vld [vmem:[%s14354_s3 + $0x1648] sm:$0xff]  ;;  %v1361_v26 = vld [vmem:[%s14354_s3 + $0x1680] sm:$0xff] }
 0x27d   :  { %7360 = vmatprep.subr.bf16.mxu1 %v9806_v30  ;;  %v9846_v30 = vcombine.high %v1322_v58, %v1326_v18  ;;  %v1358_v10 = vld [vmem:[%s14354_s3 + $0x1668] sm:$0xff]  ;;  %v1365_v16 = vld [vmem:[%s14354_s3 + $0x16a0] sm:$0xff] }
 0x27e   :  { %7024 = vmatmul.mubr.bf16.vlgmr.msra.gmra.mrb[16].mxu0 %v11830_v36 }
 0x27f   :  { %7352 = vmatmul.mubr.bf16.vlgmr.msra.gmra.mrb[16].mxu1 %v11830_v36  ;;  %7033 = vmatpush1.bf16.msra.mxu0 %v9803_v29  ;;  %v1330_v29 = vld [vmem:[%s14354_s3 + $0x1588] sm:$0xff] }
 0x280   :  { %7064 = vmatprep.mubr.bf16.mxu0 %v11840_v47  ;;  %7361 = vmatpush1.bf16.msra.mxu1 %v9805_v38  ;;  %v9845_v38 = vcombine.low %v1322_v58, %v1326_v18  ;;  %v9854_v42 = vcombine.high %v1330_v29, %v1334_v17  ;;  %v1362_v58 = vld [vmem:[%s14354_s3 + $0x1688] sm:$0xff] }
 0x281   :  { %7392 = vmatprep.mubr.bf16.mxu1 %v11840_v47  ;;  %7034 = vmatprep.subr.bf16.mxu0 %v9812_v41  ;;  %v9852_v41 = vcombine.high %v1329_v31, %v1333_v34  ;;  %v1366_v18 = vld [vmem:[%s14354_s3 + $0x16a8] sm:$0xff] }
 0x282   :  { %7362 = vmatprep.subr.bf16.mxu1 %v9814_v48  ;;  %v1341_v48 = vld [vmem:[%s14354_s3 + $0x15e0] sm:$0xff] }
 0x283   :  { %7035 = vmatpush1.bf16.msra.mxu0 %v9811_v22  ;;  %v9851_v22 = vcombine.low %v1329_v31, %v1333_v34  ;;  %v1369_v31 = vld [vmem:[%s14354_s3 + $0x16c0] sm:$0xff] }
 0x284   :  { %7363 = vmatpush1.bf16.msra.mxu1 %v9813_v33  ;;  %7036 = vmatprep.subr.bf16.mxu0 %v9820_v54  ;;  %v9853_v33 = vcombine.low %v1330_v29, %v1334_v17  ;;  %v9860_v54 = vcombine.high %v1337_v46, %v1341_v48  ;;  %v1373_v34 = vld [vmem:[%s14354_s3 + $0x16e0] sm:$0xff]  ;;  %v1370_v29 = vld [vmem:[%s14354_s3 + $0x16c8] sm:$0xff] }
 0x285   :  { %7364 = vmatprep.subr.bf16.mxu1 %v9822_v55  ;;  %v9862_v55 = vcombine.high %v1338_v49, %v1342_v50  ;;  %v1374_v17 = vld [vmem:[%s14354_s3 + $0x16e8] sm:$0xff] }
 0x287   :  { %7037 = vmatpush1.bf16.msra.mxu0 %v9819_v62  ;;  %v9859_v62 = vcombine.low %v1337_v46, %v1341_v48  ;;  %v1377_v46 = vld [vmem:[%s14354_s3 + $0x1700] sm:$0xff] }
 0x288   :  { %7365 = vmatpush1.bf16.msra.mxu1 %v9821_v63  ;;  %7038 = vmatprep.subr.bf16.mxu0 %v9828_v1  ;;  %v9861_v63 = vcombine.low %v1338_v49, %v1342_v50  ;;  %v9868_v1 = vcombine.high %v1345_v7, %v1349_v52  ;;  %v1381_v48 = vld [vmem:[%s14354_s3 + $0x1720] sm:$0xff]  ;;  %v1378_v49 = vld [vmem:[%s14354_s3 + $0x1708] sm:$0xff] }
 0x289   :  { %7366 = vmatprep.subr.bf16.mxu1 %v9830_v3  ;;  %v9870_v3 = vcombine.high %v1346_v57, %v1350_v61  ;;  %v1382_v50 = vld [vmem:[%s14354_s3 + $0x1728] sm:$0xff] }
 0x28b   :  { %7039 = vmatpush1.bf16.msra.mxu0 %v9827_v11  ;;  %v9867_v11 = vcombine.low %v1345_v7, %v1349_v52  ;;  %v1385_v7 = vld [vmem:[%s14354_s3 + $0x1740] sm:$0xff] }
 0x28c   :  { %7367 = vmatpush1.bf16.msra.mxu1 %v9829_v13  ;;  %7040 = vmatprep.subr.bf16.mxu0 %v9836_v53  ;;  %v9869_v13 = vcombine.low %v1346_v57, %v1350_v61  ;;  %v9876_v53 = vcombine.high %v1353_v5, %v1357_v60  ;;  %v1389_v52 = vld [vmem:[%s14354_s3 + $0x1760] sm:$0xff]  ;;  %v1386_v57 = vld [vmem:[%s14354_s3 + $0x1748] sm:$0xff] }
 0x28d   :  { %7368 = vmatprep.subr.bf16.mxu1 %v9838_v14  ;;  %v9878_v14 = vcombine.high %v1354_v9, %v1358_v10  ;;  %v1390_v61 = vld [vmem:[%s14354_s3 + $0x1768] sm:$0xff] }
 0x28f   :  { %7041 = vmatpush1.bf16.msra.mxu0 %v9835_v19  ;;  %v9875_v19 = vcombine.low %v1353_v5, %v1357_v60  ;;  %v1393_v5 = vld [vmem:[%s14354_s3 + $0x1780] sm:$0xff] }
 0x290   :  { %7369 = vmatpush1.bf16.msra.mxu1 %v9837_v27  ;;  %7042 = vmatprep.subr.bf16.mxu0 %v9844_v28  ;;  %v9877_v27 = vcombine.low %v1354_v9, %v1358_v10  ;;  %v9884_v28 = vcombine.high %v1361_v26, %v1365_v16  ;;  %v1397_v60 = vld [vmem:[%s14354_s3 + $0x17a0] sm:$0xff]  ;;  %v1394_v9 = vld [vmem:[%s14354_s3 + $0x1788] sm:$0xff] }
 0x291   :  { %7370 = vmatprep.subr.bf16.mxu1 %v9846_v30  ;;  %v9886_v30 = vcombine.high %v1362_v58, %v1366_v18  ;;  %v1398_v10 = vld [vmem:[%s14354_s3 + $0x17a8] sm:$0xff] }
 0x293   :  { %7043 = vmatpush1.bf16.msra.mxu0 %v9843_v35  ;;  %v9883_v35 = vcombine.low %v1361_v26, %v1365_v16  ;;  %v1401_v26 = vld [vmem:[%s14354_s3 + $0x17c0] sm:$0xff] }
 0x294   :  { %7371 = vmatpush1.bf16.msra.mxu1 %v9845_v38  ;;  %7044 = vmatprep.subr.bf16.mxu0 %v9852_v41  ;;  %v9885_v38 = vcombine.low %v1362_v58, %v1366_v18  ;;  %v9892_v41 = vcombine.high %v1369_v31, %v1373_v34  ;;  %v1405_v16 = vld [vmem:[%s14354_s3 + $0x17e0] sm:$0xff]  ;;  %v1402_v58 = vld [vmem:[%s14354_s3 + $0x17c8] sm:$0xff] }
 0x295   :  { %7372 = vmatprep.subr.bf16.mxu1 %v9854_v42  ;;  %v9894_v42 = vcombine.high %v1370_v29, %v1374_v17  ;;  %v1406_v18 = vld [vmem:[%s14354_s3 + $0x17e8] sm:$0xff] }
 0x297   :  { %7045 = vmatpush1.bf16.msra.mxu0 %v9851_v22  ;;  %v9891_v22 = vcombine.low %v1369_v31, %v1373_v34  ;;  %v1409_v31 = vld [vmem:[%s14354_s3 + $0x1800] sm:$0xff] }
 0x298   :  { %7373 = vmatpush1.bf16.msra.mxu1 %v9853_v33  ;;  %7046 = vmatprep.subr.bf16.mxu0 %v9860_v54  ;;  %v9893_v33 = vcombine.low %v1370_v29, %v1374_v17  ;;  %v9900_v54 = vcombine.high %v1377_v46, %v1381_v48  ;;  %v1413_v34 = vld [vmem:[%s14354_s3 + $0x1820] sm:$0xff]  ;;  %v1410_v29 = vld [vmem:[%s14354_s3 + $0x1808] sm:$0xff] }
 0x299   :  { %7374 = vmatprep.subr.bf16.mxu1 %v9862_v55  ;;  %v9902_v55 = vcombine.high %v1378_v49, %v1382_v50  ;;  %v1414_v17 = vld [vmem:[%s14354_s3 + $0x1828] sm:$0xff] }
 0x29b   :  { %7047 = vmatpush1.bf16.msra.mxu0 %v9859_v62  ;;  %v9899_v62 = vcombine.low %v1377_v46, %v1381_v48  ;;  %v1417_v46 = vld [vmem:[%s14354_s3 + $0x1840] sm:$0xff] }
 0x29c   :  { %7375 = vmatpush1.bf16.msra.mxu1 %v9861_v63  ;;  %7048 = vmatprep.subr.bf16.mxu0 %v9868_v1  ;;  %v9901_v63 = vcombine.low %v1378_v49, %v1382_v50  ;;  %v9908_v1 = vcombine.high %v1385_v7, %v1389_v52  ;;  %v1421_v48 = vld [vmem:[%s14354_s3 + $0x1860] sm:$0xff]  ;;  %v9931_v49 = vcombine.low %v1409_v31, %v1413_v34  ;;  %v1418_v50 = vld [vmem:[%s14354_s3 + $0x1848] sm:$0xff] }
 0x29d   :  { %7376 = vmatprep.subr.bf16.mxu1 %v9870_v3  ;;  %v9910_v3 = vcombine.high %v1386_v57, %v1390_v61 }
 0x29f   :  { %7049 = vmatpush1.bf16.msra.mxu0 %v9867_v11  ;;  %v9907_v11 = vcombine.low %v1385_v7, %v1389_v52  ;;  %v1425_v7 = vld [vmem:[%s14354_s3 + $0x1880] sm:$0xff] }
 0x2a0   :  { %7377 = vmatpush1.bf16.msra.mxu1 %v9869_v13  ;;  %7050 = vmatprep.subr.bf16.mxu0 %v9876_v53  ;;  %v9909_v13 = vcombine.low %v1386_v57, %v1390_v61  ;;  %v9916_v53 = vcombine.high %v1393_v5, %v1397_v60  ;;  %v1429_v52 = vld [vmem:[%s14354_s3 + $0x18a0] sm:$0xff]  ;;  %v12044_v57 = vpack.c.bf16 %v11069_v2, %v11069_v2  ;;  %v1426_v61 = vld [vmem:[%s14354_s3 + $0x1888] sm:$0xff] }
 0x2a1   :  { %7378 = vmatprep.subr.bf16.mxu1 %v9878_v14  ;;  %v9918_v14 = vcombine.high %v1394_v9, %v1398_v10 }
 0x2a3   :  { %7051 = vmatpush1.bf16.msra.mxu0 %v9875_v19  ;;  %v9915_v19 = vcombine.low %v1393_v5, %v1397_v60  ;;  %v1433_v5 = vld [vmem:[%s14354_s3 + $0x18c0] sm:$0xff] }
 0x2a4   :  { %7379 = vmatpush1.bf16.msra.mxu1 %v9877_v27  ;;  %7052 = vmatprep.subr.bf16.mxu0 %v9884_v28  ;;  %v9917_v27 = vcombine.low %v1394_v9, %v1398_v10  ;;  %v9924_v28 = vcombine.high %v1401_v26, %v1405_v16  ;;  %v1437_v60 = vld [vmem:[%s14354_s3 + $0x18e0] sm:$0xff]  ;;  %v1434_v9 = vld [vmem:[%s14354_s3 + $0x18c8] sm:$0xff] }
 0x2a5   :  { %7380 = vmatprep.subr.bf16.mxu1 %v9886_v30  ;;  %v9926_v30 = vcombine.high %v1402_v58, %v1406_v18  ;;  %v1438_v10 = vld [vmem:[%s14354_s3 + $0x18e8] sm:$0xff] }
 0x2a7   :  { %7053 = vmatpush1.bf16.msra.mxu0 %v9883_v35  ;;  %v9923_v35 = vcombine.low %v1401_v26, %v1405_v16  ;;  %v1441_v26 = vld [vmem:[%s14354_s3 + $0x1900] sm:$0xff] }
 0x2a8   :  { %7381 = vmatpush1.bf16.msra.mxu1 %v9885_v38  ;;  %7054 = vmatprep.subr.bf16.mxu0 %v9892_v41  ;;  %v9925_v38 = vcombine.low %v1402_v58, %v1406_v18  ;;  %v9932_v41 = vcombine.high %v1409_v31, %v1413_v34  ;;  %v1445_v16 = vld [vmem:[%s14354_s3 + $0x1920] sm:$0xff]  ;;  %v1442_v58 = vld [vmem:[%s14354_s3 + $0x1908] sm:$0xff] }
 0x2a9   :  { %7382 = vmatprep.subr.bf16.mxu1 %v9894_v42  ;;  %v9934_v42 = vcombine.high %v1410_v29, %v1414_v17  ;;  %v1446_v18 = vld [vmem:[%s14354_s3 + $0x1928] sm:$0xff]  ;;  %v1449_v31 = vld [vmem:[%s14354_s3 + $0x1940] sm:$0xff] }
 0x2aa   :  { %v1453_v34 = vld [vmem:[%s14354_s3 + $0x1960] sm:$0xff] }
 0x2ab   :  { %7055 = vmatpush1.bf16.msra.mxu0 %v9891_v22  ;;  %v1422_v22 = vld [vmem:[%s14354_s3 + $0x1868] sm:$0xff] }
 0x2ac   :  { %7383 = vmatpush1.bf16.msra.mxu1 %v9893_v33  ;;  %7056 = vmatprep.subr.bf16.mxu0 %v9900_v54  ;;  %v12034_v33 = vpack.c.bf16 %v11012_v25, %v11012_v25  ;;  %v9933_v54 = vcombine.low %v1410_v29, %v1414_v17  ;;  %v9942_v25 = vcombine.high %v1418_v50, %v1422_v22  ;;  %v1450_v29 = vld [vmem:[%s14354_s3 + $0x1948] sm:$0xff] }
 0x2ad   :  { %7384 = vmatprep.subr.bf16.mxu1 %v9902_v55  ;;  %v9940_v55 = vcombine.high %v1417_v46, %v1421_v48  ;;  %v9941_v2 = vcombine.low %v1418_v50, %v1422_v22  ;;  %v1454_v17 = vld [vmem:[%s14354_s3 + $0x1968] sm:$0xff]  ;;  %v9971_v22 = vcombine.low %v1449_v31, %v1453_v34 }
 0x2ae   :  { %v1462_v50 = vld [vmem:[%s14354_s3 + $0x19a8] sm:$0xff] }
 0x2af   :  { %7057 = vmatpush1.bf16.msra.mxu0 %v9899_v62  ;;  %v1430_v62 = vld [vmem:[%s14354_s3 + $0x18a8] sm:$0xff] }
 0x2b0   :  { %7385 = vmatpush1.bf16.msra.mxu1 %v9901_v63  ;;  %7058 = vmatprep.subr.bf16.mxu0 %v9908_v1  ;;  %v9939_v63 = vcombine.low %v1417_v46, %v1421_v48  ;;  %v9948_v1 = vcombine.high %v1425_v7, %v1429_v52  ;;  %v1457_v46 = vld [vmem:[%s14354_s3 + $0x1980] sm:$0xff] }
 0x2b1   :  { %7386 = vmatprep.subr.bf16.mxu1 %v9910_v3  ;;  %v9950_v3 = vcombine.high %v1426_v61, %v1430_v62  ;;  %v1461_v48 = vld [vmem:[%s14354_s3 + $0x19a0] sm:$0xff] }
 0x2b3   :  { %7059 = vmatpush1.bf16.msra.mxu0 %v9907_v11  ;;  %v9947_v11 = vcombine.low %v1425_v7, %v1429_v52  ;;  %v1465_v52 = vld [vmem:[%s14354_s3 + $0x19c0] sm:$0xff] }
 0x2b4   :  { %7387 = vmatpush1.bf16.msra.mxu1 %v9909_v13  ;;  %7060 = vmatprep.subr.bf16.mxu0 %v9916_v53  ;;  %v9949_v13 = vcombine.low %v1426_v61, %v1430_v62  ;;  %v9956_v53 = vcombine.high %v1433_v5, %v1437_v60  ;;  %v1466_v61 = vld [vmem:[%s14354_s3 + $0x19c8] sm:$0xff] }
 0x2b5   :  { %7388 = vmatprep.subr.bf16.mxu1 %v9918_v14  ;;  %v9958_v14 = vcombine.high %v1434_v9, %v1438_v10  ;;  %v1470_v62 = vld [vmem:[%s14354_s3 + $0x19e8] sm:$0xff] }
 0x2b7   :  { %7061 = vmatpush1.bf16.msra.mxu0 %v9915_v19  ;;  %v9955_v19 = vcombine.low %v1433_v5, %v1437_v60  ;;  %v1473_v5 = vld [vmem:[%s14354_s3 + $0x1a00] sm:$0xff] }
 0x2b8   :  { %7389 = vmatpush1.bf16.msra.mxu1 %v9917_v27  ;;  %7062 = vmatprep.subr.bf16.mxu0 %v9924_v28  ;;  %v9957_v27 = vcombine.low %v1434_v9, %v1438_v10  ;;  %v9964_v28 = vcombine.high %v1441_v26, %v1445_v16  ;;  %v1477_v60 = vld [vmem:[%s14354_s3 + $0x1a20] sm:$0xff]  ;;  %v1474_v9 = vld [vmem:[%s14354_s3 + $0x1a08] sm:$0xff] }
 0x2b9   :  { %7390 = vmatprep.subr.bf16.mxu1 %v9926_v30  ;;  %v9966_v30 = vcombine.high %v1442_v58, %v1446_v18  ;;  %v1478_v10 = vld [vmem:[%s14354_s3 + $0x1a28] sm:$0xff] }
 0x2bb   :  { %7063 = vmatpush1.bf16.msra.mxu0 %v9923_v35  ;;  %v9963_v35 = vcombine.low %v1441_v26, %v1445_v16  ;;  %v1481_v26 = vld [vmem:[%s14354_s3 + $0x1a40] sm:$0xff] }
 0x2bc   :  { %7391 = vmatpush1.bf16.msra.mxu1 %v9925_v38  ;;  %7073 = vmatprep.subr.bf16.mxu0 %v9932_v41  ;;  %v9965_v38 = vcombine.low %v1442_v58, %v1446_v18  ;;  %v9972_v41 = vcombine.high %v1449_v31, %v1453_v34  ;;  %v1485_v16 = vld [vmem:[%s14354_s3 + $0x1a60] sm:$0xff]  ;;  %v1482_v58 = vld [vmem:[%s14354_s3 + $0x1a48] sm:$0xff] }
 0x2bd   :  { %7401 = vmatprep.subr.bf16.mxu1 %v9934_v42  ;;  %v9974_v42 = vcombine.high %v1450_v29, %v1454_v17  ;;  %v1486_v18 = vld [vmem:[%s14354_s3 + $0x1a68] sm:$0xff]  ;;  %v1489_v31 = vld [vmem:[%s14354_s3 + $0x1a80] sm:$0xff] }
 0x2be   :  { %7065 = vmatmul.mubr.bf16.vlgmr.msra.gmra.mrb[16].mxu0 %v12034_v33  ;;  %v1493_v34 = vld [vmem:[%s14354_s3 + $0x1aa0] sm:$0xff] }
 0x2bf   :  { %7393 = vmatmul.mubr.bf16.vlgmr.msra.gmra.mrb[16].mxu1 %v12034_v33  ;;  %7074 = vmatpush1.bf16.msra.mxu0 %v9931_v49  ;;  %v1458_v49 = vld [vmem:[%s14354_s3 + $0x1988] sm:$0xff] }
 0x2c0   :  { %7105 = vmatprep.mubr.bf16.mxu0 %v12044_v57  ;;  %7402 = vmatpush1.bf16.msra.mxu1 %v9933_v54  ;;  %v9973_v54 = vcombine.low %v1450_v29, %v1454_v17  ;;  %v9982_v7 = vcombine.high %v1458_v49, %v1462_v50  ;;  %v1490_v29 = vld [vmem:[%s14354_s3 + $0x1a88] sm:$0xff] }
 0x2c1   :  { %7433 = vmatprep.mubr.bf16.mxu1 %v12044_v57  ;;  %7075 = vmatprep.subr.bf16.mxu0 %v9940_v55  ;;  %v9980_v55 = vcombine.high %v1457_v46, %v1461_v48  ;;  %v1494_v17 = vld [vmem:[%s14354_s3 + $0x1aa8] sm:$0xff] }
 0x2c2   :  { %7403 = vmatprep.subr.bf16.mxu1 %v9942_v25  ;;  %v1469_v25 = vld [vmem:[%s14354_s3 + $0x19e0] sm:$0xff] }
 0x2c3   :  { %7076 = vmatpush1.bf16.msra.mxu0 %v9939_v63  ;;  %v9979_v63 = vcombine.low %v1457_v46, %v1461_v48  ;;  %v1497_v46 = vld [vmem:[%s14354_s3 + $0x1ac0] sm:$0xff] }
 0x2c4   :  { %7404 = vmatpush1.bf16.msra.mxu1 %v9941_v2  ;;  %7077 = vmatprep.subr.bf16.mxu0 %v9948_v1  ;;  %v9981_v2 = vcombine.low %v1458_v49, %v1462_v50  ;;  %v9988_v1 = vcombine.high %v1465_v52, %v1469_v25  ;;  %v1501_v48 = vld [vmem:[%s14354_s3 + $0x1ae0] sm:$0xff]  ;;  %v1498_v49 = vld [vmem:[%s14354_s3 + $0x1ac8] sm:$0xff] }
 0x2c5   :  { %7405 = vmatprep.subr.bf16.mxu1 %v9950_v3  ;;  %v9990_v3 = vcombine.high %v1466_v61, %v1470_v62  ;;  %v1502_v50 = vld [vmem:[%s14354_s3 + $0x1ae8] sm:$0xff] }
 0x2c7   :  { %7078 = vmatpush1.bf16.msra.mxu0 %v9947_v11  ;;  %v9987_v11 = vcombine.low %v1465_v52, %v1469_v25  ;;  %v1505_v52 = vld [vmem:[%s14354_s3 + $0x1b00] sm:$0xff] }
 0x2c8   :  { %7406 = vmatpush1.bf16.msra.mxu1 %v9949_v13  ;;  %7079 = vmatprep.subr.bf16.mxu0 %v9956_v53  ;;  %v9989_v13 = vcombine.low %v1466_v61, %v1470_v62  ;;  %v9996_v53 = vcombine.high %v1473_v5, %v1477_v60  ;;  %v1509_v25 = vld [vmem:[%s14354_s3 + $0x1b20] sm:$0xff]  ;;  %v1506_v61 = vld [vmem:[%s14354_s3 + $0x1b08] sm:$0xff] }
 0x2c9   :  { %7407 = vmatprep.subr.bf16.mxu1 %v9958_v14  ;;  %v9998_v14 = vcombine.high %v1474_v9, %v1478_v10  ;;  %v1510_v62 = vld [vmem:[%s14354_s3 + $0x1b28] sm:$0xff] }
 0x2cb   :  { %7080 = vmatpush1.bf16.msra.mxu0 %v9955_v19  ;;  %v9995_v19 = vcombine.low %v1473_v5, %v1477_v60  ;;  %v1513_v5 = vld [vmem:[%s14354_s3 + $0x1b40] sm:$0xff] }
 0x2cc   :  { %7408 = vmatpush1.bf16.msra.mxu1 %v9957_v27  ;;  %7081 = vmatprep.subr.bf16.mxu0 %v9964_v28  ;;  %v9997_v27 = vcombine.low %v1474_v9, %v1478_v10  ;;  %v10004_v28 = vcombine.high %v1481_v26, %v1485_v16  ;;  %v1517_v60 = vld [vmem:[%s14354_s3 + $0x1b60] sm:$0xff]  ;;  %v1514_v9 = vld [vmem:[%s14354_s3 + $0x1b48] sm:$0xff] }
 0x2cd   :  { %7409 = vmatprep.subr.bf16.mxu1 %v9966_v30  ;;  %v10006_v30 = vcombine.high %v1482_v58, %v1486_v18  ;;  %v1518_v10 = vld [vmem:[%s14354_s3 + $0x1b68] sm:$0xff] }
 0x2cf   :  { %7082 = vmatpush1.bf16.msra.mxu0 %v9963_v35  ;;  %v10003_v35 = vcombine.low %v1481_v26, %v1485_v16  ;;  %v1521_v26 = vld [vmem:[%s14354_s3 + $0x1b80] sm:$0xff] }
 0x2d0   :  { %7410 = vmatpush1.bf16.msra.mxu1 %v9965_v38  ;;  %7083 = vmatprep.subr.bf16.mxu0 %v9972_v41  ;;  %v10005_v38 = vcombine.low %v1482_v58, %v1486_v18  ;;  %v10012_v41 = vcombine.high %v1489_v31, %v1493_v34  ;;  %v1525_v16 = vld [vmem:[%s14354_s3 + $0x1ba0] sm:$0xff]  ;;  %v1522_v58 = vld [vmem:[%s14354_s3 + $0x1b88] sm:$0xff] }
 0x2d1   :  { %7411 = vmatprep.subr.bf16.mxu1 %v9974_v42  ;;  %v10014_v42 = vcombine.high %v1490_v29, %v1494_v17  ;;  %v1526_v18 = vld [vmem:[%s14354_s3 + $0x1ba8] sm:$0xff] }
 0x2d3   :  { %7084 = vmatpush1.bf16.msra.mxu0 %v9971_v22  ;;  %v10011_v22 = vcombine.low %v1489_v31, %v1493_v34  ;;  %v1529_v31 = vld [vmem:[%s14354_s3 + $0x1bc0] sm:$0xff] }
 0x2d4   :  { %7412 = vmatpush1.bf16.msra.mxu1 %v9973_v54  ;;  %7085 = vmatprep.subr.bf16.mxu0 %v9980_v55  ;;  %v10013_v54 = vcombine.low %v1490_v29, %v1494_v17  ;;  %v10020_v55 = vcombine.high %v1497_v46, %v1501_v48  ;;  %v1533_v34 = vld [vmem:[%s14354_s3 + $0x1be0] sm:$0xff]  ;;  %v1530_v29 = vld [vmem:[%s14354_s3 + $0x1bc8] sm:$0xff] }
 0x2d5   :  { %7413 = vmatprep.subr.bf16.mxu1 %v9982_v7  ;;  %v10022_v7 = vcombine.high %v1498_v49, %v1502_v50  ;;  %v1534_v17 = vld [vmem:[%s14354_s3 + $0x1be8] sm:$0xff] }
 0x2d7   :  { %7086 = vmatpush1.bf16.msra.mxu0 %v9979_v63  ;;  %v10019_v63 = vcombine.low %v1497_v46, %v1501_v48  ;;  %v1537_v46 = vld [vmem:[%s14354_s3 + $0x1c00] sm:$0xff] }
 0x2d8   :  { %7414 = vmatpush1.bf16.msra.mxu1 %v9981_v2  ;;  %7087 = vmatprep.subr.bf16.mxu0 %v9988_v1  ;;  %v10021_v2 = vcombine.low %v1498_v49, %v1502_v50  ;;  %v10028_v1 = vcombine.high %v1505_v52, %v1509_v25  ;;  %v1541_v48 = vld [vmem:[%s14354_s3 + $0x1c20] sm:$0xff]  ;;  %v1538_v49 = vld [vmem:[%s14354_s3 + $0x1c08] sm:$0xff] }
 0x2d9   :  { %7415 = vmatprep.subr.bf16.mxu1 %v9990_v3  ;;  %v10030_v3 = vcombine.high %v1506_v61, %v1510_v62  ;;  %v1542_v50 = vld [vmem:[%s14354_s3 + $0x1c28] sm:$0xff] }
 0x2db   :  { %7088 = vmatpush1.bf16.msra.mxu0 %v9987_v11  ;;  %v10027_v11 = vcombine.low %v1505_v52, %v1509_v25  ;;  %v1545_v52 = vld [vmem:[%s14354_s3 + $0x1c40] sm:$0xff] }
 0x2dc   :  { %7416 = vmatpush1.bf16.msra.mxu1 %v9989_v13  ;;  %7089 = vmatprep.subr.bf16.mxu0 %v9996_v53  ;;  %v10029_v13 = vcombine.low %v1506_v61, %v1510_v62  ;;  %v10036_v53 = vcombine.high %v1513_v5, %v1517_v60  ;;  %v1549_v25 = vld [vmem:[%s14354_s3 + $0x1c60] sm:$0xff]  ;;  %v10059_v61 = vcombine.low %v1537_v46, %v1541_v48  ;;  %v1546_v62 = vld [vmem:[%s14354_s3 + $0x1c48] sm:$0xff] }
 0x2dd   :  { %7417 = vmatprep.subr.bf16.mxu1 %v9998_v14  ;;  %v10038_v14 = vcombine.high %v1514_v9, %v1518_v10 }
 0x2df   :  { %7090 = vmatpush1.bf16.msra.mxu0 %v9995_v19  ;;  %v10035_v19 = vcombine.low %v1513_v5, %v1517_v60  ;;  %v1553_v5 = vld [vmem:[%s14354_s3 + $0x1c80] sm:$0xff] }
 0x2e0   :  { %7418 = vmatpush1.bf16.msra.mxu1 %v9997_v27  ;;  %7091 = vmatprep.subr.bf16.mxu0 %v10004_v28  ;;  %v10037_v27 = vcombine.low %v1514_v9, %v1518_v10  ;;  %v10044_v28 = vcombine.high %v1521_v26, %v1525_v16  ;;  %v1557_v60 = vld [vmem:[%s14354_s3 + $0x1ca0] sm:$0xff]  ;;  %v12248_v9 = vpack.c.bf16 %v11071_v12, %v11071_v12  ;;  %v1554_v10 = vld [vmem:[%s14354_s3 + $0x1c88] sm:$0xff] }
 0x2e1   :  { %7419 = vmatprep.subr.bf16.mxu1 %v10006_v30  ;;  %v10046_v30 = vcombine.high %v1522_v58, %v1526_v18 }
 0x2e3   :  { %7092 = vmatpush1.bf16.msra.mxu0 %v10003_v35  ;;  %v10043_v35 = vcombine.low %v1521_v26, %v1525_v16  ;;  %v1561_v26 = vld [vmem:[%s14354_s3 + $0x1cc0] sm:$0xff] }
 0x2e4   :  { %7420 = vmatpush1.bf16.msra.mxu1 %v10005_v38  ;;  %7093 = vmatprep.subr.bf16.mxu0 %v10012_v41  ;;  %v10045_v38 = vcombine.low %v1522_v58, %v1526_v18  ;;  %v10052_v41 = vcombine.high %v1529_v31, %v1533_v34  ;;  %v1565_v16 = vld [vmem:[%s14354_s3 + $0x1ce0] sm:$0xff]  ;;  %v1562_v58 = vld [vmem:[%s14354_s3 + $0x1cc8] sm:$0xff] }
 0x2e5   :  { %7421 = vmatprep.subr.bf16.mxu1 %v10014_v42  ;;  %v10054_v42 = vcombine.high %v1530_v29, %v1534_v17  ;;  %v1566_v18 = vld [vmem:[%s14354_s3 + $0x1ce8] sm:$0xff] }
 0x2e7   :  { %7094 = vmatpush1.bf16.msra.mxu0 %v10011_v22  ;;  %v10051_v22 = vcombine.low %v1529_v31, %v1533_v34  ;;  %v1569_v31 = vld [vmem:[%s14354_s3 + $0x1d00] sm:$0xff] }
 0x2e8   :  { %7422 = vmatpush1.bf16.msra.mxu1 %v10013_v54  ;;  %7095 = vmatprep.subr.bf16.mxu0 %v10020_v55  ;;  %v10053_v54 = vcombine.low %v1530_v29, %v1534_v17  ;;  %v10060_v55 = vcombine.high %v1537_v46, %v1541_v48  ;;  %v1573_v34 = vld [vmem:[%s14354_s3 + $0x1d20] sm:$0xff]  ;;  %v1570_v29 = vld [vmem:[%s14354_s3 + $0x1d08] sm:$0xff] }
 0x2e9   :  { %7423 = vmatprep.subr.bf16.mxu1 %v10022_v7  ;;  %v10062_v7 = vcombine.high %v1538_v49, %v1542_v50  ;;  %v1574_v17 = vld [vmem:[%s14354_s3 + $0x1d28] sm:$0xff]  ;;  %v1577_v46 = vld [vmem:[%s14354_s3 + $0x1d40] sm:$0xff] }
 0x2ea   :  { %v1581_v48 = vld [vmem:[%s14354_s3 + $0x1d60] sm:$0xff] }
 0x2eb   :  { %7096 = vmatpush1.bf16.msra.mxu0 %v10019_v63  ;;  %v1550_v63 = vld [vmem:[%s14354_s3 + $0x1c68] sm:$0xff] }
 0x2ec   :  { %7424 = vmatpush1.bf16.msra.mxu1 %v10021_v2  ;;  %7097 = vmatprep.subr.bf16.mxu0 %v10028_v1  ;;  %v12238_v2 = vpack.c.bf16 %v11062_v6, %v11062_v6  ;;  %v10061_v1 = vcombine.low %v1538_v49, %v1542_v50  ;;  %v10070_v6 = vcombine.high %v1546_v62, %v1550_v63  ;;  %v1578_v49 = vld [vmem:[%s14354_s3 + $0x1d48] sm:$0xff] }
 0x2ed   :  { %7425 = vmatprep.subr.bf16.mxu1 %v10030_v3  ;;  %v10068_v3 = vcombine.high %v1545_v52, %v1549_v25  ;;  %v10069_v12 = vcombine.low %v1546_v62, %v1550_v63  ;;  %v1582_v50 = vld [vmem:[%s14354_s3 + $0x1d68] sm:$0xff]  ;;  %v10099_v63 = vcombine.low %v1577_v46, %v1581_v48 }
 0x2ee   :  { %v1590_v62 = vld [vmem:[%s14354_s3 + $0x1da8] sm:$0xff] }
 0x2ef   :  { %7098 = vmatpush1.bf16.msra.mxu0 %v10027_v11  ;;  %v1558_v11 = vld [vmem:[%s14354_s3 + $0x1ca8] sm:$0xff] }
 0x2f0   :  { %7426 = vmatpush1.bf16.msra.mxu1 %v10029_v13  ;;  %7099 = vmatprep.subr.bf16.mxu0 %v10036_v53  ;;  %v10067_v13 = vcombine.low %v1545_v52, %v1549_v25  ;;  %v10076_v53 = vcombine.high %v1553_v5, %v1557_v60  ;;  %v1585_v52 = vld [vmem:[%s14354_s3 + $0x1d80] sm:$0xff] }
 0x2f1   :  { %7427 = vmatprep.subr.bf16.mxu1 %v10038_v14  ;;  %v10078_v14 = vcombine.high %v1554_v10, %v1558_v11  ;;  %v1589_v25 = vld [vmem:[%s14354_s3 + $0x1da0] sm:$0xff] }
 0x2f3   :  { %7100 = vmatpush1.bf16.msra.mxu0 %v10035_v19  ;;  %v10075_v19 = vcombine.low %v1553_v5, %v1557_v60  ;;  %v1593_v60 = vld [vmem:[%s14354_s3 + $0x1dc0] sm:$0xff] }
 0x2f4   :  { %7428 = vmatpush1.bf16.msra.mxu1 %v10037_v27  ;;  %7101 = vmatprep.subr.bf16.mxu0 %v10044_v28  ;;  %v10077_v27 = vcombine.low %v1554_v10, %v1558_v11  ;;  %v10084_v28 = vcombine.high %v1561_v26, %v1565_v16  ;;  %v1594_v10 = vld [vmem:[%s14354_s3 + $0x1dc8] sm:$0xff] }
 0x2f5   :  { %7429 = vmatprep.subr.bf16.mxu1 %v10046_v30  ;;  %v10086_v30 = vcombine.high %v1562_v58, %v1566_v18  ;;  %v1598_v11 = vld [vmem:[%s14354_s3 + $0x1de8] sm:$0xff] }
 0x2f7   :  { %7102 = vmatpush1.bf16.msra.mxu0 %v10043_v35  ;;  %v10083_v35 = vcombine.low %v1561_v26, %v1565_v16  ;;  %v1601_v26 = vld [vmem:[%s14354_s3 + $0x1e00] sm:$0xff] }
 0x2f8   :  { %7430 = vmatpush1.bf16.msra.mxu1 %v10045_v38  ;;  %7103 = vmatprep.subr.bf16.mxu0 %v10052_v41  ;;  %v10085_v38 = vcombine.low %v1562_v58, %v1566_v18  ;;  %v10092_v41 = vcombine.high %v1569_v31, %v1573_v34  ;;  %v1605_v16 = vld [vmem:[%s14354_s3 + $0x1e20] sm:$0xff]  ;;  %v1602_v58 = vld [vmem:[%s14354_s3 + $0x1e08] sm:$0xff] }
 0x2f9   :  { %7431 = vmatprep.subr.bf16.mxu1 %v10054_v42  ;;  %v10094_v42 = vcombine.high %v1570_v29, %v1574_v17  ;;  %v1606_v18 = vld [vmem:[%s14354_s3 + $0x1e28] sm:$0xff] }
 0x2fb   :  { %7104 = vmatpush1.bf16.msra.mxu0 %v10051_v22  ;;  %v10091_v22 = vcombine.low %v1569_v31, %v1573_v34  ;;  %v1609_v31 = vld [vmem:[%s14354_s3 + $0x1e40] sm:$0xff] }
 0x2fc   :  { %7432 = vmatpush1.bf16.msra.mxu1 %v10053_v54  ;;  %7114 = vmatprep.subr.bf16.mxu0 %v10060_v55  ;;  %v10093_v54 = vcombine.low %v1570_v29, %v1574_v17  ;;  %v10100_v55 = vcombine.high %v1577_v46, %v1581_v48  ;;  %v1613_v34 = vld [vmem:[%s14354_s3 + $0x1e60] sm:$0xff]  ;;  %v1610_v29 = vld [vmem:[%s14354_s3 + $0x1e48] sm:$0xff] }
 0x2fd   :  { %7442 = vmatprep.subr.bf16.mxu1 %v10062_v7  ;;  %v10102_v7 = vcombine.high %v1578_v49, %v1582_v50  ;;  %v1614_v17 = vld [vmem:[%s14354_s3 + $0x1e68] sm:$0xff]  ;;  %v1617_v46 = vld [vmem:[%s14354_s3 + $0x1e80] sm:$0xff] }
 0x2fe   :  { %7106 = vmatmul.mubr.bf16.vlgmr.msra.gmra.mrb[16].mxu0 %v12238_v2  ;;  %v1621_v48 = vld [vmem:[%s14354_s3 + $0x1ea0] sm:$0xff] }
 0x2ff   :  { %7434 = vmatmul.mubr.bf16.vlgmr.msra.gmra.mrb[16].mxu1 %v12238_v2  ;;  %7115 = vmatpush1.bf16.msra.mxu0 %v10059_v61  ;;  %v1586_v61 = vld [vmem:[%s14354_s3 + $0x1d88] sm:$0xff] }
 0x300   :  { %7146 = vmatprep.mubr.bf16.mxu0 %v12248_v9  ;;  %7443 = vmatpush1.bf16.msra.mxu1 %v10061_v1  ;;  %v10101_v1 = vcombine.low %v1578_v49, %v1582_v50  ;;  %v10110_v5 = vcombine.high %v1586_v61, %v1590_v62  ;;  %v1618_v49 = vld [vmem:[%s14354_s3 + $0x1e88] sm:$0xff] }
 0x301   :  { %7474 = vmatprep.mubr.bf16.mxu1 %v12248_v9  ;;  %7116 = vmatprep.subr.bf16.mxu0 %v10068_v3  ;;  %v10108_v3 = vcombine.high %v1585_v52, %v1589_v25  ;;  %v1622_v50 = vld [vmem:[%s14354_s3 + $0x1ea8] sm:$0xff] }
 0x302   :  { %7444 = vmatprep.subr.bf16.mxu1 %v10070_v6  ;;  %v1597_v6 = vld [vmem:[%s14354_s3 + $0x1de0] sm:$0xff] }
 0x303   :  { %7117 = vmatpush1.bf16.msra.mxu0 %v10067_v13  ;;  %v10107_v13 = vcombine.low %v1585_v52, %v1589_v25  ;;  %v1625_v52 = vld [vmem:[%s14354_s3 + $0x1ec0] sm:$0xff] }
 0x304   :  { %7445 = vmatpush1.bf16.msra.mxu1 %v10069_v12  ;;  %7118 = vmatprep.subr.bf16.mxu0 %v10076_v53  ;;  %v10109_v12 = vcombine.low %v1586_v61, %v1590_v62  ;;  %v10116_v53 = vcombine.high %v1593_v60, %v1597_v6  ;;  %v1629_v25 = vld [vmem:[%s14354_s3 + $0x1ee0] sm:$0xff]  ;;  %v1626_v61 = vld [vmem:[%s14354_s3 + $0x1ec8] sm:$0xff] }
 0x305   :  { %7446 = vmatprep.subr.bf16.mxu1 %v10078_v14  ;;  %v10118_v14 = vcombine.high %v1594_v10, %v1598_v11  ;;  %v1630_v62 = vld [vmem:[%s14354_s3 + $0x1ee8] sm:$0xff] }
 0x307   :  { %7119 = vmatpush1.bf16.msra.mxu0 %v10075_v19  ;;  %v10115_v19 = vcombine.low %v1593_v60, %v1597_v6  ;;  %v1633_v60 = vld [vmem:[%s14354_s3 + $0x1f00] sm:$0xff] }
 0x308   :  { %7447 = vmatpush1.bf16.msra.mxu1 %v10077_v27  ;;  %7120 = vmatprep.subr.bf16.mxu0 %v10084_v28  ;;  %v10117_v27 = vcombine.low %v1594_v10, %v1598_v11  ;;  %v10124_v28 = vcombine.high %v1601_v26, %v1605_v16  ;;  %v1637_v6 = vld [vmem:[%s14354_s3 + $0x1f20] sm:$0xff]  ;;  %v1634_v10 = vld [vmem:[%s14354_s3 + $0x1f08] sm:$0xff] }
 0x309   :  { %7448 = vmatprep.subr.bf16.mxu1 %v10086_v30  ;;  %v10126_v30 = vcombine.high %v1602_v58, %v1606_v18  ;;  %v1638_v11 = vld [vmem:[%s14354_s3 + $0x1f28] sm:$0xff] }
 0x30b   :  { %7121 = vmatpush1.bf16.msra.mxu0 %v10083_v35  ;;  %v10123_v35 = vcombine.low %v1601_v26, %v1605_v16  ;;  %v1641_v26 = vld [vmem:[%s14354_s3 + $0x1f40] sm:$0xff] }
 0x30c   :  { %7449 = vmatpush1.bf16.msra.mxu1 %v10085_v38  ;;  %7122 = vmatprep.subr.bf16.mxu0 %v10092_v41  ;;  %v10125_v38 = vcombine.low %v1602_v58, %v1606_v18  ;;  %v10132_v41 = vcombine.high %v1609_v31, %v1613_v34  ;;  %v1645_v16 = vld [vmem:[%s14354_s3 + $0x1f60] sm:$0xff]  ;;  %v1642_v58 = vld [vmem:[%s14354_s3 + $0x1f48] sm:$0xff] }
 0x30d   :  { %7450 = vmatprep.subr.bf16.mxu1 %v10094_v42  ;;  %v10134_v42 = vcombine.high %v1610_v29, %v1614_v17  ;;  %v1646_v18 = vld [vmem:[%s14354_s3 + $0x1f68] sm:$0xff] }
 0x30f   :  { %7123 = vmatpush1.bf16.msra.mxu0 %v10091_v22  ;;  %v10131_v22 = vcombine.low %v1609_v31, %v1613_v34  ;;  %v1649_v31 = vld [vmem:[%s14354_s3 + $0x1f80] sm:$0xff] }
 0x310   :  { %7451 = vmatpush1.bf16.msra.mxu1 %v10093_v54  ;;  %7124 = vmatprep.subr.bf16.mxu0 %v10100_v55  ;;  %v10133_v54 = vcombine.low %v1610_v29, %v1614_v17  ;;  %v10140_v55 = vcombine.high %v1617_v46, %v1621_v48  ;;  %v1653_v34 = vld [vmem:[%s14354_s3 + $0x1fa0] sm:$0xff]  ;;  %v1650_v29 = vld [vmem:[%s14354_s3 + $0x1f88] sm:$0xff] }
 0x311   :  { %7452 = vmatprep.subr.bf16.mxu1 %v10102_v7  ;;  %v10142_v7 = vcombine.high %v1618_v49, %v1622_v50  ;;  %v1654_v17 = vld [vmem:[%s14354_s3 + $0x1fa8] sm:$0xff] }
 0x313   :  { %7125 = vmatpush1.bf16.msra.mxu0 %v10099_v63  ;;  %v10139_v63 = vcombine.low %v1617_v46, %v1621_v48  ;;  %v1657_v46 = vld [vmem:[%s14354_s3 + $0x1fc0] sm:$0xff] }
 0x314   :  { %7453 = vmatpush1.bf16.msra.mxu1 %v10101_v1  ;;  %7126 = vmatprep.subr.bf16.mxu0 %v10108_v3  ;;  %v10141_v1 = vcombine.low %v1618_v49, %v1622_v50  ;;  %v10148_v3 = vcombine.high %v1625_v52, %v1629_v25  ;;  %v1661_v48 = vld [vmem:[%s14354_s3 + $0x1fe0] sm:$0xff]  ;;  %v1658_v49 = vld [vmem:[%s14354_s3 + $0x1fc8] sm:$0xff] }
 0x315   :  { %7454 = vmatprep.subr.bf16.mxu1 %v10110_v5  ;;  %v10150_v5 = vcombine.high %v1626_v61, %v1630_v62  ;;  %v1662_v50 = vld [vmem:[%s14354_s3 + $0x1fe8] sm:$0xff] }
 0x317   :  { %7127 = vmatpush1.bf16.msra.mxu0 %v10107_v13  ;;  %v10147_v13 = vcombine.low %v1625_v52, %v1629_v25  ;;  %v643_v52 = vld [vmem:[%s14354_s3 + $0x10] sm:$0xff] }
 0x318   :  { %7455 = vmatpush1.bf16.msra.mxu1 %v10109_v12  ;;  %7128 = vmatprep.subr.bf16.mxu0 %v10116_v53  ;;  %v10149_v12 = vcombine.low %v1626_v61, %v1630_v62  ;;  %v10156_v53 = vcombine.high %v1633_v60, %v1637_v6  ;;  %v647_v25 = vld [vmem:[%s14354_s3 + $0x30] sm:$0xff]  ;;  %v644_v61 = vld [vmem:[%s14354_s3 + $0x18] sm:$0xff] }
 0x319   :  { %7456 = vmatprep.subr.bf16.mxu1 %v10118_v14  ;;  %v10158_v14 = vcombine.high %v1634_v10, %v1638_v11  ;;  %v648_v62 = vld [vmem:[%s14354_s3 + $0x38] sm:$0xff] }
 0x31b   :  { %7129 = vmatpush1.bf16.msra.mxu0 %v10115_v19  ;;  %v10155_v19 = vcombine.low %v1633_v60, %v1637_v6  ;;  %v651_v60 = vld [vmem:[%s14354_s3 + $0x50] sm:$0xff] }
 0x31c   :  { %7457 = vmatpush1.bf16.msra.mxu1 %v10117_v27  ;;  %7130 = vmatprep.subr.bf16.mxu0 %v10124_v28  ;;  %v10157_v27 = vcombine.low %v1634_v10, %v1638_v11  ;;  %v10164_v28 = vcombine.high %v1641_v26, %v1645_v16  ;;  %v655_v6 = vld [vmem:[%s14354_s3 + $0x70] sm:$0xff]  ;;  %v9167_v10 = vcombine.low %v643_v52, %v647_v25  ;;  %v652_v11 = vld [vmem:[%s14354_s3 + $0x58] sm:$0xff] }
 0x31d   :  { %7458 = vmatprep.subr.bf16.mxu1 %v10126_v30  ;;  %v10166_v30 = vcombine.high %v1642_v58, %v1646_v18 }
 0x31f   :  { %7131 = vmatpush1.bf16.msra.mxu0 %v10123_v35  ;;  %v10163_v35 = vcombine.low %v1641_v26, %v1645_v16  ;;  %v659_v26 = vld [vmem:[%s14354_s3 + $0x90] sm:$0xff] }
 0x320   :  { %7459 = vmatpush1.bf16.msra.mxu1 %v10125_v38  ;;  %7132 = vmatprep.subr.bf16.mxu0 %v10132_v41  ;;  %v10165_v38 = vcombine.low %v1642_v58, %v1646_v18  ;;  %v10172_v41 = vcombine.high %v1649_v31, %v1653_v34  ;;  %v663_v16 = vld [vmem:[%s14354_s3 + $0xb0] sm:$0xff]  ;;  %v664_v18 = vld [vmem:[%s14354_s3 + $0xb8] sm:$0xff] }
 0x321   :  { %7460 = vmatprep.subr.bf16.mxu1 %v10134_v42  ;;  %v10174_v42 = vcombine.high %v1650_v29, %v1654_v17 }
 0x323   :  { %7133 = vmatpush1.bf16.msra.mxu0 %v10131_v22  ;;  %v10171_v22 = vcombine.low %v1649_v31, %v1653_v34  ;;  %v667_v31 = vld [vmem:[%s14354_s3 + $0xd0] sm:$0xff] }
 0x324   :  { %7461 = vmatpush1.bf16.msra.mxu1 %v10133_v54  ;;  %7134 = vmatprep.subr.bf16.mxu0 %v10140_v55  ;;  %v10173_v54 = vcombine.low %v1650_v29, %v1654_v17  ;;  %v10180_v55 = vcombine.high %v1657_v46, %v1661_v48  ;;  %v671_v34 = vld [vmem:[%s14354_s3 + $0xf0] sm:$0xff]  ;;  %v668_v29 = vld [vmem:[%s14354_s3 + $0xd8] sm:$0xff] }
 0x325   :  { %7462 = vmatprep.subr.bf16.mxu1 %v10142_v7  ;;  %v10182_v7 = vcombine.high %v1658_v49, %v1662_v50  ;;  %v672_v17 = vld [vmem:[%s14354_s3 + $0xf8] sm:$0xff] }
 0x327   :  { %7135 = vmatpush1.bf16.msra.mxu0 %v10139_v63  ;;  %v10179_v63 = vcombine.low %v1657_v46, %v1661_v48  ;;  %v679_v46 = vld [vmem:[%s14354_s3 + $0x130] sm:$0xff]  ;;  %v676_v48 = vld [vmem:[%s14354_s3 + $0x118] sm:$0xff] }
 0x328   :  { %7463 = vmatpush1.bf16.msra.mxu1 %v10141_v1  ;;  %7136 = vmatprep.subr.bf16.mxu0 %v10148_v3  ;;  %v10181_v1 = vcombine.low %v1658_v49, %v1662_v50  ;;  %v9168_v3 = vcombine.high %v643_v52, %v647_v25  ;;  %v680_v49 = vld [vmem:[%s14354_s3 + $0x138] sm:$0xff]  ;;  %v9191_v50 = vcombine.low %v667_v31, %v671_v34  ;;  %v687_v52 = vld [vmem:[%s14354_s3 + $0x170] sm:$0xff] }
 0x329   :  { %7464 = vmatprep.subr.bf16.mxu1 %v10150_v5  ;;  %v9170_v5 = vcombine.high %v644_v61, %v648_v62  ;;  %v684_v25 = vld [vmem:[%s14354_s3 + $0x158] sm:$0xff] }
 0x32b   :  { %7137 = vmatpush1.bf16.msra.mxu0 %v10147_v13  ;;  %v656_v13 = vld [vmem:[%s14354_s3 + $0x78] sm:$0xff] }
 0x32c   :  { %7465 = vmatpush1.bf16.msra.mxu1 %v10149_v12  ;;  %7138 = vmatprep.subr.bf16.mxu0 %v10156_v53  ;;  %v12442_v12 = vpack.c.bf16 %v11064_v8, %v11064_v8  ;;  %v9169_v53 = vcombine.low %v644_v61, %v648_v62  ;;  %v9178_v58 = vcombine.high %v652_v11, %v656_v13  ;;  %v660_v8 = vld [vmem:[%s14354_s3 + $0x98] sm:$0xff] }
 0x32d   :  { %7466 = vmatprep.subr.bf16.mxu1 %v10158_v14  ;;  %v9176_v14 = vcombine.high %v651_v60, %v655_v6  ;;  %v688_v61 = vld [vmem:[%s14354_s3 + $0x178] sm:$0xff] }
 0x32f   :  { %7139 = vmatpush1.bf16.msra.mxu0 %v10155_v19  ;;  %v9175_v19 = vcombine.low %v651_v60, %v655_v6  ;;  %v695_v60 = vld [vmem:[%s14354_s3 + $0x1b0] sm:$0xff]  ;;  %v692_v6 = vld [vmem:[%s14354_s3 + $0x198] sm:$0xff] }
 0x330   :  { %7467 = vmatpush1.bf16.msra.mxu1 %v10157_v27  ;;  %7140 = vmatprep.subr.bf16.mxu0 %v10164_v28  ;;  %v9177_v27 = vcombine.low %v652_v11, %v656_v13  ;;  %v9184_v28 = vcombine.high %v659_v26, %v663_v16  ;;  %v9209_v13 = vcombine.low %v684_v25, %v688_v61 }
 0x331   :  { %7468 = vmatprep.subr.bf16.mxu1 %v10166_v30  ;;  %v9186_v30 = vcombine.high %v660_v8, %v664_v18 }
 0x333   :  { %7141 = vmatpush1.bf16.msra.mxu0 %v10163_v35  ;;  %v9185_v35 = vcombine.low %v660_v8, %v664_v18  ;;  %v704_v8 = vld [vmem:[%s14354_s3 + $0x1f8] sm:$0xff] }
 0x334   :  { %7469 = vmatpush1.bf16.msra.mxu1 %v10165_v38  ;;  %7142 = vmatprep.subr.bf16.mxu0 %v10172_v41  ;;  %v9192_v38 = vcombine.high %v667_v31, %v671_v34  ;;  %v9194_v41 = vcombine.high %v668_v29, %v672_v17  ;;  %v711_v31 = vld [vmem:[%s14354_s3 + $0x230] sm:$0xff]  ;;  %v708_v34 = vld [vmem:[%s14354_s3 + $0x218] sm:$0xff] }
 0x335   :  { %7470 = vmatprep.subr.bf16.mxu1 %v10174_v42  ;;  %v675_v42 = vld [vmem:[%s14354_s3 + $0x110] sm:$0xff] }
 0x336   :  { %v9199_v62 = vcombine.low %v675_v42, %v679_v46 }
 0x337   :  { %7143 = vmatpush1.bf16.msra.mxu0 %v10171_v22  ;;  %v9193_v22 = vcombine.low %v668_v29, %v672_v17  ;;  %v712_v29 = vld [vmem:[%s14354_s3 + $0x238] sm:$0xff] }
 0x338   :  { %7471 = vmatpush1.bf16.msra.mxu1 %v10173_v54  ;;  %7144 = vmatprep.subr.bf16.mxu0 %v10180_v55  ;;  %v9200_v54 = vcombine.high %v675_v42, %v679_v46  ;;  %v9202_v55 = vcombine.high %v676_v48, %v680_v49  ;;  %v719_v42 = vld [vmem:[%s14354_s3 + $0x270] sm:$0xff]  ;;  %v716_v46 = vld [vmem:[%s14354_s3 + $0x258] sm:$0xff] }
 0x339   :  { %7472 = vmatprep.subr.bf16.mxu1 %v10182_v7  ;;  %v683_v7 = vld [vmem:[%s14354_s3 + $0x150] sm:$0xff] }
 0x33a   :  { %v9207_v11 = vcombine.low %v683_v7, %v687_v52 }
 0x33b   :  { %7145 = vmatpush1.bf16.msra.mxu0 %v10179_v63  ;;  %v9201_v63 = vcombine.low %v676_v48, %v680_v49  ;;  %v720_v48 = vld [vmem:[%s14354_s3 + $0x278] sm:$0xff] }
 0x33c   :  { %7473 = vmatpush1.bf16.msra.mxu1 %v10181_v1  ;;  %7483 = vmatprep.subr.bf16.mxu0 %v9168_v3  ;;  %v9208_v1 = vcombine.high %v683_v7, %v687_v52  ;;  %v9210_v3 = vcombine.high %v684_v25, %v688_v61  ;;  %v727_v7 = vld [vmem:[%s14354_s3 + $0x2b0] sm:$0xff]  ;;  %v724_v52 = vld [vmem:[%s14354_s3 + $0x298] sm:$0xff] }
 0x33d   :  { %7811 = vmatprep.subr.bf16.mxu1 %v9170_v5  ;;  %v691_v5 = vld [vmem:[%s14354_s3 + $0x190] sm:$0xff]  ;;  %v728_v25 = vld [vmem:[%s14354_s3 + $0x2b8] sm:$0xff] }
 0x33e   :  { %7147 = vmatmul.mubr.bf16.vlgmr.msra.gmra.mrb[16].mxu0 %v12442_v12  ;;  %v9215_v18 = vcombine.low %v691_v5, %v695_v60 }
 0x33f   :  { %7475 = vmatmul.mubr.bf16.vlgmr.msra.gmra.mrb[16].mxu1 %v12442_v12  ;;  %7484 = vmatpush1.bf16.msra.mxu0 %v9167_v10  ;;  %v696_v10 = vld [vmem:[%s14354_s3 + $0x1b8] sm:$0xff] }
 0x340   :  { %7515 = vmatprep.mubr.bf16.mxu0 %v10942_v43  ;;  %7812 = vmatpush1.bf16.msra.mxu1 %v9169_v53  ;;  %v9216_v53 = vcombine.high %v691_v5, %v695_v60  ;;  %v735_v5 = vld [vmem:[%s14354_s3 + $0x2f0] sm:$0xff]  ;;  %v732_v60 = vld [vmem:[%s14354_s3 + $0x2d8] sm:$0xff] }
 0x341   :  { %7843 = vmatprep.mubr.bf16.mxu1 %v10942_v43  ;;  %7485 = vmatprep.subr.bf16.mxu0 %v9176_v14  ;;  %v9183_v43 = vcombine.low %v659_v26, %v663_v16  ;;  %v9218_v14 = vcombine.high %v692_v6, %v696_v10  ;;  %v699_v26 = vld [vmem:[%s14354_s3 + $0x1d0] sm:$0xff] }
 0x342   :  { %7813 = vmatprep.subr.bf16.mxu1 %v9178_v58  ;;  %v703_v16 = vld [vmem:[%s14354_s3 + $0x1f0] sm:$0xff]  ;;  %v700_v58 = vld [vmem:[%s14354_s3 + $0x1d8] sm:$0xff] }
 0x343   :  { %7486 = vmatpush1.bf16.msra.mxu0 %v9175_v19  ;;  %v9217_v19 = vcombine.low %v692_v6, %v696_v10  ;;  %v9223_v17 = vcombine.low %v699_v26, %v703_v16  ;;  %v736_v6 = vld [vmem:[%s14354_s3 + $0x2f8] sm:$0xff] }
 0x344   :  { %7814 = vmatpush1.bf16.msra.mxu1 %v9177_v27  ;;  %7487 = vmatprep.subr.bf16.mxu0 %v9184_v28  ;;  %v9224_v27 = vcombine.high %v699_v26, %v703_v16  ;;  %v9226_v28 = vcombine.high %v700_v58, %v704_v8  ;;  %v743_v26 = vld [vmem:[%s14354_s3 + $0x330] sm:$0xff]  ;;  %v740_v16 = vld [vmem:[%s14354_s3 + $0x318] sm:$0xff] }
 0x345   :  { %7815 = vmatprep.subr.bf16.mxu1 %v9186_v30  ;;  %v707_v30 = vld [vmem:[%s14354_s3 + $0x210] sm:$0xff] }
 0x346   :  { %v9231_v49 = vcombine.low %v707_v30, %v711_v31 }
 0x347   :  { %7488 = vmatpush1.bf16.msra.mxu0 %v9183_v43  ;;  %v9225_v43 = vcombine.low %v700_v58, %v704_v8  ;;  %v744_v58 = vld [vmem:[%s14354_s3 + $0x338] sm:$0xff] }
 0x348   :  { %7816 = vmatpush1.bf16.msra.mxu1 %v9185_v35  ;;  %7489 = vmatprep.subr.bf16.mxu0 %v9192_v38  ;;  %v9232_v35 = vcombine.high %v707_v30, %v711_v31  ;;  %v9234_v38 = vcombine.high %v708_v34, %v712_v29  ;;  %v751_v30 = vld [vmem:[%s14354_s3 + $0x370] sm:$0xff]  ;;  %v748_v31 = vld [vmem:[%s14354_s3 + $0x358] sm:$0xff] }
 0x349   :  { %7817 = vmatprep.subr.bf16.mxu1 %v9194_v41  ;;  %v715_v41 = vld [vmem:[%s14354_s3 + $0x250] sm:$0xff] }
 0x34a   :  { %v9239_v61 = vcombine.low %v715_v41, %v719_v42 }
 0x34b   :  { %7490 = vmatpush1.bf16.msra.mxu0 %v9191_v50  ;;  %v9233_v50 = vcombine.low %v708_v34, %v712_v29  ;;  %v752_v34 = vld [vmem:[%s14354_s3 + $0x378] sm:$0xff] }
 0x34c   :  { %7818 = vmatpush1.bf16.msra.mxu1 %v9193_v22  ;;  %7491 = vmatprep.subr.bf16.mxu0 %v9200_v54  ;;  %v9240_v22 = vcombine.high %v715_v41, %v719_v42  ;;  %v9242_v54 = vcombine.high %v716_v46, %v720_v48  ;;  %v759_v41 = vld [vmem:[%s14354_s3 + $0x3b0] sm:$0xff]  ;;  %v756_v42 = vld [vmem:[%s14354_s3 + $0x398] sm:$0xff] }
 0x34d   :  { %7819 = vmatprep.subr.bf16.mxu1 %v9202_v55  ;;  %v723_v55 = vld [vmem:[%s14354_s3 + $0x290] sm:$0xff] }
 0x34e   :  { %v9247_v10 = vcombine.low %v723_v55, %v727_v7 }
 0x34f   :  { %7492 = vmatpush1.bf16.msra.mxu0 %v9199_v62  ;;  %v9241_v62 = vcombine.low %v716_v46, %v720_v48  ;;  %v760_v46 = vld [vmem:[%s14354_s3 + $0x3b8] sm:$0xff] }
 0x350   :  { %7820 = vmatpush1.bf16.msra.mxu1 %v9201_v63  ;;  %7493 = vmatprep.subr.bf16.mxu0 %v9208_v1  ;;  %v9248_v63 = vcombine.high %v723_v55, %v727_v7  ;;  %v9250_v1 = vcombine.high %v724_v52, %v728_v25  ;;  %v767_v55 = vld [vmem:[%s14354_s3 + $0x3f0] sm:$0xff]  ;;  %v764_v7 = vld [vmem:[%s14354_s3 + $0x3d8] sm:$0xff] }
 0x351   :  { %7821 = vmatprep.subr.bf16.mxu1 %v9210_v3  ;;  %v731_v3 = vld [vmem:[%s14354_s3 + $0x2d0] sm:$0xff] }
 0x352   :  { %v9255_v8 = vcombine.low %v731_v3, %v735_v5 }
 0x353   :  { %7494 = vmatpush1.bf16.msra.mxu0 %v9207_v11  ;;  %v9249_v11 = vcombine.low %v724_v52, %v728_v25  ;;  %v768_v52 = vld [vmem:[%s14354_s3 + $0x3f8] sm:$0xff] }
 0x354   :  { %7822 = vmatpush1.bf16.msra.mxu1 %v9209_v13  ;;  %7495 = vmatprep.subr.bf16.mxu0 %v9216_v53  ;;  %v9256_v13 = vcombine.high %v731_v3, %v735_v5  ;;  %v9258_v53 = vcombine.high %v732_v60, %v736_v6  ;;  %v775_v3 = vld [vmem:[%s14354_s3 + $0x430] sm:$0xff]  ;;  %v772_v5 = vld [vmem:[%s14354_s3 + $0x418] sm:$0xff] }
 0x355   :  { %7823 = vmatprep.subr.bf16.mxu1 %v9218_v14  ;;  %v739_v14 = vld [vmem:[%s14354_s3 + $0x310] sm:$0xff] }
 0x356   :  { %v9263_v29 = vcombine.low %v739_v14, %v743_v26 }
 0x357   :  { %7496 = vmatpush1.bf16.msra.mxu0 %v9215_v18  ;;  %v9257_v18 = vcombine.low %v732_v60, %v736_v6  ;;  %v776_v60 = vld [vmem:[%s14354_s3 + $0x438] sm:$0xff] }
 0x358   :  { %7824 = vmatpush1.bf16.msra.mxu1 %v9217_v19  ;;  %7497 = vmatprep.subr.bf16.mxu0 %v9224_v27  ;;  %v9264_v19 = vcombine.high %v739_v14, %v743_v26  ;;  %v9266_v27 = vcombine.high %v740_v16, %v744_v58  ;;  %v783_v14 = vld [vmem:[%s14354_s3 + $0x470] sm:$0xff] }
 0x359   :  { %7825 = vmatprep.subr.bf16.mxu1 %v9226_v28  ;;  %v747_v28 = vld [vmem:[%s14354_s3 + $0x350] sm:$0xff] }
 0x35a   :  { %v9271_v48 = vcombine.low %v747_v28, %v751_v30 }
 0x35b   :  { %7498 = vmatpush1.bf16.msra.mxu0 %v9223_v17  ;;  %v9265_v17 = vcombine.low %v740_v16, %v744_v58  ;;  %v780_v16 = vld [vmem:[%s14354_s3 + $0x458] sm:$0xff] }
 0x35c   :  { %7826 = vmatpush1.bf16.msra.mxu1 %v9225_v43  ;;  %7499 = vmatprep.subr.bf16.mxu0 %v9232_v35  ;;  %v9272_v43 = vcombine.high %v747_v28, %v751_v30  ;;  %v9274_v35 = vcombine.high %v748_v31, %v752_v34  ;;  %v784_v58 = vld [vmem:[%s14354_s3 + $0x478] sm:$0xff] }
 0x35d   :  { %7827 = vmatprep.subr.bf16.mxu1 %v9234_v38  ;;  %v755_v38 = vld [vmem:[%s14354_s3 + $0x390] sm:$0xff]  ;;  %v9306_v28 = vcombine.high %v780_v16, %v784_v58  ;;  %v788_v30 = vld [vmem:[%s14354_s3 + $0x498] sm:$0xff] }
 0x35e   :  { %v9279_v25 = vcombine.low %v755_v38, %v759_v41 }
 0x35f   :  { %7500 = vmatpush1.bf16.msra.mxu0 %v9231_v49  ;;  %v9273_v49 = vcombine.low %v748_v31, %v752_v34  ;;  %v792_v31 = vld [vmem:[%s14354_s3 + $0x4b8] sm:$0xff] }
 0x360   :  { %7828 = vmatpush1.bf16.msra.mxu1 %v9233_v50  ;;  %7501 = vmatprep.subr.bf16.mxu0 %v9240_v22  ;;  %v9280_v50 = vcombine.high %v755_v38, %v759_v41  ;;  %v9282_v22 = vcombine.high %v756_v42, %v760_v46  ;;  %v799_v38 = vld [vmem:[%s14354_s3 + $0x4f0] sm:$0xff]  ;;  %v800_v41 = vld [vmem:[%s14354_s3 + $0x4f8] sm:$0xff] }
 0x361   :  { %7829 = vmatprep.subr.bf16.mxu1 %v9242_v54  ;;  %v763_v54 = vld [vmem:[%s14354_s3 + $0x3d0] sm:$0xff] }
 0x362   :  { %v9287_v6 = vcombine.low %v763_v54, %v767_v55 }
 0x363   :  { %7502 = vmatpush1.bf16.msra.mxu0 %v9239_v61  ;;  %v9281_v61 = vcombine.low %v756_v42, %v760_v46  ;;  %v9313_v42 = vcombine.low %v788_v30, %v792_v31 }
 0x364   :  { %7830 = vmatpush1.bf16.msra.mxu1 %v9241_v62  ;;  %7503 = vmatprep.subr.bf16.mxu0 %v9248_v63  ;;  %v9288_v62 = vcombine.high %v763_v54, %v767_v55  ;;  %v9290_v63 = vcombine.high %v764_v7, %v768_v52  ;;  %v808_v54 = vld [vmem:[%s14354_s3 + $0x538] sm:$0xff] }
 0x365   :  { %7831 = vmatprep.subr.bf16.mxu1 %v9250_v1  ;;  %v771_v1 = vld [vmem:[%s14354_s3 + $0x410] sm:$0xff] }
 0x366   :  { %v9295_v26 = vcombine.low %v771_v1, %v775_v3 }
 0x367   :  { %7504 = vmatpush1.bf16.msra.mxu0 %v9247_v10  ;;  %v9289_v10 = vcombine.low %v764_v7, %v768_v52 }
 0x368   :  { %7832 = vmatpush1.bf16.msra.mxu1 %v9249_v11  ;;  %7505 = vmatprep.subr.bf16.mxu0 %v9256_v13  ;;  %v9296_v11 = vcombine.high %v771_v1, %v775_v3  ;;  %v9298_v13 = vcombine.high %v772_v5, %v776_v60  ;;  %v816_v1 = vld [vmem:[%s14354_s3 + $0x578] sm:$0xff] }
 0x369   :  { %7833 = vmatprep.subr.bf16.mxu1 %v9258_v53  ;;  %v779_v53 = vld [vmem:[%s14354_s3 + $0x450] sm:$0xff] }
 0x36a   :  { %v9303_v34 = vcombine.low %v779_v53, %v783_v14 }
 0x36b   :  { %7506 = vmatpush1.bf16.msra.mxu0 %v9255_v8  ;;  %v9297_v8 = vcombine.low %v772_v5, %v776_v60 }
 0x36c   :  { %7834 = vmatpush1.bf16.msra.mxu1 %v9257_v18  ;;  %7507 = vmatprep.subr.bf16.mxu0 %v9264_v19  ;;  %v9304_v18 = vcombine.high %v779_v53, %v783_v14  ;;  %v787_v19 = vld [vmem:[%s14354_s3 + $0x490] sm:$0xff]  ;;  %v824_v53 = vld [vmem:[%s14354_s3 + $0x5b8] sm:$0xff] }
 0x36d   :  { %7835 = vmatprep.subr.bf16.mxu1 %v9266_v27  ;;  %v791_v27 = vld [vmem:[%s14354_s3 + $0x4b0] sm:$0xff] }
 0x36f   :  { %7508 = vmatpush1.bf16.msra.mxu0 %v9263_v29  ;;  %v9305_v29 = vcombine.low %v780_v16, %v784_v58 }
 0x370   :  { %7836 = vmatpush1.bf16.msra.mxu1 %v9265_v17  ;;  %7509 = vmatprep.subr.bf16.mxu0 %v9272_v43  ;;  %v9312_v17 = vcombine.high %v787_v19, %v791_v27  ;;  %v9314_v43 = vcombine.high %v788_v30, %v792_v31 }
 0x371   :  { %7837 = vmatprep.subr.bf16.mxu1 %v9274_v35  ;;  %v795_v35 = vld [vmem:[%s14354_s3 + $0x4d0] sm:$0xff] }
 0x372   :  { %v9320_v46 = vcombine.high %v795_v35, %v799_v38  ;;  %v9319_v55 = vcombine.low %v795_v35, %v799_v38  ;;  %v840_v35 = vld [vmem:[%s14354_s3 + $0x638] sm:$0xff] }
 0x373   :  { %7510 = vmatpush1.bf16.msra.mxu0 %v9271_v48 }
 0x374   :  { %7838 = vmatpush1.bf16.msra.mxu1 %v9273_v49  ;;  %7511 = vmatprep.subr.bf16.mxu0 %v9280_v50  ;;  %v803_v49 = vld [vmem:[%s14354_s3 + $0x510] sm:$0xff] }
 0x375   :  { %7839 = vmatprep.subr.bf16.mxu1 %v9282_v22  ;;  %v807_v50 = vld [vmem:[%s14354_s3 + $0x530] sm:$0xff]  ;;  %v804_v22 = vld [vmem:[%s14354_s3 + $0x518] sm:$0xff] }
 0x376   :  { %v9328_v52 = vcombine.high %v803_v49, %v807_v50  ;;  %v9327_v3 = vcombine.low %v803_v49, %v807_v50  ;;  %v9329_v5 = vcombine.low %v804_v22, %v808_v54  ;;  %v848_v49 = vld [vmem:[%s14354_s3 + $0x678] sm:$0xff] }
 0x377   :  { %7512 = vmatpush1.bf16.msra.mxu0 %v9279_v25  ;;  %v9330_v25 = vcombine.high %v804_v22, %v808_v54 }
 0x378   :  { %7840 = vmatpush1.bf16.msra.mxu1 %v9281_v61  ;;  %7513 = vmatprep.subr.bf16.mxu0 %v9288_v62  ;;  %v811_v61 = vld [vmem:[%s14354_s3 + $0x550] sm:$0xff] }
 0x379   :  { %7841 = vmatprep.subr.bf16.mxu1 %v9290_v63  ;;  %v815_v62 = vld [vmem:[%s14354_s3 + $0x570] sm:$0xff]  ;;  %v812_v63 = vld [vmem:[%s14354_s3 + $0x558] sm:$0xff] }
 0x37a   :  { %v9336_v60 = vcombine.high %v811_v61, %v815_v62  ;;  %v9335_v14 = vcombine.low %v811_v61, %v815_v62  ;;  %v856_v61 = vld [vmem:[%s14354_s3 + $0x6b8] sm:$0xff] }
 0x37b   :  { %7514 = vmatpush1.bf16.msra.mxu0 %v9287_v6  ;;  %v9338_v6 = vcombine.high %v812_v63, %v816_v1 }
 0x37c   :  { %7842 = vmatpush1.bf16.msra.mxu1 %v9289_v10  ;;  %7524 = vmatprep.subr.bf16.mxu0 %v9296_v11  ;;  %v819_v10 = vld [vmem:[%s14354_s3 + $0x590] sm:$0xff] }
 0x37d   :  { %7852 = vmatprep.subr.bf16.mxu1 %v9298_v13  ;;  %v823_v11 = vld [vmem:[%s14354_s3 + $0x5b0] sm:$0xff]  ;;  %v820_v13 = vld [vmem:[%s14354_s3 + $0x598] sm:$0xff] }
 0x37e   :  { %7516 = vmatmul.mubr.bf16.vlgmr.msra.gmra.mrb[20].mxu0 %v10944_v44  ;;  %v9344_v16 = vcombine.high %v819_v10, %v823_v11  ;;  %v9346_v58 = vcombine.high %v820_v13, %v824_v53  ;;  %v9345_v30 = vcombine.low %v820_v13, %v824_v53 }
 0x37f   :  { %7844 = vmatmul.mubr.bf16.vlgmr.msra.gmra.mrb[20].mxu1 %v10944_v44  ;;  %7525 = vmatpush1.bf16.msra.mxu0 %v9295_v26  ;;  %v796_v44 = vld [vmem:[%s14354_s3 + $0x4d8] sm:$0xff]  ;;  %v9337_v26 = vcombine.low %v812_v63, %v816_v1 }
 0x380   :  { %7556 = vmatprep.mubr.bf16.mxu0 %v10960_v51  ;;  %7853 = vmatpush1.bf16.msra.mxu1 %v9297_v8  ;;  %v9322_v48 = vcombine.high %v796_v44, %v800_v41  ;;  %v9321_v7 = vcombine.low %v796_v44, %v800_v41  ;;  %v827_v8 = vld [vmem:[%s14354_s3 + $0x5d0] sm:$0xff] }
 0x381   :  { %7884 = vmatprep.mubr.bf16.mxu1 %v10960_v51  ;;  %7526 = vmatprep.subr.bf16.mxu0 %v9304_v18  ;;  %v9311_v51 = vcombine.low %v787_v19, %v791_v27  ;;  %v831_v18 = vld [vmem:[%s14354_s3 + $0x5f0] sm:$0xff]  ;;  %v828_v19 = vld [vmem:[%s14354_s3 + $0x5d8] sm:$0xff] }
 0x382   :  { %7854 = vmatprep.subr.bf16.mxu1 %v9306_v28  ;;  %v832_v27 = vld [vmem:[%s14354_s3 + $0x5f8] sm:$0xff]  ;;  %v9343_v28 = vcombine.low %v819_v10, %v823_v11  ;;  %v9352_v31 = vcombine.high %v827_v8, %v831_v18  ;;  %v9351_v38 = vcombine.low %v827_v8, %v831_v18 }
 0x383   :  { %7527 = vmatpush1.bf16.msra.mxu0 %v9303_v34  ;;  %v9354_v34 = vcombine.high %v828_v19, %v832_v27  ;;  %v9353_v44 = vcombine.low %v828_v19, %v832_v27  ;;  %v864_v10 = vld [vmem:[%s14354_s3 + $0x6f8] sm:$0xff] }
 0x384   :  { %7855 = vmatpush1.bf16.msra.mxu1 %v9305_v29  ;;  %7528 = vmatprep.subr.bf16.mxu0 %v9312_v17  ;;  %v835_v29 = vld [vmem:[%s14354_s3 + $0x610] sm:$0xff]  ;;  %v872_v8 = vld [vmem:[%s14354_s3 + $0x738] sm:$0xff] }
 0x385   :  { %7856 = vmatprep.subr.bf16.mxu1 %v9314_v43  ;;  %v839_v17 = vld [vmem:[%s14354_s3 + $0x630] sm:$0xff]  ;;  %v836_v43 = vld [vmem:[%s14354_s3 + $0x618] sm:$0xff] }
 0x386   :  { %v9360_v41 = vcombine.high %v835_v29, %v839_v17  ;;  %v9359_v50 = vcombine.low %v835_v29, %v839_v17  ;;  %v9361_v22 = vcombine.low %v836_v43, %v840_v35  ;;  %v880_v29 = vld [vmem:[%s14354_s3 + $0x778] sm:$0xff] }
 0x387   :  { %7529 = vmatpush1.bf16.msra.mxu0 %v9311_v51  ;;  %v9362_v51 = vcombine.high %v836_v43, %v840_v35 }
 0x388   :  { %7857 = vmatpush1.bf16.msra.mxu1 %v9313_v42  ;;  %7530 = vmatprep.subr.bf16.mxu0 %v9320_v46  ;;  %v843_v42 = vld [vmem:[%s14354_s3 + $0x650] sm:$0xff] }
 0x389   :  { %7858 = vmatprep.subr.bf16.mxu1 %v9322_v48  ;;  %v847_v46 = vld [vmem:[%s14354_s3 + $0x670] sm:$0xff]  ;;  %v844_v48 = vld [vmem:[%s14354_s3 + $0x658] sm:$0xff] }
 0x38a   :  { %v9368_v54 = vcombine.high %v843_v42, %v847_v46  ;;  %v9367_v62 = vcombine.low %v843_v42, %v847_v46  ;;  %v9369_v63 = vcombine.low %v844_v48, %v848_v49  ;;  %v888_v42 = vld [vmem:[%s14354_s3 + $0x7b8] sm:$0xff] }
 0x38b   :  { %7531 = vmatpush1.bf16.msra.mxu0 %v9319_v55  ;;  %v9370_v55 = vcombine.high %v844_v48, %v848_v49 }
 0x38c   :  { %7859 = vmatpush1.bf16.msra.mxu1 %v9321_v7  ;;  %7532 = vmatprep.subr.bf16.mxu0 %v9328_v52  ;;  %v851_v7 = vld [vmem:[%s14354_s3 + $0x690] sm:$0xff] }
 0x38d   :  { %7860 = vmatprep.subr.bf16.mxu1 %v9330_v25  ;;  %v855_v52 = vld [vmem:[%s14354_s3 + $0x6b0] sm:$0xff]  ;;  %v852_v25 = vld [vmem:[%s14354_s3 + $0x698] sm:$0xff] }
 0x38e   :  { %v9376_v1 = vcombine.high %v851_v7, %v855_v52  ;;  %v9375_v11 = vcombine.low %v851_v7, %v855_v52  ;;  %v9377_v13 = vcombine.low %v852_v25, %v856_v61  ;;  %v896_v7 = vld [vmem:[%s14354_s3 + $0x7f8] sm:$0xff] }
 0x38f   :  { %7533 = vmatpush1.bf16.msra.mxu0 %v9327_v3  ;;  %v9378_v3 = vcombine.high %v852_v25, %v856_v61 }
 0x390   :  { %7861 = vmatpush1.bf16.msra.mxu1 %v9329_v5  ;;  %7534 = vmatprep.subr.bf16.mxu0 %v9336_v60  ;;  %v859_v5 = vld [vmem:[%s14354_s3 + $0x6d0] sm:$0xff] }
 0x391   :  { %7862 = vmatprep.subr.bf16.mxu1 %v9338_v6  ;;  %v863_v60 = vld [vmem:[%s14354_s3 + $0x6f0] sm:$0xff]  ;;  %v860_v6 = vld [vmem:[%s14354_s3 + $0x6d8] sm:$0xff] }
 0x392   :  { %v9384_v53 = vcombine.high %v859_v5, %v863_v60  ;;  %v9383_v18 = vcombine.low %v859_v5, %v863_v60  ;;  %v9385_v19 = vcombine.low %v860_v6, %v864_v10  ;;  %v904_v5 = vld [vmem:[%s14354_s3 + $0x838] sm:$0xff] }
 0x393   :  { %7535 = vmatpush1.bf16.msra.mxu0 %v9335_v14  ;;  %v9386_v14 = vcombine.high %v860_v6, %v864_v10 }
 0x394   :  { %7863 = vmatpush1.bf16.msra.mxu1 %v9337_v26  ;;  %7536 = vmatprep.subr.bf16.mxu0 %v9344_v16  ;;  %v867_v26 = vld [vmem:[%s14354_s3 + $0x710] sm:$0xff] }
 0x395   :  { %7864 = vmatprep.subr.bf16.mxu1 %v9346_v58  ;;  %v871_v16 = vld [vmem:[%s14354_s3 + $0x730] sm:$0xff]  ;;  %v868_v58 = vld [vmem:[%s14354_s3 + $0x718] sm:$0xff] }
 0x396   :  { %v9392_v27 = vcombine.high %v867_v26, %v871_v16  ;;  %v9391_v17 = vcombine.low %v867_v26, %v871_v16  ;;  %v9393_v43 = vcombine.low %v868_v58, %v872_v8  ;;  %v908_v26 = vld [vmem:[%s14354_s3 + $0x858] sm:$0xff] }
 0x397   :  { %7537 = vmatpush1.bf16.msra.mxu0 %v9343_v28  ;;  %v9394_v28 = vcombine.high %v868_v58, %v872_v8  ;;  %v912_v16 = vld [vmem:[%s14354_s3 + $0x878] sm:$0xff] }
 0x398   :  { %7865 = vmatpush1.bf16.msra.mxu1 %v9345_v30  ;;  %7538 = vmatprep.subr.bf16.mxu0 %v9352_v31  ;;  %v875_v30 = vld [vmem:[%s14354_s3 + $0x750] sm:$0xff] }
 0x399   :  { %7866 = vmatprep.subr.bf16.mxu1 %v9354_v34  ;;  %v879_v31 = vld [vmem:[%s14354_s3 + $0x770] sm:$0xff]  ;;  %v876_v34 = vld [vmem:[%s14354_s3 + $0x758] sm:$0xff] }
 0x39a   :  { %v9400_v35 = vcombine.high %v875_v30, %v879_v31  ;;  %v9399_v46 = vcombine.low %v875_v30, %v879_v31  ;;  %v9401_v48 = vcombine.low %v876_v34, %v880_v29  ;;  %v920_v30 = vld [vmem:[%s14354_s3 + $0x8b8] sm:$0xff] }
 0x39b   :  { %7539 = vmatpush1.bf16.msra.mxu0 %v9351_v38  ;;  %v9402_v38 = vcombine.high %v876_v34, %v880_v29  ;;  %v9433_v34 = vcombine.low %v908_v26, %v912_v16 }
 0x39c   :  { %7867 = vmatpush1.bf16.msra.mxu1 %v9353_v44  ;;  %7540 = vmatprep.subr.bf16.mxu0 %v9360_v41  ;;  %v883_v44 = vld [vmem:[%s14354_s3 + $0x790] sm:$0xff] }
 0x39d   :  { %7868 = vmatprep.subr.bf16.mxu1 %v9362_v51  ;;  %v887_v41 = vld [vmem:[%s14354_s3 + $0x7b0] sm:$0xff]  ;;  %v884_v51 = vld [vmem:[%s14354_s3 + $0x798] sm:$0xff] }
 0x39e   :  { %v9408_v49 = vcombine.high %v883_v44, %v887_v41  ;;  %v9407_v52 = vcombine.low %v883_v44, %v887_v41  ;;  %v9409_v25 = vcombine.low %v884_v51, %v888_v42 }
 0x39f   :  { %7541 = vmatpush1.bf16.msra.mxu0 %v9359_v50  ;;  %v9410_v50 = vcombine.high %v884_v51, %v888_v42  ;;  %v931_v42 = vld [vmem:[%s14354_s3 + $0x910] sm:$0xff] }
 0x3a0   :  { %7869 = vmatpush1.bf16.msra.mxu1 %v9361_v22  ;;  %7542 = vmatprep.subr.bf16.mxu0 %v9368_v54  ;;  %v891_v22 = vld [vmem:[%s14354_s3 + $0x7d0] sm:$0xff] }
 0x3a1   :  { %7870 = vmatprep.subr.bf16.mxu1 %v9370_v55  ;;  %v895_v54 = vld [vmem:[%s14354_s3 + $0x7f0] sm:$0xff]  ;;  %v892_v55 = vld [vmem:[%s14354_s3 + $0x7d8] sm:$0xff] }
 0x3a2   :  { %v9416_v61 = vcombine.high %v891_v22, %v895_v54  ;;  %v9415_v60 = vcombine.low %v891_v22, %v895_v54  ;;  %v9417_v6 = vcombine.low %v892_v55, %v896_v7 }
 0x3a3   :  { %7543 = vmatpush1.bf16.msra.mxu0 %v9367_v62  ;;  %v9418_v62 = vcombine.high %v892_v55, %v896_v7  ;;  %v939_v7 = vld [vmem:[%s14354_s3 + $0x950] sm:$0xff] }
 0x3a4   :  { %7871 = vmatpush1.bf16.msra.mxu1 %v9369_v63  ;;  %7544 = vmatprep.subr.bf16.mxu0 %v9376_v1  ;;  %v899_v63 = vld [vmem:[%s14354_s3 + $0x810] sm:$0xff] }
 0x3a5   :  { %7872 = vmatprep.subr.bf16.mxu1 %v9378_v3  ;;  %v903_v1 = vld [vmem:[%s14354_s3 + $0x830] sm:$0xff]  ;;  %v900_v3 = vld [vmem:[%s14354_s3 + $0x818] sm:$0xff] }
 0x3a6   :  { %v9424_v10 = vcombine.high %v899_v63, %v903_v1  ;;  %v9425_v58 = vcombine.low %v900_v3, %v904_v5 }
 0x3a7   :  { %7545 = vmatpush1.bf16.msra.mxu0 %v9375_v11  ;;  %v9426_v11 = vcombine.high %v900_v3, %v904_v5  ;;  %v947_v5 = vld [vmem:[%s14354_s3 + $0x990] sm:$0xff] }
 0x3a8   :  { %7873 = vmatpush1.bf16.msra.mxu1 %v9377_v13  ;;  %7546 = vmatprep.subr.bf16.mxu0 %v9384_v53  ;;  %v907_v13 = vld [vmem:[%s14354_s3 + $0x850] sm:$0xff] }
 0x3a9   :  { %7874 = vmatprep.subr.bf16.mxu1 %v9386_v14  ;;  %v911_v53 = vld [vmem:[%s14354_s3 + $0x870] sm:$0xff]  ;;  %v9423_v14 = vcombine.low %v899_v63, %v903_v1 }
 0x3aa   :  { %v9432_v8 = vcombine.high %v907_v13, %v911_v53  ;;  %v9431_v31 = vcombine.low %v907_v13, %v911_v53 }
 0x3ab   :  { %7547 = vmatpush1.bf16.msra.mxu0 %v9383_v18  ;;  %v915_v18 = vld [vmem:[%s14354_s3 + $0x890] sm:$0xff] }
 0x3ac   :  { %7875 = vmatpush1.bf16.msra.mxu1 %v9385_v19  ;;  %7548 = vmatprep.subr.bf16.mxu0 %v9392_v27  ;;  %v919_v19 = vld [vmem:[%s14354_s3 + $0x8b0] sm:$0xff]  ;;  %v9434_v27 = vcombine.high %v908_v26, %v912_v16 }
 0x3ad   :  { %7876 = vmatprep.subr.bf16.mxu1 %v9394_v28  ;;  %v916_v28 = vld [vmem:[%s14354_s3 + $0x898] sm:$0xff]  ;;  %v9440_v29 = vcombine.high %v915_v18, %v919_v19  ;;  %v955_v26 = vld [vmem:[%s14354_s3 + $0x9d0] sm:$0xff] }
 0x3ae   :  { %v9441_v44 = vcombine.low %v916_v28, %v920_v30  ;;  %v959_v16 = vld [vmem:[%s14354_s3 + $0x9f0] sm:$0xff] }
 0x3af   :  { %7549 = vmatpush1.bf16.msra.mxu0 %v9391_v17  ;;  %v9442_v17 = vcombine.high %v916_v28, %v920_v30  ;;  %v963_v30 = vld [vmem:[%s14354_s3 + $0xa10] sm:$0xff] }
 0x3b0   :  { %7877 = vmatpush1.bf16.msra.mxu1 %v9393_v43  ;;  %7550 = vmatprep.subr.bf16.mxu0 %v9400_v35  ;;  %v923_v43 = vld [vmem:[%s14354_s3 + $0x8d0] sm:$0xff] }
 0x3b1   :  { %7878 = vmatprep.subr.bf16.mxu1 %v9402_v38  ;;  %v927_v35 = vld [vmem:[%s14354_s3 + $0x8f0] sm:$0xff]  ;;  %v928_v38 = vld [vmem:[%s14354_s3 + $0x8f8] sm:$0xff] }
 0x3b2   :  { %v9448_v41 = vcombine.high %v923_v43, %v927_v35 }
 0x3b3   :  { %7551 = vmatpush1.bf16.msra.mxu0 %v9399_v46  ;;  %v935_v46 = vld [vmem:[%s14354_s3 + $0x930] sm:$0xff] }
 0x3b4   :  { %7879 = vmatpush1.bf16.msra.mxu1 %v9401_v48  ;;  %7552 = vmatprep.subr.bf16.mxu0 %v9408_v49  ;;  %v932_v48 = vld [vmem:[%s14354_s3 + $0x918] sm:$0xff]  ;;  %v9456_v54 = vcombine.high %v931_v42, %v935_v46 }
 0x3b5   :  { %7880 = vmatprep.subr.bf16.mxu1 %v9410_v50  ;;  %v936_v49 = vld [vmem:[%s14354_s3 + $0x938] sm:$0xff]  ;;  %v9447_v50 = vcombine.low %v923_v43, %v927_v35 }
 0x3b6   :  { %v9458_v55 = vcombine.high %v932_v48, %v936_v49  ;;  %v9457_v63 = vcombine.low %v932_v48, %v936_v49  ;;  %v979_v49 = vld [vmem:[%s14354_s3 + $0xa90] sm:$0xff] }
 0x3b7   :  { %7553 = vmatpush1.bf16.msra.mxu0 %v9407_v52  ;;  %v943_v52 = vld [vmem:[%s14354_s3 + $0x970] sm:$0xff] }
 0x3b8   :  { %7881 = vmatpush1.bf16.msra.mxu1 %v9409_v25  ;;  %7554 = vmatprep.subr.bf16.mxu0 %v9416_v61  ;;  %v940_v25 = vld [vmem:[%s14354_s3 + $0x958] sm:$0xff]  ;;  %v9464_v1 = vcombine.high %v939_v7, %v943_v52 }
 0x3b9   :  { %7882 = vmatprep.subr.bf16.mxu1 %v9418_v62  ;;  %v944_v61 = vld [vmem:[%s14354_s3 + $0x978] sm:$0xff]  ;;  %v9455_v62 = vcombine.low %v931_v42, %v935_v46 }
 0x3ba   :  { %v9466_v3 = vcombine.high %v940_v25, %v944_v61  ;;  %v9465_v13 = vcombine.low %v940_v25, %v944_v61  ;;  %v987_v61 = vld [vmem:[%s14354_s3 + $0xad0] sm:$0xff] }
 0x3bb   :  { %7555 = vmatpush1.bf16.msra.mxu0 %v9415_v60  ;;  %v951_v60 = vld [vmem:[%s14354_s3 + $0x9b0] sm:$0xff] }
 0x3bc   :  { %7883 = vmatpush1.bf16.msra.mxu1 %v9417_v6  ;;  %7565 = vmatprep.subr.bf16.mxu0 %v9424_v10  ;;  %v948_v6 = vld [vmem:[%s14354_s3 + $0x998] sm:$0xff]  ;;  %v9472_v53 = vcombine.high %v947_v5, %v951_v60 }
 0x3bd   :  { %7893 = vmatprep.subr.bf16.mxu1 %v9426_v11  ;;  %v952_v10 = vld [vmem:[%s14354_s3 + $0x9b8] sm:$0xff]  ;;  %v9463_v11 = vcombine.low %v939_v7, %v943_v52 }
 0x3be   :  { %7557 = vmatmul.mubr.bf16.vlgmr.msra.gmra.mrb[20].mxu0 %v11208_v56 }
 0x3bf   :  { %7885 = vmatmul.mubr.bf16.vlgmr.msra.gmra.mrb[20].mxu1 %v11208_v56  ;;  %7566 = vmatpush1.bf16.msra.mxu0 %v9423_v14  ;;  %v924_v56 = vld [vmem:[%s14354_s3 + $0x8d8] sm:$0xff]  ;;  %v9474_v14 = vcombine.high %v948_v6, %v952_v10 }
 0x3c0   :  { %7597 = vmatprep.mubr.bf16.mxu0 %v11210_v37  ;;  %7894 = vmatpush1.bf16.msra.mxu1 %v9425_v58  ;;  %v9450_v51 = vcombine.high %v924_v56, %v928_v38  ;;  %v9449_v22 = vcombine.low %v924_v56, %v928_v38  ;;  %v956_v58 = vld [vmem:[%s14354_s3 + $0x9d8] sm:$0xff]  ;;  %v971_v38 = vld [vmem:[%s14354_s3 + $0xa50] sm:$0xff] }
 0x3c1   :  { %7925 = vmatprep.mubr.bf16.mxu1 %v11210_v37  ;;  %7567 = vmatprep.subr.bf16.mxu0 %v9432_v8  ;;  %v9439_v37 = vcombine.low %v915_v18, %v919_v19  ;;  %v960_v8 = vld [vmem:[%s14354_s3 + $0x9f8] sm:$0xff]  ;;  %v9471_v18 = vcombine.low %v947_v5, %v951_v60  ;;  %v9473_v19 = vcombine.low %v948_v6, %v952_v10  ;;  %v995_v10 = vld [vmem:[%s14354_s3 + $0xb10] sm:$0xff] }
 0x3c2   :  { %7895 = vmatprep.subr.bf16.mxu1 %v9434_v27  ;;  %v9480_v27 = vcombine.high %v955_v26, %v959_v16  ;;  %v9482_v28 = vcombine.high %v956_v58, %v960_v8  ;;  %v9481_v43 = vcombine.low %v956_v58, %v960_v8  ;;  %v1003_v8 = vld [vmem:[%s14354_s3 + $0xb50] sm:$0xff] }
 0x3c3   :  { %7568 = vmatpush1.bf16.msra.mxu0 %v9431_v31  ;;  %v967_v31 = vld [vmem:[%s14354_s3 + $0xa30] sm:$0xff] }
 0x3c4   :  { %7896 = vmatpush1.bf16.msra.mxu1 %v9433_v34  ;;  %7569 = vmatprep.subr.bf16.mxu0 %v9440_v29  ;;  %v964_v34 = vld [vmem:[%s14354_s3 + $0xa18] sm:$0xff]  ;;  %v9488_v35 = vcombine.high %v963_v30, %v967_v31 }
 0x3c5   :  { %7897 = vmatprep.subr.bf16.mxu1 %v9442_v17  ;;  %v968_v29 = vld [vmem:[%s14354_s3 + $0xa38] sm:$0xff]  ;;  %v9479_v17 = vcombine.low %v955_v26, %v959_v16 }
 0x3c6   :  { %v9490_v56 = vcombine.high %v964_v34, %v968_v29  ;;  %v9489_v42 = vcombine.low %v964_v34, %v968_v29  ;;  %v1011_v29 = vld [vmem:[%s14354_s3 + $0xb90] sm:$0xff] }
 0x3c7   :  { %7570 = vmatpush1.bf16.msra.mxu0 %v9439_v37  ;;  %v975_v37 = vld [vmem:[%s14354_s3 + $0xa70] sm:$0xff] }
 0x3c8   :  { %7898 = vmatpush1.bf16.msra.mxu1 %v9441_v44  ;;  %7571 = vmatprep.subr.bf16.mxu0 %v9448_v41  ;;  %v972_v44 = vld [vmem:[%s14354_s3 + $0xa58] sm:$0xff]  ;;  %v9496_v46 = vcombine.high %v971_v38, %v975_v37 }
 0x3c9   :  { %7899 = vmatprep.subr.bf16.mxu1 %v9450_v51  ;;  %v976_v41 = vld [vmem:[%s14354_s3 + $0xa78] sm:$0xff]  ;;  %v9487_v51 = vcombine.low %v963_v30, %v967_v31 }
 0x3ca   :  { %v9498_v48 = vcombine.high %v972_v44, %v976_v41  ;;  %v9497_v7 = vcombine.low %v972_v44, %v976_v41  ;;  %v1019_v41 = vld [vmem:[%s14354_s3 + $0xbd0] sm:$0xff] }
 0x3cb   :  { %7572 = vmatpush1.bf16.msra.mxu0 %v9447_v50  ;;  %v983_v50 = vld [vmem:[%s14354_s3 + $0xab0] sm:$0xff] }
 0x3cc   :  { %7900 = vmatpush1.bf16.msra.mxu1 %v9449_v22  ;;  %7573 = vmatprep.subr.bf16.mxu0 %v9456_v54  ;;  %v980_v22 = vld [vmem:[%s14354_s3 + $0xa98] sm:$0xff]  ;;  %v9504_v52 = vcombine.high %v979_v49, %v983_v50 }
 0x3cd   :  { %7901 = vmatprep.subr.bf16.mxu1 %v9458_v55  ;;  %v984_v54 = vld [vmem:[%s14354_s3 + $0xab8] sm:$0xff]  ;;  %v9495_v55 = vcombine.low %v971_v38, %v975_v37 }
 0x3ce   :  { %v9506_v25 = vcombine.high %v980_v22, %v984_v54  ;;  %v9505_v5 = vcombine.low %v980_v22, %v984_v54  ;;  %v1027_v54 = vld [vmem:[%s14354_s3 + $0xc10] sm:$0xff] }
 0x3cf   :  { %7574 = vmatpush1.bf16.msra.mxu0 %v9455_v62  ;;  %v991_v62 = vld [vmem:[%s14354_s3 + $0xaf0] sm:$0xff] }
 0x3d0   :  { %7902 = vmatpush1.bf16.msra.mxu1 %v9457_v63  ;;  %7575 = vmatprep.subr.bf16.mxu0 %v9464_v1  ;;  %v988_v63 = vld [vmem:[%s14354_s3 + $0xad8] sm:$0xff]  ;;  %v9512_v60 = vcombine.high %v987_v61, %v991_v62 }
 0x3d1   :  { %7903 = vmatprep.subr.bf16.mxu1 %v9466_v3  ;;  %v992_v1 = vld [vmem:[%s14354_s3 + $0xaf8] sm:$0xff]  ;;  %v9503_v3 = vcombine.low %v979_v49, %v983_v50 }
 0x3d2   :  { %v9514_v6 = vcombine.high %v988_v63, %v992_v1  ;;  %v9513_v26 = vcombine.low %v988_v63, %v992_v1  ;;  %v1035_v1 = vld [vmem:[%s14354_s3 + $0xc50] sm:$0xff] }
 0x3d3   :  { %7576 = vmatpush1.bf16.msra.mxu0 %v9463_v11  ;;  %v999_v11 = vld [vmem:[%s14354_s3 + $0xb30] sm:$0xff] }
 0x3d4   :  { %7904 = vmatpush1.bf16.msra.mxu1 %v9465_v13  ;;  %7577 = vmatprep.subr.bf16.mxu0 %v9472_v53  ;;  %v996_v13 = vld [vmem:[%s14354_s3 + $0xb18] sm:$0xff]  ;;  %v9520_v16 = vcombine.high %v995_v10, %v999_v11 }
 0x3d5   :  { %7905 = vmatprep.subr.bf16.mxu1 %v9474_v14  ;;  %v1000_v53 = vld [vmem:[%s14354_s3 + $0xb38] sm:$0xff]  ;;  %v9511_v14 = vcombine.low %v987_v61, %v991_v62 }
 0x3d6   :  { %v9522_v58 = vcombine.high %v996_v13, %v1000_v53  ;;  %v9521_v30 = vcombine.low %v996_v13, %v1000_v53  ;;  %v1043_v13 = vld [vmem:[%s14354_s3 + $0xc90] sm:$0xff] }
 0x3d7   :  { %7578 = vmatpush1.bf16.msra.mxu0 %v9471_v18  ;;  %v1007_v18 = vld [vmem:[%s14354_s3 + $0xb70] sm:$0xff] }
 0x3d8   :  { %7906 = vmatpush1.bf16.msra.mxu1 %v9473_v19  ;;  %7579 = vmatprep.subr.bf16.mxu0 %v9480_v27  ;;  %v1004_v19 = vld [vmem:[%s14354_s3 + $0xb58] sm:$0xff]  ;;  %v9528_v31 = vcombine.high %v1003_v8, %v1007_v18  ;;  %v1047_v53 = vld [vmem:[%s14354_s3 + $0xcb0] sm:$0xff] }
 0x3d9   :  { %7907 = vmatprep.subr.bf16.mxu1 %v9482_v28  ;;  %v1008_v27 = vld [vmem:[%s14354_s3 + $0xb78] sm:$0xff]  ;;  %v9519_v28 = vcombine.low %v995_v10, %v999_v11 }
 0x3da   :  { %v9530_v34 = vcombine.high %v1004_v19, %v1008_v27  ;;  %v9529_v38 = vcombine.low %v1004_v19, %v1008_v27  ;;  %v1051_v27 = vld [vmem:[%s14354_s3 + $0xcd0] sm:$0xff] }
 0x3db   :  { %7580 = vmatpush1.bf16.msra.mxu0 %v9479_v17  ;;  %v1015_v17 = vld [vmem:[%s14354_s3 + $0xbb0] sm:$0xff] }
 0x3dc   :  { %7908 = vmatpush1.bf16.msra.mxu1 %v9481_v43  ;;  %7581 = vmatprep.subr.bf16.mxu0 %v9488_v35  ;;  %v1012_v43 = vld [vmem:[%s14354_s3 + $0xb98] sm:$0xff]  ;;  %v9536_v37 = vcombine.high %v1011_v29, %v1015_v17 }
 0x3dd   :  { %7909 = vmatprep.subr.bf16.mxu1 %v9490_v56  ;;  %v1016_v35 = vld [vmem:[%s14354_s3 + $0xbb8] sm:$0xff]  ;;  %v9527_v56 = vcombine.low %v1003_v8, %v1007_v18  ;;  %v9568_v18 = vcombine.high %v1043_v13, %v1047_v53 }
 0x3de   :  { %v9538_v44 = vcombine.high %v1012_v43, %v1016_v35  ;;  %v9537_v49 = vcombine.low %v1012_v43, %v1016_v35  ;;  %v1063_v43 = vld [vmem:[%s14354_s3 + $0xd30] sm:$0xff]  ;;  %v1060_v35 = vld [vmem:[%s14354_s3 + $0xd18] sm:$0xff] }
 0x3df   :  { %7582 = vmatpush1.bf16.msra.mxu0 %v9487_v51  ;;  %v1023_v51 = vld [vmem:[%s14354_s3 + $0xbf0] sm:$0xff] }
 0x3e0   :  { %7910 = vmatpush1.bf16.msra.mxu1 %v9489_v42  ;;  %7583 = vmatprep.subr.bf16.mxu0 %v9496_v46  ;;  %v1020_v42 = vld [vmem:[%s14354_s3 + $0xbd8] sm:$0xff]  ;;  %v9544_v50 = vcombine.high %v1019_v41, %v1023_v51 }
 0x3e1   :  { %7911 = vmatprep.subr.bf16.mxu1 %v9498_v48  ;;  %v1024_v46 = vld [vmem:[%s14354_s3 + $0xbf8] sm:$0xff]  ;;  %v9535_v48 = vcombine.low %v1011_v29, %v1015_v17  ;;  %v1059_v17 = vld [vmem:[%s14354_s3 + $0xd10] sm:$0xff] }
 0x3e2   :  { %v9546_v22 = vcombine.high %v1020_v42, %v1024_v46  ;;  %v9545_v61 = vcombine.low %v1020_v42, %v1024_v46  ;;  %v1071_v42 = vld [vmem:[%s14354_s3 + $0xd70] sm:$0xff]  ;;  %v1068_v46 = vld [vmem:[%s14354_s3 + $0xd58] sm:$0xff] }
 0x3e3   :  { %7584 = vmatpush1.bf16.msra.mxu0 %v9495_v55  ;;  %v1031_v55 = vld [vmem:[%s14354_s3 + $0xc30] sm:$0xff] }
 0x3e4   :  { %7912 = vmatpush1.bf16.msra.mxu1 %v9497_v7  ;;  %7585 = vmatprep.subr.bf16.mxu0 %v9504_v52  ;;  %v1028_v7 = vld [vmem:[%s14354_s3 + $0xc18] sm:$0xff]  ;;  %v9552_v62 = vcombine.high %v1027_v54, %v1031_v55 }
 0x3e5   :  { %7913 = vmatprep.subr.bf16.mxu1 %v9506_v25  ;;  %v1032_v52 = vld [vmem:[%s14354_s3 + $0xc38] sm:$0xff]  ;;  %v9543_v25 = vcombine.low %v1019_v41, %v1023_v51  ;;  %v1067_v51 = vld [vmem:[%s14354_s3 + $0xd50] sm:$0xff] }
 0x3e6   :  { %v9554_v63 = vcombine.high %v1028_v7, %v1032_v52  ;;  %v9553_v10 = vcombine.low %v1028_v7, %v1032_v52  ;;  %v1079_v7 = vld [vmem:[%s14354_s3 + $0xdb0] sm:$0xff]  ;;  %v1076_v52 = vld [vmem:[%s14354_s3 + $0xd98] sm:$0xff] }
 0x3e7   :  { %7586 = vmatpush1.bf16.msra.mxu0 %v9503_v3  ;;  %v1039_v3 = vld [vmem:[%s14354_s3 + $0xc70] sm:$0xff] }
 0x3e8   :  { %7914 = vmatpush1.bf16.msra.mxu1 %v9505_v5  ;;  %7587 = vmatprep.subr.bf16.mxu0 %v9512_v60  ;;  %v9551_v5 = vcombine.low %v1027_v54, %v1031_v55  ;;  %v1036_v60 = vld [vmem:[%s14354_s3 + $0xc58] sm:$0xff]  ;;  %v9560_v11 = vcombine.high %v1035_v1, %v1039_v3  ;;  %v1075_v55 = vld [vmem:[%s14354_s3 + $0xd90] sm:$0xff] }
 0x3e9   :  { %7915 = vmatprep.subr.bf16.mxu1 %v9514_v6  ;;  %v1040_v6 = vld [vmem:[%s14354_s3 + $0xc78] sm:$0xff] }
 0x3ea   :  { %v9561_v8 = vcombine.low %v1036_v60, %v1040_v6 }
 0x3eb   :  { %7588 = vmatpush1.bf16.msra.mxu0 %v9511_v14  ;;  %v9562_v14 = vcombine.high %v1036_v60, %v1040_v6  ;;  %v1087_v60 = vld [vmem:[%s14354_s3 + $0xdf0] sm:$0xff] }
 0x3ec   :  { %7916 = vmatpush1.bf16.msra.mxu1 %v9513_v26  ;;  %7589 = vmatprep.subr.bf16.mxu0 %v9520_v16  ;;  %v1044_v26 = vld [vmem:[%s14354_s3 + $0xc98] sm:$0xff] }
 0x3ed   :  { %7917 = vmatprep.subr.bf16.mxu1 %v9522_v58  ;;  %v1048_v16 = vld [vmem:[%s14354_s3 + $0xcb8] sm:$0xff]  ;;  %v9559_v58 = vcombine.low %v1035_v1, %v1039_v3 }
 0x3ee   :  { %v9570_v19 = vcombine.high %v1044_v26, %v1048_v16 }
 0x3ef   :  { %7590 = vmatpush1.bf16.msra.mxu0 %v9519_v28  ;;  %v1055_v28 = vld [vmem:[%s14354_s3 + $0xcf0] sm:$0xff] }
 0x3f0   :  { %7918 = vmatpush1.bf16.msra.mxu1 %v9521_v30  ;;  %7591 = vmatprep.subr.bf16.mxu0 %v9528_v31  ;;  %v1056_v30 = vld [vmem:[%s14354_s3 + $0xcf8] sm:$0xff]  ;;  %v9569_v31 = vcombine.low %v1044_v26, %v1048_v16  ;;  %v9599_v26 = vcombine.low %v1075_v55, %v1079_v7 }
 0x3f1   :  { %7919 = vmatprep.subr.bf16.mxu1 %v9530_v34  ;;  %v9576_v34 = vcombine.high %v1051_v27, %v1055_v28 }
 0x3f3   :  { %7592 = vmatpush1.bf16.msra.mxu0 %v9527_v56  ;;  %v1064_v56 = vld [vmem:[%s14354_s3 + $0xd38] sm:$0xff] }
 0x3f4   :  { %7920 = vmatpush1.bf16.msra.mxu1 %v9529_v38  ;;  %7593 = vmatprep.subr.bf16.mxu0 %v9536_v37  ;;  %v9575_v38 = vcombine.low %v1051_v27, %v1055_v28  ;;  %v9586_v41 = vcombine.high %v1060_v35, %v1064_v56  ;;  %v1091_v28 = vld [vmem:[%s14354_s3 + $0xe10] sm:$0xff] }
 0x3f5   :  { %7921 = vmatprep.subr.bf16.mxu1 %v9538_v44  ;;  %v9584_v44 = vcombine.high %v1059_v17, %v1063_v43 }
 0x3f7   :  { %7594 = vmatpush1.bf16.msra.mxu0 %v9535_v48  ;;  %v1072_v48 = vld [vmem:[%s14354_s3 + $0xd78] sm:$0xff] }
 0x3f8   :  { %7922 = vmatpush1.bf16.msra.mxu1 %v9537_v49  ;;  %7595 = vmatprep.subr.bf16.mxu0 %v9544_v50  ;;  %v9583_v49 = vcombine.low %v1059_v17, %v1063_v43  ;;  %v9585_v50 = vcombine.low %v1060_v35, %v1064_v56  ;;  %v9594_v54 = vcombine.high %v1068_v46, %v1072_v48  ;;  %v1099_v43 = vld [vmem:[%s14354_s3 + $0xe50] sm:$0xff]  ;;  %v1100_v56 = vld [vmem:[%s14354_s3 + $0xe58] sm:$0xff] }
 0x3f9   :  { %7923 = vmatprep.subr.bf16.mxu1 %v9546_v22  ;;  %v9592_v22 = vcombine.high %v1067_v51, %v1071_v42  ;;  %v1103_v35 = vld [vmem:[%s14354_s3 + $0xe70] sm:$0xff] }
 0x3fb   :  { %7596 = vmatpush1.bf16.msra.mxu0 %v9543_v25  ;;  %v1080_v25 = vld [vmem:[%s14354_s3 + $0xdb8] sm:$0xff] }
 0x3fc   :  { %7924 = vmatpush1.bf16.msra.mxu1 %v9545_v61  ;;  %7606 = vmatprep.subr.bf16.mxu0 %v9552_v62  ;;  %v9591_v61 = vcombine.low %v1067_v51, %v1071_v42  ;;  %v9593_v62 = vcombine.low %v1068_v46, %v1072_v48  ;;  %v9602_v3 = vcombine.high %v1076_v52, %v1080_v25  ;;  %v1107_v42 = vld [vmem:[%s14354_s3 + $0xe90] sm:$0xff]  ;;  %v1108_v48 = vld [vmem:[%s14354_s3 + $0xe98] sm:$0xff] }
 0x3fd   :  { %7934 = vmatprep.subr.bf16.mxu1 %v9554_v63  ;;  %v9600_v63 = vcombine.high %v1075_v55, %v1079_v7  ;;  %v1111_v46 = vld [vmem:[%s14354_s3 + $0xeb0] sm:$0xff] }
 0x3fe   :  { %7598 = vmatmul.mubr.bf16.vlgmr.msra.gmra.mrb[20].mxu0 %v11414_v59  ;;  %v1115_v7 = vld [vmem:[%s14354_s3 + $0xed0] sm:$0xff] }
 0x3ff   :  { %7926 = vmatmul.mubr.bf16.vlgmr.msra.gmra.mrb[20].mxu1 %v11414_v59  ;;  %7607 = vmatpush1.bf16.msra.mxu0 %v9551_v5  ;;  %v1052_v59 = vld [vmem:[%s14354_s3 + $0xcd8] sm:$0xff]  ;;  %v1083_v5 = vld [vmem:[%s14354_s3 + $0xdd0] sm:$0xff] }
 0x400   :  { %7638 = vmatprep.mubr.bf16.mxu0 %v11422_v0  ;;  %7935 = vmatpush1.bf16.msra.mxu1 %v9553_v10  ;;  %v9578_v29 = vcombine.high %v1052_v59, %v1056_v30  ;;  %v9577_v37 = vcombine.low %v1052_v59, %v1056_v30  ;;  %v1095_v59 = vld [vmem:[%s14354_s3 + $0xe30] sm:$0xff]  ;;  %v1092_v30 = vld [vmem:[%s14354_s3 + $0xe18] sm:$0xff] }
 0x401   :  { %7966 = vmatprep.mubr.bf16.mxu1 %v11422_v0  ;;  %7608 = vmatprep.subr.bf16.mxu0 %v9560_v11  ;;  %v9567_v0 = vcombine.low %v1043_v13, %v1047_v53  ;;  %v1084_v11 = vld [vmem:[%s14354_s3 + $0xdd8] sm:$0xff] }
 0x402   :  { %7936 = vmatprep.subr.bf16.mxu1 %v9562_v14  ;;  %v1088_v13 = vld [vmem:[%s14354_s3 + $0xdf8] sm:$0xff] }
 0x403   :  { %7609 = vmatpush1.bf16.msra.mxu0 %v9559_v58  ;;  %v9610_v27 = vcombine.high %v1084_v11, %v1088_v13 }
 0x404   :  { %7937 = vmatpush1.bf16.msra.mxu1 %v9561_v8  ;;  %7610 = vmatprep.subr.bf16.mxu0 %v9568_v18  ;;  %v9601_v8 = vcombine.low %v1076_v52, %v1080_v25  ;;  %v9608_v18 = vcombine.high %v1083_v5, %v1087_v60  ;;  %v1119_v52 = vld [vmem:[%s14354_s3 + $0xef0] sm:$0xff]  ;;  %v1116_v25 = vld [vmem:[%s14354_s3 + $0xed8] sm:$0xff] }
 0x405   :  { %7938 = vmatprep.subr.bf16.mxu1 %v9570_v19 }
 0x407   :  { %7611 = vmatpush1.bf16.msra.mxu0 %v9567_v0  ;;  %v1096_v0 = vld [vmem:[%s14354_s3 + $0xe38] sm:$0xff] }
 0x408   :  { %7939 = vmatpush1.bf16.msra.mxu1 %v9569_v31  ;;  %7612 = vmatprep.subr.bf16.mxu0 %v9576_v34  ;;  %v9607_v31 = vcombine.low %v1083_v5, %v1087_v60  ;;  %v9609_v34 = vcombine.low %v1084_v11, %v1088_v13  ;;  %v9618_v17 = vcombine.high %v1092_v30, %v1096_v0  ;;  %v1123_v60 = vld [vmem:[%s14354_s3 + $0xf10] sm:$0xff]  ;;  %v1124_v13 = vld [vmem:[%s14354_s3 + $0xf18] sm:$0xff] }
 0x409   :  { %7940 = vmatprep.subr.bf16.mxu1 %v9578_v29  ;;  %v9616_v29 = vcombine.high %v1091_v28, %v1095_v59  ;;  %v1127_v11 = vld [vmem:[%s14354_s3 + $0xf30] sm:$0xff] }
 0x40b   :  { %7613 = vmatpush1.bf16.msra.mxu0 %v9575_v38  ;;  %v1104_v38 = vld [vmem:[%s14354_s3 + $0xe78] sm:$0xff] }
 0x40c   :  { %7941 = vmatpush1.bf16.msra.mxu1 %v9577_v37  ;;  %7614 = vmatprep.subr.bf16.mxu0 %v9584_v44  ;;  %v9615_v37 = vcombine.low %v1091_v28, %v1095_v59  ;;  %v9617_v44 = vcombine.low %v1092_v30, %v1096_v0  ;;  %v9626_v51 = vcombine.high %v1100_v56, %v1104_v38  ;;  %v1136_v28 = vld [vmem:[%s14354_s3 + $0xf78] sm:$0xff] }
 0x40d   :  { %7942 = vmatprep.subr.bf16.mxu1 %v9586_v41  ;;  %v9624_v41 = vcombine.high %v1099_v43, %v1103_v35  ;;  %v9647_v59 = vcombine.low %v1123_v60, %v1127_v11 }
 0x40f   :  { %7615 = vmatpush1.bf16.msra.mxu0 %v9583_v49  ;;  %v1112_v49 = vld [vmem:[%s14354_s3 + $0xeb8] sm:$0xff] }
 0x410   :  { %7943 = vmatpush1.bf16.msra.mxu1 %v9585_v50  ;;  %7616 = vmatprep.subr.bf16.mxu0 %v9592_v22  ;;  %v9623_v50 = vcombine.low %v1099_v43, %v1103_v35  ;;  %v9625_v22 = vcombine.low %v1100_v56, %v1104_v38  ;;  %v9634_v55 = vcombine.high %v1108_v48, %v1112_v49  ;;  %v1144_v43 = vld [vmem:[%s14354_s3 + $0xfb8] sm:$0xff] }
 0x411   :  { %v13096_v1 = vpop.f32.mrb[16].mxu0  ;;  %7944 = vmatprep.subr.bf16.mxu1 %v9594_v54  ;;  %v9632_v54 = vcombine.high %v1107_v42, %v1111_v46 }
 0x412   :  { %v13104_v6 = vpop.f32.mrb[16].mxu1  ;;  %v13106_v10 = vpop.f32.mrb[17].mxu0 }
 0x413   :  { %v13114_v53 = vpop.f32.mrb[17].mxu1  ;;  %v7152_v14 = vpop.f32.mrb[18].mxu0  ;;  %7617 = vmatpush1.bf16.msra.mxu0 %v9591_v61  ;;  %v1120_v61 = vld [vmem:[%s14354_s3 + $0xef8] sm:$0xff] }
 0x414   :  { %v7480_v16 = vpop.f32.mrb[18].mxu1  ;;  %7945 = vmatpush1.bf16.msra.mxu1 %v9593_v62  ;;  %v7153_v58 = vpop.f32.mrb[19].mxu0  ;;  %7618 = vmatprep.subr.bf16.mxu0 %v9600_v63  ;;  %v9631_v62 = vcombine.low %v1107_v42, %v1111_v46  ;;  %v9633_v63 = vcombine.low %v1108_v48, %v1112_v49  ;;  %v9642_v5 = vcombine.high %v1116_v25, %v1120_v61  ;;  %v1128_v14 = vld [vmem:[%s14354_s3 + $0xf38] sm:$0xff] }
 0x415   :  { %v7481_v19 = vpop.f32.mrb[19].mxu1  ;;  %7946 = vmatprep.subr.bf16.mxu1 %v9602_v3  ;;  %v9640_v3 = vcombine.high %v1115_v7, %v1119_v52  ;;  %v9641_v16 = vcombine.low %v1116_v25, %v1120_v61  ;;  %v9648_v58 = vcombine.high %v1123_v60, %v1127_v11  ;;  %v9649_v30 = vcombine.low %v1124_v13, %v1128_v14  ;;  %v1152_v42 = vld [vmem:[%s14354_s3 + $0xff8] sm:$0xff] }
 0x416   :  { %v1135_v19 = vld [vmem:[%s14354_s3 + $0xf70] sm:$0xff]  ;;  %v1164_v60 = vld [vmem:[%s14354_s3 + $0x1058] sm:$0xff] }
 0x417   :  { %7619 = vmatpush1.bf16.msra.mxu0 %v9599_v26  ;;  %v9639_v26 = vcombine.low %v1115_v7, %v1119_v52  ;;  %v1160_v7 = vld [vmem:[%s14354_s3 + $0x1038] sm:$0xff] }
 0x418   :  { %7947 = vmatpush1.bf16.msra.mxu1 %v9601_v8  ;;  %7620 = vmatprep.subr.bf16.mxu0 %v9608_v18  ;;  %v9650_v8 = vcombine.high %v1124_v13, %v1128_v14  ;;  %v1131_v18 = vld [vmem:[%s14354_s3 + $0xf50] sm:$0xff]  ;;  %v1168_v11 = vld [vmem:[%s14354_s3 + $0x1078] sm:$0xff] }
 0x419   :  { %7948 = vmatprep.subr.bf16.mxu1 %v9610_v27  ;;  %v1132_v27 = vld [vmem:[%s14354_s3 + $0xf58] sm:$0xff]  ;;  %v9656_v0 = vcombine.high %v1131_v18, %v1135_v19  ;;  %v9655_v35 = vcombine.low %v1131_v18, %v1135_v19 }
 0x41a   :  { %v9657_v56 = vcombine.low %v1132_v27, %v1136_v28  ;;  %v1176_v18 = vld [vmem:[%s14354_s3 + $0x10b8] sm:$0xff] }
 0x41b   :  { %7621 = vmatpush1.bf16.msra.mxu0 %v9607_v31  ;;  %v9658_v31 = vcombine.high %v1132_v27, %v1136_v28  ;;  %v9689_v27 = vcombine.low %v1164_v60, %v1168_v11 }
 0x41c   :  { %7949 = vmatpush1.bf16.msra.mxu1 %v9609_v34  ;;  %7622 = vmatprep.subr.bf16.mxu0 %v9616_v29  ;;  %v1139_v34 = vld [vmem:[%s14354_s3 + $0xf90] sm:$0xff] }
 0x41d   :  { %7950 = vmatprep.subr.bf16.mxu1 %v9618_v17  ;;  %v1143_v29 = vld [vmem:[%s14354_s3 + $0xfb0] sm:$0xff]  ;;  %v1140_v17 = vld [vmem:[%s14354_s3 + $0xf98] sm:$0xff] }
 0x41e   :  { %v9664_v38 = vcombine.high %v1139_v34, %v1143_v29  ;;  %v9663_v46 = vcombine.low %v1139_v34, %v1143_v29  ;;  %v9665_v48 = vcombine.low %v1140_v17, %v1144_v43 }
 0x41f   :  { %7623 = vmatpush1.bf16.msra.mxu0 %v9615_v37  ;;  %v9666_v37 = vcombine.high %v1140_v17, %v1144_v43  ;;  %v1187_v43 = vld [vmem:[%s14354_s3 + $0x1110] sm:$0xff] }
 0x420   :  { %7951 = vmatpush1.bf16.msra.mxu1 %v9617_v44  ;;  %7624 = vmatprep.subr.bf16.mxu0 %v9624_v41  ;;  %v1147_v44 = vld [vmem:[%s14354_s3 + $0xfd0] sm:$0xff] }
 0x421   :  { %7952 = vmatprep.subr.bf16.mxu1 %v9626_v51  ;;  %v1151_v41 = vld [vmem:[%s14354_s3 + $0xff0] sm:$0xff]  ;;  %v1148_v51 = vld [vmem:[%s14354_s3 + $0xfd8] sm:$0xff] }
 0x422   :  { %v9672_v49 = vcombine.high %v1147_v44, %v1151_v41  ;;  %v9671_v52 = vcombine.low %v1147_v44, %v1151_v41  ;;  %v9673_v25 = vcombine.low %v1148_v51, %v1152_v42 }
 0x423   :  { %7625 = vmatpush1.bf16.msra.mxu0 %v9623_v50  ;;  %v9674_v50 = vcombine.high %v1148_v51, %v1152_v42  ;;  %v1195_v42 = vld [vmem:[%s14354_s3 + $0x1150] sm:$0xff] }
 0x424   :  { %7953 = vmatpush1.bf16.msra.mxu1 %v9625_v22  ;;  %7626 = vmatprep.subr.bf16.mxu0 %v9632_v54  ;;  %v1155_v22 = vld [vmem:[%s14354_s3 + $0x1010] sm:$0xff] }
 0x425   :  { %7954 = vmatprep.subr.bf16.mxu1 %v9634_v55  ;;  %v1159_v54 = vld [vmem:[%s14354_s3 + $0x1030] sm:$0xff]  ;;  %v1156_v55 = vld [vmem:[%s14354_s3 + $0x1018] sm:$0xff] }
 0x426   :  { %v9680_v61 = vcombine.high %v1155_v22, %v1159_v54  ;;  %v9681_v13 = vcombine.low %v1156_v55, %v1160_v7 }
 0x427   :  { %7627 = vmatpush1.bf16.msra.mxu0 %v9631_v62  ;;  %v9682_v62 = vcombine.high %v1156_v55, %v1160_v7  ;;  %v1203_v7 = vld [vmem:[%s14354_s3 + $0x1190] sm:$0xff] }
 0x428   :  { %7955 = vmatpush1.bf16.msra.mxu1 %v9633_v63  ;;  %7628 = vmatprep.subr.bf16.mxu0 %v9640_v3  ;;  %v1163_v63 = vld [vmem:[%s14354_s3 + $0x1050] sm:$0xff] }
 0x429   :  { %7956 = vmatprep.subr.bf16.mxu1 %v9642_v5  ;;  %v1167_v3 = vld [vmem:[%s14354_s3 + $0x1070] sm:$0xff]  ;;  %v9679_v5 = vcombine.low %v1155_v22, %v1159_v54 }
 0x42a   :  { %v9688_v14 = vcombine.high %v1163_v63, %v1167_v3  ;;  %v9687_v19 = vcombine.low %v1163_v63, %v1167_v3 }
 0x42b   :  { %7629 = vmatpush1.bf16.msra.mxu0 %v9639_v26  ;;  %v1171_v26 = vld [vmem:[%s14354_s3 + $0x1090] sm:$0xff] }
 0x42c   :  { %7957 = vmatpush1.bf16.msra.mxu1 %v9641_v16  ;;  %7630 = vmatprep.subr.bf16.mxu0 %v9648_v58  ;;  %v1175_v16 = vld [vmem:[%s14354_s3 + $0x10b0] sm:$0xff]  ;;  %v9690_v58 = vcombine.high %v1164_v60, %v1168_v11 }
 0x42d   :  { %7958 = vmatprep.subr.bf16.mxu1 %v9650_v8  ;;  %v1172_v8 = vld [vmem:[%s14354_s3 + $0x1098] sm:$0xff]  ;;  %v9696_v28 = vcombine.high %v1171_v26, %v1175_v16  ;;  %v1211_v60 = vld [vmem:[%s14354_s3 + $0x11d0] sm:$0xff] }
 0x42e   :  { %v9697_v34 = vcombine.low %v1172_v8, %v1176_v18  ;;  %v1215_v11 = vld [vmem:[%s14354_s3 + $0x11f0] sm:$0xff] }
 0x42f   :  { %7631 = vmatpush1.bf16.msra.mxu0 %v9647_v59  ;;  %v9698_v59 = vcombine.high %v1172_v8, %v1176_v18  ;;  %v1219_v18 = vld [vmem:[%s14354_s3 + $0x1210] sm:$0xff] }
 0x430   :  { %7959 = vmatpush1.bf16.msra.mxu1 %v9649_v30  ;;  %7632 = vmatprep.subr.bf16.mxu0 %v9656_v0  ;;  %v1179_v30 = vld [vmem:[%s14354_s3 + $0x10d0] sm:$0xff] }
 0x431   :  { %7960 = vmatprep.subr.bf16.mxu1 %v9658_v31  ;;  %v1183_v0 = vld [vmem:[%s14354_s3 + $0x10f0] sm:$0xff]  ;;  %v1184_v31 = vld [vmem:[%s14354_s3 + $0x10f8] sm:$0xff] }
 0x432   :  { %v9704_v29 = vcombine.high %v1179_v30, %v1183_v0 }
 0x433   :  { %7633 = vmatpush1.bf16.msra.mxu0 %v9655_v35  ;;  %v1191_v35 = vld [vmem:[%s14354_s3 + $0x1130] sm:$0xff] }
 0x434   :  { %7961 = vmatpush1.bf16.msra.mxu1 %v9657_v56  ;;  %7634 = vmatprep.subr.bf16.mxu0 %v9664_v38  ;;  %v1188_v56 = vld [vmem:[%s14354_s3 + $0x1118] sm:$0xff]  ;;  %v9712_v41 = vcombine.high %v1187_v43, %v1191_v35 }
 0x435   :  { %7962 = vmatprep.subr.bf16.mxu1 %v9666_v37  ;;  %v1192_v38 = vld [vmem:[%s14354_s3 + $0x1138] sm:$0xff]  ;;  %v9703_v37 = vcombine.low %v1179_v30, %v1183_v0 }
 0x436   :  { %v9714_v51 = vcombine.high %v1188_v56, %v1192_v38  ;;  %v9713_v22 = vcombine.low %v1188_v56, %v1192_v38  ;;  %v1235_v38 = vld [vmem:[%s14354_s3 + $0x1290] sm:$0xff] }
 0x437   :  { %7635 = vmatpush1.bf16.msra.mxu0 %v9663_v46  ;;  %v1199_v46 = vld [vmem:[%s14354_s3 + $0x1170] sm:$0xff] }
 0x438   :  { %7963 = vmatpush1.bf16.msra.mxu1 %v9665_v48  ;;  %7636 = vmatprep.subr.bf16.mxu0 %v9672_v49  ;;  %v1196_v48 = vld [vmem:[%s14354_s3 + $0x1158] sm:$0xff]  ;;  %v9720_v54 = vcombine.high %v1195_v42, %v1199_v46 }
 0x439   :  { %7964 = vmatprep.subr.bf16.mxu1 %v9674_v50  ;;  %v1200_v49 = vld [vmem:[%s14354_s3 + $0x1178] sm:$0xff]  ;;  %v9711_v50 = vcombine.low %v1187_v43, %v1191_v35 }
 0x43a   :  { %v9722_v55 = vcombine.high %v1196_v48, %v1200_v49  ;;  %v9721_v63 = vcombine.low %v1196_v48, %v1200_v49  ;;  %v1243_v49 = vld [vmem:[%s14354_s3 + $0x12d0] sm:$0xff] }
 0x43b   :  { %7637 = vmatpush1.bf16.msra.mxu0 %v9671_v52  ;;  %v1207_v52 = vld [vmem:[%s14354_s3 + $0x11b0] sm:$0xff] }
 0x43c   :  { %7965 = vmatpush1.bf16.msra.mxu1 %v9673_v25  ;;  %7647 = vmatprep.subr.bf16.mxu0 %v9680_v61  ;;  %v1204_v25 = vld [vmem:[%s14354_s3 + $0x1198] sm:$0xff]  ;;  %v9728_v3 = vcombine.high %v1203_v7, %v1207_v52 }
 0x43d   :  { %7975 = vmatprep.subr.bf16.mxu1 %v9682_v62  ;;  %v1208_v61 = vld [vmem:[%s14354_s3 + $0x11b8] sm:$0xff]  ;;  %v9719_v62 = vcombine.low %v1195_v42, %v1199_v46 }
 0x43e   :  { %7639 = vmatmul.mubr.bf16.vlgmr.msra.gmra.mrb[20].mxu0 %v11627_v15 }
 0x43f   :  { %7967 = vmatmul.mubr.bf16.vlgmr.msra.gmra.mrb[20].mxu1 %v11627_v15  ;;  %7648 = vmatpush1.bf16.msra.mxu0 %v9679_v5  ;;  %v1180_v15 = vld [vmem:[%s14354_s3 + $0x10d8] sm:$0xff]  ;;  %v9730_v5 = vcombine.high %v1204_v25, %v1208_v61 }
 0x440   :  { %7679 = vmatprep.mubr.bf16.mxu0 %v11635_v20  ;;  %7976 = vmatpush1.bf16.msra.mxu1 %v9681_v13  ;;  %v9706_v17 = vcombine.high %v1180_v15, %v1184_v31  ;;  %v9705_v44 = vcombine.low %v1180_v15, %v1184_v31  ;;  %v1212_v13 = vld [vmem:[%s14354_s3 + $0x11d8] sm:$0xff]  ;;  %v1227_v31 = vld [vmem:[%s14354_s3 + $0x1250] sm:$0xff] }
 0x441   :  { %8007 = vmatprep.mubr.bf16.mxu1 %v11635_v20  ;;  %7649 = vmatprep.subr.bf16.mxu0 %v9688_v14  ;;  %v9695_v20 = vcombine.low %v1171_v26, %v1175_v16  ;;  %v1216_v14 = vld [vmem:[%s14354_s3 + $0x11f8] sm:$0xff]  ;;  %v9727_v26 = vcombine.low %v1203_v7, %v1207_v52  ;;  %v9729_v16 = vcombine.low %v1204_v25, %v1208_v61  ;;  %v1251_v61 = vld [vmem:[%s14354_s3 + $0x1310] sm:$0xff] }
 0x442   :  { %7977 = vmatprep.subr.bf16.mxu1 %v9690_v58  ;;  %v9736_v58 = vcombine.high %v1211_v60, %v1215_v11  ;;  %v9738_v8 = vcombine.high %v1212_v13, %v1216_v14  ;;  %v9737_v30 = vcombine.low %v1212_v13, %v1216_v14  ;;  %v1259_v14 = vld [vmem:[%s14354_s3 + $0x1350] sm:$0xff] }
 0x443   :  { %7650 = vmatpush1.bf16.msra.mxu0 %v9687_v19  ;;  %v1223_v19 = vld [vmem:[%s14354_s3 + $0x1230] sm:$0xff] }
 0x444   :  { %7978 = vmatpush1.bf16.msra.mxu1 %v9689_v27  ;;  %7651 = vmatprep.subr.bf16.mxu0 %v9696_v28  ;;  %v1220_v27 = vld [vmem:[%s14354_s3 + $0x1218] sm:$0xff]  ;;  %v9744_v0 = vcombine.high %v1219_v18, %v1223_v19 }
 0x445   :  { %7979 = vmatprep.subr.bf16.mxu1 %v9698_v59  ;;  %v1224_v28 = vld [vmem:[%s14354_s3 + $0x1238] sm:$0xff]  ;;  %v9735_v59 = vcombine.low %v1211_v60, %v1215_v11 }
 0x446   :  { %v9746_v15 = vcombine.high %v1220_v27, %v1224_v28  ;;  %v9745_v43 = vcombine.low %v1220_v27, %v1224_v28  ;;  %v1267_v28 = vld [vmem:[%s14354_s3 + $0x1390] sm:$0xff] }
 0x447   :  { %7652 = vmatpush1.bf16.msra.mxu0 %v9695_v20  ;;  %v1231_v20 = vld [vmem:[%s14354_s3 + $0x1270] sm:$0xff] }
 0x448   :  { %7980 = vmatpush1.bf16.msra.mxu1 %v9697_v34  ;;  %7653 = vmatprep.subr.bf16.mxu0 %v9704_v29  ;;  %v1228_v34 = vld [vmem:[%s14354_s3 + $0x1258] sm:$0xff]  ;;  %v9752_v35 = vcombine.high %v1227_v31, %v1231_v20 }
 0x449   :  { %7981 = vmatprep.subr.bf16.mxu1 %v9706_v17  ;;  %v1232_v29 = vld [vmem:[%s14354_s3 + $0x1278] sm:$0xff]  ;;  %v9743_v17 = vcombine.low %v1219_v18, %v1223_v19 }
 0x44a   :  { %v9754_v56 = vcombine.high %v1228_v34, %v1232_v29  ;;  %v9753_v42 = vcombine.low %v1228_v34, %v1232_v29  ;;  %v1275_v29 = vld [vmem:[%s14354_s3 + $0x13d0] sm:$0xff] }
 0x44b   :  { %7654 = vmatpush1.bf16.msra.mxu0 %v9703_v37  ;;  %v1239_v37 = vld [vmem:[%s14354_s3 + $0x12b0] sm:$0xff] }
 0x44c   :  { %7982 = vmatpush1.bf16.msra.mxu1 %v9705_v44  ;;  %7655 = vmatprep.subr.bf16.mxu0 %v9712_v41  ;;  %v1236_v44 = vld [vmem:[%s14354_s3 + $0x1298] sm:$0xff]  ;;  %v9760_v46 = vcombine.high %v1235_v38, %v1239_v37 }
 0x44d   :  { %7983 = vmatprep.subr.bf16.mxu1 %v9714_v51  ;;  %v1240_v41 = vld [vmem:[%s14354_s3 + $0x12b8] sm:$0xff]  ;;  %v9751_v51 = vcombine.low %v1227_v31, %v1231_v20 }
 0x44e   :  { %v9762_v48 = vcombine.high %v1236_v44, %v1240_v41  ;;  %v9761_v7 = vcombine.low %v1236_v44, %v1240_v41  ;;  %v1283_v41 = vld [vmem:[%s14354_s3 + $0x1410] sm:$0xff] }
 0x44f   :  { %7656 = vmatpush1.bf16.msra.mxu0 %v9711_v50  ;;  %v1247_v50 = vld [vmem:[%s14354_s3 + $0x12f0] sm:$0xff] }
 0x450   :  { %7984 = vmatpush1.bf16.msra.mxu1 %v9713_v22  ;;  %7657 = vmatprep.subr.bf16.mxu0 %v9720_v54  ;;  %v1244_v22 = vld [vmem:[%s14354_s3 + $0x12d8] sm:$0xff]  ;;  %v9768_v52 = vcombine.high %v1243_v49, %v1247_v50 }
 0x451   :  { %7985 = vmatprep.subr.bf16.mxu1 %v9722_v55  ;;  %v1248_v54 = vld [vmem:[%s14354_s3 + $0x12f8] sm:$0xff]  ;;  %v9759_v55 = vcombine.low %v1235_v38, %v1239_v37 }
 0x452   :  { %v9770_v25 = vcombine.high %v1244_v22, %v1248_v54  ;;  %v9769_v60 = vcombine.low %v1244_v22, %v1248_v54  ;;  %v1291_v54 = vld [vmem:[%s14354_s3 + $0x1450] sm:$0xff] }
 0x453   :  { %7658 = vmatpush1.bf16.msra.mxu0 %v9719_v62  ;;  %v1255_v62 = vld [vmem:[%s14354_s3 + $0x1330] sm:$0xff] }
 0x454   :  { %7986 = vmatpush1.bf16.msra.mxu1 %v9721_v63  ;;  %7659 = vmatprep.subr.bf16.mxu0 %v9728_v3  ;;  %v1252_v63 = vld [vmem:[%s14354_s3 + $0x1318] sm:$0xff]  ;;  %v9776_v11 = vcombine.high %v1251_v61, %v1255_v62 }
 0x455   :  { %7987 = vmatprep.subr.bf16.mxu1 %v9730_v5  ;;  %v1256_v3 = vld [vmem:[%s14354_s3 + $0x1338] sm:$0xff]  ;;  %v9767_v5 = vcombine.low %v1243_v49, %v1247_v50 }
 0x456   :  { %v9778_v13 = vcombine.high %v1252_v63, %v1256_v3  ;;  %v9777_v18 = vcombine.low %v1252_v63, %v1256_v3  ;;  %v1299_v63 = vld [vmem:[%s14354_s3 + $0x1490] sm:$0xff] }
 0x457   :  { %7660 = vmatpush1.bf16.msra.mxu0 %v9727_v26  ;;  %v1263_v26 = vld [vmem:[%s14354_s3 + $0x1370] sm:$0xff] }
 0x458   :  { %7988 = vmatpush1.bf16.msra.mxu1 %v9729_v16  ;;  %7661 = vmatprep.subr.bf16.mxu0 %v9736_v58  ;;  %v1260_v16 = vld [vmem:[%s14354_s3 + $0x1358] sm:$0xff]  ;;  %v9784_v19 = vcombine.high %v1259_v14, %v1263_v26  ;;  %v1303_v3 = vld [vmem:[%s14354_s3 + $0x14b0] sm:$0xff] }
 0x459   :  { %7989 = vmatprep.subr.bf16.mxu1 %v9738_v8  ;;  %v1264_v58 = vld [vmem:[%s14354_s3 + $0x1378] sm:$0xff]  ;;  %v9775_v8 = vcombine.low %v1251_v61, %v1255_v62 }
 0x45a   :  { %v9786_v27 = vcombine.high %v1260_v16, %v1264_v58  ;;  %v9785_v31 = vcombine.low %v1260_v16, %v1264_v58  ;;  %v1307_v58 = vld [vmem:[%s14354_s3 + $0x14d0] sm:$0xff] }
 0x45b   :  { %7662 = vmatpush1.bf16.msra.mxu0 %v9735_v59  ;;  %v1271_v59 = vld [vmem:[%s14354_s3 + $0x13b0] sm:$0xff] }
 0x45c   :  { %7990 = vmatpush1.bf16.msra.mxu1 %v9737_v30  ;;  %7663 = vmatprep.subr.bf16.mxu0 %v9744_v0  ;;  %v1268_v30 = vld [vmem:[%s14354_s3 + $0x1398] sm:$0xff]  ;;  %v9792_v20 = vcombine.high %v1267_v28, %v1271_v59 }
 0x45d   :  { %7991 = vmatprep.subr.bf16.mxu1 %v9746_v15  ;;  %v1272_v0 = vld [vmem:[%s14354_s3 + $0x13b8] sm:$0xff]  ;;  %v9783_v15 = vcombine.low %v1259_v14, %v1263_v26  ;;  %v9824_v26 = vcombine.high %v1299_v63, %v1303_v3 }
 0x45e   :  { %v9794_v34 = vcombine.high %v1268_v30, %v1272_v0  ;;  %v9793_v38 = vcombine.low %v1268_v30, %v1272_v0  ;;  %v1319_v30 = vld [vmem:[%s14354_s3 + $0x1530] sm:$0xff]  ;;  %v1316_v0 = vld [vmem:[%s14354_s3 + $0x1518] sm:$0xff] }
 0x45f   :  { %7664 = vmatpush1.bf16.msra.mxu0 %v9743_v17  ;;  %v1279_v17 = vld [vmem:[%s14354_s3 + $0x13f0] sm:$0xff] }
 0x460   :  { %7992 = vmatpush1.bf16.msra.mxu1 %v9745_v43  ;;  %7665 = vmatprep.subr.bf16.mxu0 %v9752_v35  ;;  %v1276_v43 = vld [vmem:[%s14354_s3 + $0x13d8] sm:$0xff]  ;;  %v9800_v37 = vcombine.high %v1275_v29, %v1279_v17 }
 0x461   :  { %7993 = vmatprep.subr.bf16.mxu1 %v9754_v56  ;;  %v1280_v35 = vld [vmem:[%s14354_s3 + $0x13f8] sm:$0xff]  ;;  %v9791_v56 = vcombine.low %v1267_v28, %v1271_v59  ;;  %v1315_v59 = vld [vmem:[%s14354_s3 + $0x1510] sm:$0xff] }
 0x462   :  { %v9802_v44 = vcombine.high %v1276_v43, %v1280_v35  ;;  %v9801_v49 = vcombine.low %v1276_v43, %v1280_v35  ;;  %v1327_v43 = vld [vmem:[%s14354_s3 + $0x1570] sm:$0xff]  ;;  %v1324_v35 = vld [vmem:[%s14354_s3 + $0x1558] sm:$0xff] }
 0x463   :  { %7666 = vmatpush1.bf16.msra.mxu0 %v9751_v51  ;;  %v1287_v51 = vld [vmem:[%s14354_s3 + $0x1430] sm:$0xff] }
 0x464   :  { %7994 = vmatpush1.bf16.msra.mxu1 %v9753_v42  ;;  %7667 = vmatprep.subr.bf16.mxu0 %v9760_v46  ;;  %v1284_v42 = vld [vmem:[%s14354_s3 + $0x1418] sm:$0xff]  ;;  %v9808_v50 = vcombine.high %v1283_v41, %v1287_v51 }
 0x465   :  { %7995 = vmatprep.subr.bf16.mxu1 %v9762_v48  ;;  %v1288_v46 = vld [vmem:[%s14354_s3 + $0x1438] sm:$0xff]  ;;  %v9799_v48 = vcombine.low %v1275_v29, %v1279_v17  ;;  %v1323_v17 = vld [vmem:[%s14354_s3 + $0x1550] sm:$0xff] }
 0x466   :  { %v9810_v22 = vcombine.high %v1284_v42, %v1288_v46  ;;  %v9809_v61 = vcombine.low %v1284_v42, %v1288_v46  ;;  %v1335_v42 = vld [vmem:[%s14354_s3 + $0x15b0] sm:$0xff]  ;;  %v1332_v46 = vld [vmem:[%s14354_s3 + $0x1598] sm:$0xff] }
 0x467   :  { %7668 = vmatpush1.bf16.msra.mxu0 %v9759_v55  ;;  %v1295_v55 = vld [vmem:[%s14354_s3 + $0x1470] sm:$0xff] }
 0x468   :  { %7996 = vmatpush1.bf16.msra.mxu1 %v9761_v7  ;;  %7669 = vmatprep.subr.bf16.mxu0 %v9768_v52  ;;  %v9807_v7 = vcombine.low %v1283_v41, %v1287_v51  ;;  %v1292_v52 = vld [vmem:[%s14354_s3 + $0x1458] sm:$0xff]  ;;  %v9816_v62 = vcombine.high %v1291_v54, %v1295_v55  ;;  %v1331_v51 = vld [vmem:[%s14354_s3 + $0x1590] sm:$0xff] }
 0x469   :  { %7997 = vmatprep.subr.bf16.mxu1 %v9770_v25  ;;  %v1296_v25 = vld [vmem:[%s14354_s3 + $0x1478] sm:$0xff] }
 0x46a   :  { %v9817_v14 = vcombine.low %v1292_v52, %v1296_v25 }
 0x46b   :  { %7670 = vmatpush1.bf16.msra.mxu0 %v9767_v5  ;;  %v9818_v5 = vcombine.high %v1292_v52, %v1296_v25  ;;  %v1340_v52 = vld [vmem:[%s14354_s3 + $0x15d8] sm:$0xff] }
 0x46c   :  { %7998 = vmatpush1.bf16.msra.mxu1 %v9769_v60  ;;  %7671 = vmatprep.subr.bf16.mxu0 %v9776_v11  ;;  %v1300_v60 = vld [vmem:[%s14354_s3 + $0x1498] sm:$0xff] }
 0x46d   :  { %7999 = vmatprep.subr.bf16.mxu1 %v9778_v13  ;;  %v1304_v11 = vld [vmem:[%s14354_s3 + $0x14b8] sm:$0xff]  ;;  %v9815_v13 = vcombine.low %v1291_v54, %v1295_v55  ;;  %v1339_v55 = vld [vmem:[%s14354_s3 + $0x15d0] sm:$0xff] }
 0x46e   :  { %v9826_v16 = vcombine.high %v1300_v60, %v1304_v11  ;;  %v1344_v25 = vld [vmem:[%s14354_s3 + $0x15f8] sm:$0xff] }
 0x46f   :  { %7672 = vmatpush1.bf16.msra.mxu0 %v9775_v8  ;;  %v1311_v8 = vld [vmem:[%s14354_s3 + $0x14f0] sm:$0xff] }
 0x470   :  { %8000 = vmatpush1.bf16.msra.mxu1 %v9777_v18  ;;  %7673 = vmatprep.subr.bf16.mxu0 %v9784_v19  ;;  %v1312_v18 = vld [vmem:[%s14354_s3 + $0x14f8] sm:$0xff]  ;;  %v9825_v19 = vcombine.low %v1300_v60, %v1304_v11  ;;  %v1351_v60 = vld [vmem:[%s14354_s3 + $0x1630] sm:$0xff] }
 0x471   :  { %8001 = vmatprep.subr.bf16.mxu1 %v9786_v27  ;;  %v9832_v27 = vcombine.high %v1307_v58, %v1311_v8  ;;  %v1348_v11 = vld [vmem:[%s14354_s3 + $0x1618] sm:$0xff] }
 0x473   :  { %7674 = vmatpush1.bf16.msra.mxu0 %v9783_v15  ;;  %v1320_v15 = vld [vmem:[%s14354_s3 + $0x1538] sm:$0xff] }
 0x474   :  { %8002 = vmatpush1.bf16.msra.mxu1 %v9785_v31  ;;  %7675 = vmatprep.subr.bf16.mxu0 %v9792_v20  ;;  %v9831_v31 = vcombine.low %v1307_v58, %v1311_v8  ;;  %v9842_v29 = vcombine.high %v1316_v0, %v1320_v15  ;;  %v1355_v8 = vld [vmem:[%s14354_s3 + $0x1650] sm:$0xff] }
 0x475   :  { %8003 = vmatprep.subr.bf16.mxu1 %v9794_v34  ;;  %v9840_v34 = vcombine.high %v1315_v59, %v1319_v30 }
 0x477   :  { %7676 = vmatpush1.bf16.msra.mxu0 %v9791_v56  ;;  %v1328_v56 = vld [vmem:[%s14354_s3 + $0x1578] sm:$0xff] }
 0x478   :  { %8004 = vmatpush1.bf16.msra.mxu1 %v9793_v38  ;;  %7677 = vmatprep.subr.bf16.mxu0 %v9800_v37  ;;  %v9839_v38 = vcombine.low %v1315_v59, %v1319_v30  ;;  %v9841_v37 = vcombine.low %v1316_v0, %v1320_v15  ;;  %v9850_v41 = vcombine.high %v1324_v35, %v1328_v56  ;;  %v1363_v30 = vld [vmem:[%s14354_s3 + $0x1690] sm:$0xff]  ;;  %v1364_v15 = vld [vmem:[%s14354_s3 + $0x1698] sm:$0xff] }
 0x479   :  { %8005 = vmatprep.subr.bf16.mxu1 %v9802_v44  ;;  %v9848_v44 = vcombine.high %v1323_v17, %v1327_v43  ;;  %v1367_v0 = vld [vmem:[%s14354_s3 + $0x16b0] sm:$0xff] }
 0x47b   :  { %7678 = vmatpush1.bf16.msra.mxu0 %v9799_v48  ;;  %v1336_v48 = vld [vmem:[%s14354_s3 + $0x15b8] sm:$0xff] }
 0x47c   :  { %8006 = vmatpush1.bf16.msra.mxu1 %v9801_v49  ;;  %7688 = vmatprep.subr.bf16.mxu0 %v9808_v50  ;;  %v9847_v49 = vcombine.low %v1323_v17, %v1327_v43  ;;  %v9849_v50 = vcombine.low %v1324_v35, %v1328_v56  ;;  %v9858_v54 = vcombine.high %v1332_v46, %v1336_v48  ;;  %v1371_v43 = vld [vmem:[%s14354_s3 + $0x16d0] sm:$0xff]  ;;  %v1372_v56 = vld [vmem:[%s14354_s3 + $0x16d8] sm:$0xff] }
 0x47d   :  { %8016 = vmatprep.subr.bf16.mxu1 %v9810_v22  ;;  %v9856_v22 = vcombine.high %v1331_v51, %v1335_v42  ;;  %v1375_v35 = vld [vmem:[%s14354_s3 + $0x16f0] sm:$0xff] }
 0x47e   :  { %7680 = vmatmul.mubr.bf16.vlgmr.msra.gmra.mrb[20].mxu0 %v11830_v36 }
 0x47f   :  { %8008 = vmatmul.mubr.bf16.vlgmr.msra.gmra.mrb[20].mxu1 %v11830_v36  ;;  %7689 = vmatpush1.bf16.msra.mxu0 %v9807_v7  ;;  %v1308_v36 = vld [vmem:[%s14354_s3 + $0x14d8] sm:$0xff]  ;;  %v1343_v7 = vld [vmem:[%s14354_s3 + $0x15f0] sm:$0xff] }
 0x480   :  { %7720 = vmatprep.mubr.bf16.mxu0 %v11840_v47  ;;  %8017 = vmatpush1.bf16.msra.mxu1 %v9809_v61  ;;  %v9834_v28 = vcombine.high %v1308_v36, %v1312_v18  ;;  %v9833_v20 = vcombine.low %v1308_v36, %v1312_v18  ;;  %v9855_v61 = vcombine.low %v1331_v51, %v1335_v42  ;;  %v1359_v36 = vld [vmem:[%s14354_s3 + $0x1670] sm:$0xff]  ;;  %v1356_v18 = vld [vmem:[%s14354_s3 + $0x1658] sm:$0xff] }
 0x481   :  { %8048 = vmatprep.mubr.bf16.mxu1 %v11840_v47  ;;  %7690 = vmatprep.subr.bf16.mxu0 %v9816_v62  ;;  %v9823_v47 = vcombine.low %v1299_v63, %v1303_v3  ;;  %v9857_v62 = vcombine.low %v1332_v46, %v1336_v48  ;;  %v9864_v63 = vcombine.high %v1339_v55, %v1343_v7  ;;  %v1379_v42 = vld [vmem:[%s14354_s3 + $0x1710] sm:$0xff]  ;;  %v1380_v48 = vld [vmem:[%s14354_s3 + $0x1718] sm:$0xff] }
 0x482   :  { %8018 = vmatprep.subr.bf16.mxu1 %v9818_v5  ;;  %v9866_v3 = vcombine.high %v1340_v52, %v1344_v25  ;;  %v1347_v5 = vld [vmem:[%s14354_s3 + $0x1610] sm:$0xff] }
 0x483   :  { %7691 = vmatpush1.bf16.msra.mxu0 %v9815_v13  ;;  %v1352_v13 = vld [vmem:[%s14354_s3 + $0x1638] sm:$0xff]  ;;  %v1383_v46 = vld [vmem:[%s14354_s3 + $0x1730] sm:$0xff] }
 0x484   :  { %8019 = vmatpush1.bf16.msra.mxu1 %v9817_v14  ;;  %7692 = vmatprep.subr.bf16.mxu0 %v9824_v26  ;;  %v9863_v14 = vcombine.low %v1339_v55, %v1343_v7  ;;  %v9865_v26 = vcombine.low %v1340_v52, %v1344_v25  ;;  %v9874_v58 = vcombine.high %v1348_v11, %v1352_v13  ;;  %v1387_v7 = vld [vmem:[%s14354_s3 + $0x1750] sm:$0xff]  ;;  %v1388_v25 = vld [vmem:[%s14354_s3 + $0x1758] sm:$0xff] }
 0x485   :  { %8020 = vmatprep.subr.bf16.mxu1 %v9826_v16  ;;  %v9872_v16 = vcombine.high %v1347_v5, %v1351_v60  ;;  %v1391_v52 = vld [vmem:[%s14354_s3 + $0x1770] sm:$0xff] }
 0x487   :  { %7693 = vmatpush1.bf16.msra.mxu0 %v9823_v47  ;;  %v1360_v47 = vld [vmem:[%s14354_s3 + $0x1678] sm:$0xff] }
 0x488   :  { %8021 = vmatpush1.bf16.msra.mxu1 %v9825_v19  ;;  %7694 = vmatprep.subr.bf16.mxu0 %v9832_v27  ;;  %v9871_v19 = vcombine.low %v1347_v5, %v1351_v60  ;;  %v9873_v27 = vcombine.low %v1348_v11, %v1352_v13  ;;  %v9882_v59 = vcombine.high %v1356_v18, %v1360_v47  ;;  %v1395_v60 = vld [vmem:[%s14354_s3 + $0x1790] sm:$0xff]  ;;  %v1396_v13 = vld [vmem:[%s14354_s3 + $0x1798] sm:$0xff] }
 0x489   :  { %8022 = vmatprep.subr.bf16.mxu1 %v9834_v28  ;;  %v9880_v28 = vcombine.high %v1355_v8, %v1359_v36  ;;  %v1399_v11 = vld [vmem:[%s14354_s3 + $0x17b0] sm:$0xff] }
 0x48b   :  { %7695 = vmatpush1.bf16.msra.mxu0 %v9831_v31  ;;  %v1368_v31 = vld [vmem:[%s14354_s3 + $0x16b8] sm:$0xff] }
 0x48c   :  { %8023 = vmatpush1.bf16.msra.mxu1 %v9833_v20  ;;  %7696 = vmatprep.subr.bf16.mxu0 %v9840_v34  ;;  %v9879_v20 = vcombine.low %v1355_v8, %v1359_v36  ;;  %v9881_v34 = vcombine.low %v1356_v18, %v1360_v47  ;;  %v9890_v17 = vcombine.high %v1364_v15, %v1368_v31  ;;  %v1403_v36 = vld [vmem:[%s14354_s3 + $0x17d0] sm:$0xff]  ;;  %v1404_v47 = vld [vmem:[%s14354_s3 + $0x17d8] sm:$0xff] }
 0x48d   :  { %8024 = vmatprep.subr.bf16.mxu1 %v9842_v29  ;;  %v9888_v29 = vcombine.high %v1363_v30, %v1367_v0  ;;  %v1407_v18 = vld [vmem:[%s14354_s3 + $0x17f0] sm:$0xff] }
 0x48f   :  { %7697 = vmatpush1.bf16.msra.mxu0 %v9839_v38  ;;  %v1376_v38 = vld [vmem:[%s14354_s3 + $0x16f8] sm:$0xff] }
 0x490   :  { %8025 = vmatpush1.bf16.msra.mxu1 %v9841_v37  ;;  %7698 = vmatprep.subr.bf16.mxu0 %v9848_v44  ;;  %v9887_v37 = vcombine.low %v1363_v30, %v1367_v0  ;;  %v9889_v44 = vcombine.low %v1364_v15, %v1368_v31  ;;  %v9898_v51 = vcombine.high %v1372_v56, %v1376_v38  ;;  %v1411_v0 = vld [vmem:[%s14354_s3 + $0x1810] sm:$0xff]  ;;  %v1412_v31 = vld [vmem:[%s14354_s3 + $0x1818] sm:$0xff] }
 0x491   :  { %8026 = vmatprep.subr.bf16.mxu1 %v9850_v41  ;;  %v9896_v41 = vcombine.high %v1371_v43, %v1375_v35  ;;  %v1415_v15 = vld [vmem:[%s14354_s3 + $0x1830] sm:$0xff] }
 0x493   :  { %7699 = vmatpush1.bf16.msra.mxu0 %v9847_v49  ;;  %v1384_v49 = vld [vmem:[%s14354_s3 + $0x1738] sm:$0xff] }
 0x494   :  { %8027 = vmatpush1.bf16.msra.mxu1 %v9849_v50  ;;  %7700 = vmatprep.subr.bf16.mxu0 %v9856_v22  ;;  %v9895_v50 = vcombine.low %v1371_v43, %v1375_v35  ;;  %v9897_v22 = vcombine.low %v1372_v56, %v1376_v38  ;;  %v9906_v55 = vcombine.high %v1380_v48, %v1384_v49  ;;  %v1419_v35 = vld [vmem:[%s14354_s3 + $0x1850] sm:$0xff] }
 0x495   :  { %8028 = vmatprep.subr.bf16.mxu1 %v9858_v54  ;;  %v9904_v54 = vcombine.high %v1379_v42, %v1383_v46  ;;  %v1423_v56 = vld [vmem:[%s14354_s3 + $0x1870] sm:$0xff]  ;;  %v9935_v38 = vcombine.low %v1411_v0, %v1415_v15 }
 0x497   :  { %7701 = vmatpush1.bf16.msra.mxu0 %v9855_v61  ;;  %v1392_v61 = vld [vmem:[%s14354_s3 + $0x1778] sm:$0xff] }
 0x498   :  { %8029 = vmatpush1.bf16.msra.mxu1 %v9857_v62  ;;  %7702 = vmatprep.subr.bf16.mxu0 %v9864_v63  ;;  %v9903_v62 = vcombine.low %v1379_v42, %v1383_v46  ;;  %v9905_v63 = vcombine.low %v1380_v48, %v1384_v49  ;;  %v9914_v5 = vcombine.high %v1388_v25, %v1392_v61  ;;  %v1427_v42 = vld [vmem:[%s14354_s3 + $0x1890] sm:$0xff]  ;;  %v1428_v49 = vld [vmem:[%s14354_s3 + $0x1898] sm:$0xff] }
 0x499   :  { %8030 = vmatprep.subr.bf16.mxu1 %v9866_v3  ;;  %v9912_v3 = vcombine.high %v1387_v7, %v1391_v52  ;;  %v1431_v46 = vld [vmem:[%s14354_s3 + $0x18b0] sm:$0xff] }
 0x49b   :  { %7703 = vmatpush1.bf16.msra.mxu0 %v9863_v14  ;;  %v1400_v14 = vld [vmem:[%s14354_s3 + $0x17b8] sm:$0xff] }
 0x49c   :  { %8031 = vmatpush1.bf16.msra.mxu1 %v9865_v26  ;;  %7704 = vmatprep.subr.bf16.mxu0 %v9872_v16  ;;  %v9911_v26 = vcombine.low %v1387_v7, %v1391_v52  ;;  %v9913_v16 = vcombine.low %v1388_v25, %v1392_v61  ;;  %v9922_v8 = vcombine.high %v1396_v13, %v1400_v14  ;;  %v1435_v52 = vld [vmem:[%s14354_s3 + $0x18d0] sm:$0xff]  ;;  %v1440_v61 = vld [vmem:[%s14354_s3 + $0x18f8] sm:$0xff] }
 0x49d   :  { %8032 = vmatprep.subr.bf16.mxu1 %v9874_v58  ;;  %v9920_v58 = vcombine.high %v1395_v60, %v1399_v11  ;;  %v1439_v25 = vld [vmem:[%s14354_s3 + $0x18f0] sm:$0xff] }
 0x49f   :  { %7705 = vmatpush1.bf16.msra.mxu0 %v9871_v19  ;;  %v1408_v19 = vld [vmem:[%s14354_s3 + $0x17f8] sm:$0xff] }
 0x4a0   :  { %8033 = vmatpush1.bf16.msra.mxu1 %v9873_v27  ;;  %7706 = vmatprep.subr.bf16.mxu0 %v9880_v28  ;;  %v9919_v27 = vcombine.low %v1395_v60, %v1399_v11  ;;  %v9921_v28 = vcombine.low %v1396_v13, %v1400_v14  ;;  %v9930_v30 = vcombine.high %v1404_v47, %v1408_v19  ;;  %v1447_v60 = vld [vmem:[%s14354_s3 + $0x1930] sm:$0xff]  ;;  %v1444_v11 = vld [vmem:[%s14354_s3 + $0x1918] sm:$0xff] }
 0x4a1   :  { %8034 = vmatprep.subr.bf16.mxu1 %v9882_v59  ;;  %v9928_v59 = vcombine.high %v1403_v36, %v1407_v18  ;;  %v1448_v13 = vld [vmem:[%s14354_s3 + $0x1938] sm:$0xff]  ;;  %v9959_v14 = vcombine.low %v1435_v52, %v1439_v25 }
 0x4a3   :  { %7707 = vmatpush1.bf16.msra.mxu0 %v9879_v20  ;;  %v1416_v20 = vld [vmem:[%s14354_s3 + $0x1838] sm:$0xff] }
 0x4a4   :  { %8035 = vmatpush1.bf16.msra.mxu1 %v9881_v34  ;;  %7708 = vmatprep.subr.bf16.mxu0 %v9888_v29  ;;  %v9927_v34 = vcombine.low %v1403_v36, %v1407_v18  ;;  %v9929_v29 = vcombine.low %v1404_v47, %v1408_v19  ;;  %v9938_v43 = vcombine.high %v1412_v31, %v1416_v20  ;;  %v1455_v36 = vld [vmem:[%s14354_s3 + $0x1970] sm:$0xff]  ;;  %v1452_v18 = vld [vmem:[%s14354_s3 + $0x1958] sm:$0xff] }
 0x4a5   :  { %8036 = vmatprep.subr.bf16.mxu1 %v9890_v17  ;;  %v9936_v17 = vcombine.high %v1411_v0, %v1415_v15  ;;  %v1456_v47 = vld [vmem:[%s14354_s3 + $0x1978] sm:$0xff]  ;;  %v1459_v0 = vld [vmem:[%s14354_s3 + $0x1990] sm:$0xff] }
 0x4a6   :  { %v1463_v15 = vld [vmem:[%s14354_s3 + $0x19b0] sm:$0xff] }
 0x4a7   :  { %7709 = vmatpush1.bf16.msra.mxu0 %v9887_v37  ;;  %v1420_v37 = vld [vmem:[%s14354_s3 + $0x1858] sm:$0xff] }
 0x4a8   :  { %8037 = vmatpush1.bf16.msra.mxu1 %v9889_v44  ;;  %7710 = vmatprep.subr.bf16.mxu0 %v9896_v41  ;;  %v1424_v44 = vld [vmem:[%s14354_s3 + $0x1878] sm:$0xff]  ;;  %v9937_v41 = vcombine.low %v1412_v31, %v1416_v20 }
 0x4a9   :  { %8038 = vmatprep.subr.bf16.mxu1 %v9898_v51  ;;  %v9944_v51 = vcombine.high %v1419_v35, %v1423_v56  ;;  %v9946_v48 = vcombine.high %v1420_v37, %v1424_v44  ;;  %v1460_v31 = vld [vmem:[%s14354_s3 + $0x1998] sm:$0xff] }
 0x4aa   :  { %v1464_v20 = vld [vmem:[%s14354_s3 + $0x19b8] sm:$0xff] }
 0x4ab   :  { %7711 = vmatpush1.bf16.msra.mxu0 %v9895_v50  ;;  %v1432_v50 = vld [vmem:[%s14354_s3 + $0x18b8] sm:$0xff] }
 0x4ac   :  { %8039 = vmatpush1.bf16.msra.mxu1 %v9897_v22  ;;  %7712 = vmatprep.subr.bf16.mxu0 %v9904_v54  ;;  %v9943_v22 = vcombine.low %v1419_v35, %v1423_v56  ;;  %v9945_v54 = vcombine.low %v1420_v37, %v1424_v44  ;;  %v9954_v7 = vcombine.high %v1428_v49, %v1432_v50  ;;  %v1471_v37 = vld [vmem:[%s14354_s3 + $0x19f0] sm:$0xff]  ;;  %v1468_v44 = vld [vmem:[%s14354_s3 + $0x19d8] sm:$0xff] }
 0x4ad   :  { %8040 = vmatprep.subr.bf16.mxu1 %v9906_v55  ;;  %v9952_v55 = vcombine.high %v1427_v42, %v1431_v46  ;;  %v9984_v35 = vcombine.high %v1459_v0, %v1463_v15  ;;  %v9986_v56 = vcombine.high %v1460_v31, %v1464_v20 }
 0x4af   :  { %7713 = vmatpush1.bf16.msra.mxu0 %v9903_v62  ;;  %v9953_v62 = vcombine.low %v1428_v49, %v1432_v50 }
 0x4b0   :  { %8041 = vmatpush1.bf16.msra.mxu1 %v9905_v63  ;;  %7714 = vmatprep.subr.bf16.mxu0 %v9912_v3  ;;  %v9960_v63 = vcombine.high %v1435_v52, %v1439_v25 }
 0x4b1   :  { %8042 = vmatprep.subr.bf16.mxu1 %v9914_v5  ;;  %v1443_v5 = vld [vmem:[%s14354_s3 + $0x1910] sm:$0xff] }
 0x4b2   :  { %v9967_v19 = vcombine.low %v1443_v5, %v1447_v60 }
 0x4b3   :  { %7715 = vmatpush1.bf16.msra.mxu0 %v9911_v26 }
 0x4b4   :  { %8043 = vmatpush1.bf16.msra.mxu1 %v9913_v16  ;;  %7716 = vmatprep.subr.bf16.mxu0 %v9920_v58  ;;  %v9968_v16 = vcombine.high %v1443_v5, %v1447_v60  ;;  %v9970_v58 = vcombine.high %v1444_v11, %v1448_v13  ;;  %v1488_v5 = vld [vmem:[%s14354_s3 + $0x1a78] sm:$0xff] }
 0x4b5   :  { %8044 = vmatprep.subr.bf16.mxu1 %v9922_v8  ;;  %v1451_v8 = vld [vmem:[%s14354_s3 + $0x1950] sm:$0xff] }
 0x4b7   :  { %7717 = vmatpush1.bf16.msra.mxu0 %v9919_v27  ;;  %v13683_v27 = vld [vmem:[%s14355_s4] sm:$0xff] }
 0x4b8   :  { %8045 = vmatpush1.bf16.msra.mxu1 %v9921_v28  ;;  %7718 = vmatprep.subr.bf16.mxu0 %v9928_v59  ;;  %v9969_v28 = vcombine.low %v1444_v11, %v1448_v13  ;;  %v9976_v59 = vcombine.high %v1451_v8, %v1455_v36 }
 0x4b9   :  { %8046 = vmatprep.subr.bf16.mxu1 %v9930_v30  ;;  %v9978_v30 = vcombine.high %v1452_v18, %v1456_v47 }
 0x4bb   :  { %7719 = vmatpush1.bf16.msra.mxu0 %v9927_v34  ;;  %v1674_v34 = vrot.slane %v13683_v27, %v10917_v23 }
 0x4bc   :  { %8047 = vmatpush1.bf16.msra.mxu1 %v9929_v29  ;;  %7729 = vmatprep.subr.bf16.mxu0 %v9936_v17  ;;  %v9975_v29 = vcombine.low %v1451_v8, %v1455_v36  ;;  %v1682_v17 = vrot.slane %v13683_v27, %v10920_v24  ;;  %v1492_v36 = vld [vmem:[%s14354_s3 + $0x1a98] sm:$0xff] }
 0x4bd   :  { %8057 = vmatprep.subr.bf16.mxu1 %v9938_v43  ;;  %v9977_v43 = vcombine.low %v1452_v18, %v1456_v47  ;;  %v1496_v18 = vld [vmem:[%s14354_s3 + $0x1ab8] sm:$0xff] }
 0x4be   :  { %7721 = vmatmul.mubr.bf16.vlgmr.msra.gmra.mrb[20].mxu0 %v12034_v33 }
 0x4bf   :  { %8049 = vmatmul.mubr.bf16.vlgmr.msra.gmra.mrb[20].mxu1 %v12034_v33  ;;  %7730 = vmatpush1.bf16.msra.mxu0 %v9935_v38  ;;  %v1436_v33 = vld [vmem:[%s14354_s3 + $0x18d8] sm:$0xff]  ;;  %v1467_v38 = vld [vmem:[%s14354_s3 + $0x19d0] sm:$0xff] }
 0x4c0   :  { %7761 = vmatprep.mubr.bf16.mxu0 %v12044_v57  ;;  %8058 = vmatpush1.bf16.msra.mxu1 %v9937_v41  ;;  %v9962_v3 = vcombine.high %v1436_v33, %v1440_v61  ;;  %v9961_v26 = vcombine.low %v1436_v33, %v1440_v61  ;;  %v1472_v41 = vld [vmem:[%s14354_s3 + $0x19f8] sm:$0xff]  ;;  %v9992_v49 = vcombine.high %v1467_v38, %v1471_v37 }
 0x4c1   :  { %8089 = vmatprep.mubr.bf16.mxu1 %v12044_v57  ;;  %7731 = vmatprep.subr.bf16.mxu0 %v9944_v51  ;;  %v9951_v57 = vcombine.low %v1427_v42, %v1431_v46  ;;  %v13714_v51 = vadd.f32 %v13106_v10, %v1674_v34  ;;  %v9983_v42 = vcombine.low %v1459_v0, %v1463_v15  ;;  %v1479_v10 = vld [vmem:[%s14354_s3 + $0x1a30] sm:$0xff]  ;;  %v1504_v34 = vld [vmem:[%s14354_s3 + $0x1af8] sm:$0xff] }
 0x4c2   :  { %8059 = vmatprep.subr.bf16.mxu1 %v9946_v48  ;;  %v13717_v46 = vadd.f32 %v13114_v53, %v1682_v17  ;;  %v9985_v48 = vcombine.low %v1460_v31, %v1464_v20  ;;  %v9994_v50 = vcombine.high %v1468_v44, %v1472_v41  ;;  %v1480_v53 = vld [vmem:[%s14354_s3 + $0x1a38] sm:$0xff]  ;;  %v9993_v25 = vcombine.low %v1468_v44, %v1472_v41  ;;  %v1499_v0 = vld [vmem:[%s14354_s3 + $0x1ad0] sm:$0xff] }
 0x4c3   :  { %7732 = vmatpush1.bf16.msra.mxu0 %v9943_v22  ;;  %v1475_v22 = vld [vmem:[%s14354_s3 + $0x1a10] sm:$0xff]  ;;  %v1500_v20 = vld [vmem:[%s14354_s3 + $0x1ad8] sm:$0xff] }
 0x4c4   :  { %8060 = vmatpush1.bf16.msra.mxu1 %v9945_v54  ;;  %7733 = vmatprep.subr.bf16.mxu0 %v9952_v55  ;;  %v1476_v54 = vld [vmem:[%s14354_s3 + $0x1a18] sm:$0xff]  ;;  %v8148_v55 = vsel %vm246_vm2, %v13714_v51, 0.0  ;;  %v8162_v52 = vsel %vm246_vm2, %v13717_v46, 0.0  ;;  %v10000_v33 = vcombine.high %v1475_v22, %v1479_v10  ;;  %v9999_v11 = vcombine.low %v1475_v22, %v1479_v10  ;;  %v1503_v15 = vld [vmem:[%s14354_s3 + $0x1af0] sm:$0xff] }
 0x4c5   :  { %8061 = vmatprep.subr.bf16.mxu1 %v9954_v7  ;;  %v9991_v7 = vcombine.low %v1467_v38, %v1471_v37  ;;  %v10002_v61 = vcombine.high %v1476_v54, %v1480_v53  ;;  %v8163_v60 = vrot.slane %v8162_v52, 4  ;;  %v10001_v13 = vcombine.low %v1476_v54, %v1480_v53  ;;  %v1507_v38 = vld [vmem:[%s14354_s3 + $0x1b10] sm:$0xff]  ;;  %v1508_v41 = vld [vmem:[%s14354_s3 + $0x1b18] sm:$0xff] }
 0x4c6   :  { %v1511_v37 = vld [vmem:[%s14354_s3 + $0x1b30] sm:$0xff] }
 0x4c7   :  { %7734 = vmatpush1.bf16.msra.mxu0 %v9951_v57  ;;  %v1483_v57 = vld [vmem:[%s14354_s3 + $0x1a50] sm:$0xff]  ;;  %v8164_v47 = vadd.f32 %v8163_v60, %v8162_v52  ;;  %v10032_v22 = vcombine.high %v1507_v38, %v1511_v37  ;;  %v1520_v52 = vld [vmem:[%s14354_s3 + $0x1b78] sm:$0xff]  ;;  %v1678_v60 = vrot.slane %v13683_v27, %v10992_v4 }
 0x4c8   :  { %8062 = vmatpush1.bf16.msra.mxu1 %v9953_v62  ;;  %7735 = vmatprep.subr.bf16.mxu0 %v9960_v63  ;;  %v1487_v62 = vld [vmem:[%s14354_s3 + $0x1a70] sm:$0xff]  ;;  %v8149_v63 = vrot.slane %v8148_v55, 4 }
 0x4c9   :  { %8063 = vmatprep.subr.bf16.mxu1 %v9962_v3  ;;  %v1484_v3 = vld [vmem:[%s14354_s3 + $0x1a58] sm:$0xff]  ;;  %v1515_v54 = vld [vmem:[%s14354_s3 + $0x1b50] sm:$0xff] }
 0x4ca   :  { %v8150_v8 = vadd.f32 %v8149_v63, %v8148_v55  ;;  %v1519_v53 = vld [vmem:[%s14354_s3 + $0x1b70] sm:$0xff] }
 0x4cb   :  { %7736 = vmatpush1.bf16.msra.mxu0 %v9959_v14  ;;  %v10008_v14 = vcombine.high %v1483_v57, %v1487_v62 }
 0x4cc   :  { %8064 = vmatpush1.bf16.msra.mxu1 %v9961_v26  ;;  %7737 = vmatprep.subr.bf16.mxu0 %v9968_v16  ;;  %v10010_v26 = vcombine.high %v1484_v3, %v1488_v5  ;;  %v1491_v16 = vld [vmem:[%s14354_s3 + $0x1a90] sm:$0xff]  ;;  %v8151_v31 = vrot.slane %v8150_v8, 2 }
 0x4cd   :  { %8065 = vmatprep.subr.bf16.mxu1 %v9970_v58  ;;  %v1495_v58 = vld [vmem:[%s14354_s3 + $0x1ab0] sm:$0xff] }
 0x4ce   :  { %v10015_v17 = vcombine.low %v1491_v16, %v1495_v58  ;;  %v8152_v44 = vadd.f32 %v8151_v31, %v8150_v8 }
 0x4cf   :  { %7738 = vmatpush1.bf16.msra.mxu0 %v9967_v19  ;;  %v10007_v19 = vcombine.low %v1483_v57, %v1487_v62  ;;  %v10040_v57 = vcombine.high %v1515_v54, %v1519_v53  ;;  %v1670_v62 = vrot.slane %v13683_v27, %v10909_v21 }
 0x4d0   :  { %8066 = vmatpush1.bf16.msra.mxu1 %v9969_v28  ;;  %7739 = vmatprep.subr.bf16.mxu0 %v9976_v59  ;;  %v10009_v28 = vcombine.low %v1484_v3, %v1488_v5  ;;  %v10016_v59 = vcombine.high %v1491_v16, %v1495_v58  ;;  %v8153_v55 = vrot.slane %v8152_v44, 1  ;;  %v1523_v3 = vld [vmem:[%s14354_s3 + $0x1b90] sm:$0xff]  ;;  %v10039_v16 = vcombine.low %v1515_v54, %v1519_v53  ;;  %v1548_v54 = vld [vmem:[%s14354_s3 + $0x1c58] sm:$0xff] }
 0x4d1   :  { %8067 = vmatprep.subr.bf16.mxu1 %v9978_v30  ;;  %v10018_v30 = vcombine.high %v1492_v36, %v1496_v18  ;;  %v1527_v5 = vld [vmem:[%s14354_s3 + $0x1bb0] sm:$0xff]  ;;  %v1552_v53 = vld [vmem:[%s14354_s3 + $0x1c78] sm:$0xff] }
 0x4d2   :  { %v10048_v8 = vcombine.high %v1523_v3, %v1527_v5 }
 0x4d3   :  { %7740 = vmatpush1.bf16.msra.mxu0 %v9975_v29  ;;  %v8165_v29 = vrot.slane %v8164_v47, 2 }
 0x4d4   :  { %8068 = vmatpush1.bf16.msra.mxu1 %v9977_v43  ;;  %7741 = vmatprep.subr.bf16.mxu0 %v9984_v35  ;;  %v10017_v43 = vcombine.low %v1492_v36, %v1496_v18  ;;  %v10024_v35 = vcombine.high %v1499_v0, %v1503_v15  ;;  %v13812_v36 = vadd.f32 %v13096_v1, %v1670_v62  ;;  %v1531_v18 = vld [vmem:[%s14354_s3 + $0x1bd0] sm:$0xff]  ;;  %v1536_v1 = vld [vmem:[%s14354_s3 + $0x1bf8] sm:$0xff] }
 0x4d5   :  { %8069 = vmatprep.subr.bf16.mxu1 %v9986_v56  ;;  %v10026_v56 = vcombine.high %v1500_v20, %v1504_v34  ;;  %v10074_v62 = vcombine.high %v1548_v54, %v1552_v53 }
 0x4d7   :  { %7742 = vmatpush1.bf16.msra.mxu0 %v9983_v42  ;;  %v1512_v42 = vld [vmem:[%s14354_s3 + $0x1b38] sm:$0xff] }
 0x4d8   :  { %8070 = vmatpush1.bf16.msra.mxu1 %v9985_v48  ;;  %7743 = vmatprep.subr.bf16.mxu0 %v9992_v49  ;;  %v8166_v48 = vadd.f32 %v8165_v29, %v8164_v47  ;;  %v10023_v49 = vcombine.low %v1499_v0, %v1503_v15  ;;  %v10034_v10 = vcombine.high %v1508_v41, %v1512_v42  ;;  %v1535_v47 = vld [vmem:[%s14354_s3 + $0x1bf0] sm:$0xff] }
 0x4d9   :  { %8071 = vmatprep.subr.bf16.mxu1 %v9994_v50  ;;  %v10025_v50 = vcombine.low %v1500_v20, %v1504_v34  ;;  %v10047_v0 = vcombine.low %v1523_v3, %v1527_v5  ;;  %v10056_v31 = vcombine.high %v1531_v18, %v1535_v47  ;;  %v1539_v34 = vld [vmem:[%s14354_s3 + $0x1c10] sm:$0xff]  ;;  %v1560_v3 = vld [vmem:[%s14354_s3 + $0x1cb8] sm:$0xff] }
 0x4da   :  { %v1543_v29 = vld [vmem:[%s14354_s3 + $0x1c30] sm:$0xff] }
 0x4db   :  { %7744 = vmatpush1.bf16.msra.mxu0 %v9991_v7  ;;  %v1516_v7 = vld [vmem:[%s14354_s3 + $0x1b58] sm:$0xff] }
 0x4dc   :  { %8072 = vmatpush1.bf16.msra.mxu1 %v9993_v25  ;;  %7745 = vmatprep.subr.bf16.mxu0 %v10000_v33  ;;  %v8167_v25 = vrot.slane %v8166_v48, 1  ;;  %v10031_v33 = vcombine.low %v1507_v38, %v1511_v37  ;;  %v10042_v63 = vcombine.high %v1516_v7, %v1520_v52  ;;  %v10041_v58 = vcombine.low %v1516_v7, %v1520_v52 }
 0x4dd   :  { %8073 = vmatprep.subr.bf16.mxu1 %v10002_v61  ;;  %v10033_v61 = vcombine.low %v1508_v41, %v1512_v42  ;;  %v10055_v37 = vcombine.low %v1531_v18, %v1535_v47  ;;  %v10064_v42 = vcombine.high %v1539_v34, %v1543_v29  ;;  %v1564_v18 = vld [vmem:[%s14354_s3 + $0x1cd8] sm:$0xff] }
 0x4df   :  { %7746 = vmatpush1.bf16.msra.mxu0 %v9999_v11  ;;  %v8154_v11 = vadd.f32 %v8153_v55, %v8152_v44 }
 0x4e0   :  { %8074 = vmatpush1.bf16.msra.mxu1 %v10001_v13  ;;  %7747 = vmatprep.subr.bf16.mxu0 %v10008_v14  ;;  %v1524_v13 = vld [vmem:[%s14354_s3 + $0x1b98] sm:$0xff] }
 0x4e1   :  { %8075 = vmatprep.subr.bf16.mxu1 %v10010_v26  ;;  %v1528_v14 = vld [vmem:[%s14354_s3 + $0x1bb8] sm:$0xff]  ;;  %v8168_v26 = vadd.f32 %v8167_v25, %v8166_v48 }
 0x4e2   :  { %v10050_v27 = vcombine.high %v1524_v13, %v1528_v14  ;;  %v10049_v15 = vcombine.low %v1524_v13, %v1528_v14  ;;  %v10073_v13 = vcombine.low %v1548_v54, %v1552_v53 }
 0x4e3   :  { %7748 = vmatpush1.bf16.msra.mxu0 %v10007_v19  ;;  %v13821_v19 = vadd.f32 %v13104_v6, %v1678_v60  ;;  %v8141_v6 = vsel %vm246_vm2, %v13812_v36, 0.0 }
 0x4e4   :  { %8076 = vmatpush1.bf16.msra.mxu1 %v10009_v28  ;;  %7749 = vmatprep.subr.bf16.mxu0 %v10016_v59  ;;  %v8199_v28 = vmul.f32 0.5, %v8154_v11  ;;  %v1532_v59 = vld [vmem:[%s14354_s3 + $0x1bd8] sm:$0xff]  ;;  %v8142_v44 = vrot.slane %v8141_v6, 4 }
 0x4e5   :  { %8077 = vmatprep.subr.bf16.mxu1 %v10018_v30  ;;  %v8201_v30 = vmul.f32 0.5, %v8168_v26  ;;  %v10058_v20 = vcombine.high %v1532_v59, %v1536_v1  ;;  %v10057_v41 = vcombine.low %v1532_v59, %v1536_v1 }
 0x4e6   :  { %v8143_v55 = vadd.f32 %v8142_v44, %v8141_v6  ;;  %v1575_v6 = vld [vmem:[%s14354_s3 + $0x1d30] sm:$0xff] }
 0x4e7   :  { %7750 = vmatpush1.bf16.msra.mxu0 %v10015_v17  ;;  %v8155_v17 = vsel %vm246_vm2, %v13821_v19, 0.0  ;;  %v13849_v38 = vsub.f32 %v13717_v46, %v8201_v30  ;;  %v1551_v46 = vld [vmem:[%s14354_s3 + $0x1c70] sm:$0xff] }
 0x4e8   :  { %8078 = vmatpush1.bf16.msra.mxu1 %v10017_v43  ;;  %7751 = vmatprep.subr.bf16.mxu0 %v10024_v35  ;;  %v13840_v43 = vsub.f32 %v13714_v51, %v8199_v28  ;;  %v1540_v35 = vld [vmem:[%s14354_s3 + $0x1c18] sm:$0xff]  ;;  %v8156_v51 = vrot.slane %v8155_v17, 4  ;;  %v8144_v11 = vrot.slane %v8143_v55, 2 }
 0x4e9   :  { %8079 = vmatprep.subr.bf16.mxu1 %v10026_v56  ;;  %v1544_v56 = vld [vmem:[%s14354_s3 + $0x1c38] sm:$0xff] }
 0x4ea   :  { %v10066_v48 = vcombine.high %v1540_v35, %v1544_v56  ;;  %v10065_v7 = vcombine.low %v1540_v35, %v1544_v56  ;;  %v8157_v52 = vadd.f32 %v8156_v51, %v8155_v17  ;;  %v8145_v28 = vadd.f32 %v8144_v11, %v8143_v55  ;;  %v1579_v51 = vld [vmem:[%s14354_s3 + $0x1d50] sm:$0xff] }
 0x4eb   :  { %7752 = vmatpush1.bf16.msra.mxu0 %v10023_v49  ;;  %v8215_v49 = vmul.f32 %v13840_v43, %v13840_v43 }
 0x4ec   :  { %8080 = vmatpush1.bf16.msra.mxu1 %v10025_v50  ;;  %7753 = vmatprep.subr.bf16.mxu0 %v10032_v22  ;;  %v1547_v50 = vld [vmem:[%s14354_s3 + $0x1c50] sm:$0xff]  ;;  %v8217_v22 = vmul.f32 %v13849_v38, %v13849_v38  ;;  %v8158_v26 = vrot.slane %v8157_v52, 2  ;;  %v8146_v35 = vrot.slane %v8145_v28, 1 }
 0x4ed   :  { %8081 = vmatprep.subr.bf16.mxu1 %v10034_v10  ;;  %v10063_v10 = vcombine.low %v1539_v34, %v1543_v29  ;;  %v10072_v25 = vcombine.high %v1547_v50, %v1551_v46  ;;  %v10071_v60 = vcombine.low %v1547_v50, %v1551_v46  ;;  %v1572_v34 = vld [vmem:[%s14354_s3 + $0x1d18] sm:$0xff] }
 0x4ee   :  { %v8243_v5 = vsel %vm246_vm2, %v8217_v22, 0.0  ;;  %v8159_v30 = vadd.f32 %v8158_v26, %v8157_v52  ;;  %v1576_v29 = vld [vmem:[%s14354_s3 + $0x1d38] sm:$0xff]  ;;  %v1595_v26 = vld [vmem:[%s14354_s3 + $0x1dd0] sm:$0xff] }
 0x4ef   :  { %7754 = vmatpush1.bf16.msra.mxu0 %v10031_v33  ;;  %v1555_v33 = vld [vmem:[%s14354_s3 + $0x1c90] sm:$0xff]  ;;  %v1580_v50 = vld [vmem:[%s14354_s3 + $0x1d58] sm:$0xff]  ;;  %v10097_v54 = vcombine.low %v1572_v34, %v1576_v29 }
 0x4f0   :  { %8082 = vmatpush1.bf16.msra.mxu1 %v10033_v61  ;;  %7755 = vmatprep.subr.bf16.mxu0 %v10040_v57  ;;  %v1559_v61 = vld [vmem:[%s14354_s3 + $0x1cb0] sm:$0xff]  ;;  %v8229_v57 = vsel %vm246_vm2, %v8215_v49, 0.0  ;;  %v8160_v44 = vrot.slane %v8159_v30, 1  ;;  %v1584_v46 = vld [vmem:[%s14354_s3 + $0x1d78] sm:$0xff] }
 0x4f1   :  { %8083 = vmatprep.subr.bf16.mxu1 %v10042_v63  ;;  %v1556_v63 = vld [vmem:[%s14354_s3 + $0x1c98] sm:$0xff]  ;;  %v10080_v14 = vcombine.high %v1555_v33, %v1559_v61  ;;  %v10079_v47 = vcombine.low %v1555_v33, %v1559_v61  ;;  %v10106_v52 = vcombine.high %v1580_v50, %v1584_v46  ;;  %v1591_v33 = vld [vmem:[%s14354_s3 + $0x1db0] sm:$0xff] }
 0x4f2   :  { %v10081_v59 = vcombine.low %v1556_v63, %v1560_v3  ;;  %v8161_v55 = vadd.f32 %v8160_v44, %v8159_v30  ;;  %v1603_v30 = vld [vmem:[%s14354_s3 + $0x1e10] sm:$0xff] }
 0x4f3   :  { %7756 = vmatpush1.bf16.msra.mxu0 %v10039_v16  ;;  %v8230_v16 = vrot.slane %v8229_v57, 4 }
 0x4f4   :  { %8084 = vmatpush1.bf16.msra.mxu1 %v10041_v58  ;;  %7757 = vmatprep.subr.bf16.mxu0 %v10048_v8  ;;  %v10082_v58 = vcombine.high %v1556_v63, %v1560_v3  ;;  %v1563_v8 = vld [vmem:[%s14354_s3 + $0x1cd0] sm:$0xff]  ;;  %v8200_v11 = vmul.f32 0.5, %v8161_v55 }
 0x4f5   :  { %8085 = vmatprep.subr.bf16.mxu1 %v10050_v27  ;;  %v8244_v27 = vrot.slane %v8243_v5, 4 }
 0x4f7   :  { %7758 = vmatpush1.bf16.msra.mxu0 %v10047_v0  ;;  %v8231_v0 = vadd.f32 %v8230_v16, %v8229_v57  ;;  %v1588_v57 = vld [vmem:[%s14354_s3 + $0x1d98] sm:$0xff]  ;;  %v1599_v16 = vld [vmem:[%s14354_s3 + $0x1df0] sm:$0xff] }
 0x4f8   :  { %8086 = vmatpush1.bf16.msra.mxu1 %v10049_v15  ;;  %7759 = vmatprep.subr.bf16.mxu0 %v10056_v31  ;;  %v1571_v31 = vld [vmem:[%s14354_s3 + $0x1d10] sm:$0xff] }
 0x4f9   :  { %8087 = vmatprep.subr.bf16.mxu1 %v10058_v20  ;;  %v8245_v20 = vadd.f32 %v8244_v27, %v8243_v5  ;;  %v10095_v22 = vcombine.low %v1571_v31, %v1575_v6  ;;  %v10105_v5 = vcombine.low %v1580_v50, %v1584_v46 }
 0x4fb   :  { %7760 = vmatpush1.bf16.msra.mxu0 %v10055_v37  ;;  %v10096_v37 = vcombine.high %v1571_v31, %v1575_v6  ;;  %v8246_v49 = vrot.slane %v8245_v20, 2  ;;  %v10119_v31 = vcombine.low %v1595_v26, %v1599_v16 }
 0x4fc   :  { %8088 = vmatpush1.bf16.msra.mxu1 %v10057_v41  ;;  %7770 = vmatprep.subr.bf16.mxu0 %v10064_v42  ;;  %v8232_v41 = vrot.slane %v8231_v0, 2  ;;  %v10098_v42 = vcombine.high %v1572_v34, %v1576_v29 }
 0x4fd   :  { %8098 = vmatprep.subr.bf16.mxu1 %v10066_v48  ;;  %v1583_v48 = vld [vmem:[%s14354_s3 + $0x1d70] sm:$0xff]  ;;  %v8247_v61 = vadd.f32 %v8246_v49, %v8245_v20 }
 0x4fe   :  { %7762 = vmatmul.mubr.bf16.vlgmr.msra.gmra.mrb[20].mxu0 %v12238_v2  ;;  %v10104_v53 = vcombine.high %v1579_v51, %v1583_v48  ;;  %v10103_v63 = vcombine.low %v1579_v51, %v1583_v48 }
 0x4ff   :  { %8090 = vmatmul.mubr.bf16.vlgmr.msra.gmra.mrb[20].mxu1 %v12238_v2  ;;  %7771 = vmatpush1.bf16.msra.mxu0 %v10063_v10  ;;  %v1567_v2 = vld [vmem:[%s14354_s3 + $0x1cf0] sm:$0xff]  ;;  %v8147_v10 = vadd.f32 %v8146_v35, %v8145_v28  ;;  %v13949_v28 = vsub.f32 %v13821_v19, %v8200_v11  ;;  %v1608_v19 = vld [vmem:[%s14354_s3 + $0x1e38] sm:$0xff] }
 0x500   :  { %7802 = vmatprep.mubr.bf16.mxu0 %v12248_v9  ;;  %8099 = vmatpush1.bf16.msra.mxu1 %v10065_v7  ;;  %v10088_v1 = vcombine.high %v1563_v8, %v1567_v2  ;;  %v10087_v17 = vcombine.low %v1563_v8, %v1567_v2  ;;  %v8233_v7 = vadd.f32 %v8232_v41, %v8231_v0  ;;  %v1596_v8 = vld [vmem:[%s14354_s3 + $0x1dd8] sm:$0xff]  ;;  %v1607_v0 = vld [vmem:[%s14354_s3 + $0x1e30] sm:$0xff] }
 0x501   :  { %8130 = vmatprep.mubr.bf16.mxu1 %v12248_v9  ;;  %7772 = vmatprep.subr.bf16.mxu0 %v10072_v25  ;;  %v1568_v9 = vld [vmem:[%s14354_s3 + $0x1cf8] sm:$0xff]  ;;  %v1587_v25 = vld [vmem:[%s14354_s3 + $0x1d90] sm:$0xff]  ;;  %v8198_v3 = vmul.f32 0.5, %v8147_v10  ;;  %v10128_v34 = vcombine.high %v1603_v30, %v1607_v0  ;;  %v8216_v29 = vmul.f32 %v13949_v28, %v13949_v28  ;;  %v10127_v51 = vcombine.low %v1603_v30, %v1607_v0 }
 0x502   :  { %8100 = vmatprep.subr.bf16.mxu1 %v10074_v62  ;;  %v10090_v15 = vcombine.high %v1564_v18, %v1568_v9  ;;  %v10089_v56 = vcombine.low %v1564_v18, %v1568_v9  ;;  %v1592_v62 = vld [vmem:[%s14354_s3 + $0x1db8] sm:$0xff]  ;;  %v10111_v27 = vcombine.low %v1587_v25, %v1591_v33 }
 0x503   :  { %7773 = vmatpush1.bf16.msra.mxu0 %v10071_v60  ;;  %v10112_v60 = vcombine.high %v1587_v25, %v1591_v33  ;;  %v1600_v2 = vld [vmem:[%s14354_s3 + $0x1df8] sm:$0xff]  ;;  %v13946_v18 = vsub.f32 %v13812_v36, %v8198_v3  ;;  %v10113_v9 = vcombine.low %v1588_v57, %v1592_v62  ;;  %v8236_v46 = vsel %vm246_vm2, %v8216_v29, 0.0  ;;  %v1627_v3 = vld [vmem:[%s14354_s3 + $0x1ed0] sm:$0xff]  ;;  %v14032_v29 = vld [vmem:[%s14356_s5] sm:$0xff] }
 0x504   :  { %8101 = vmatpush1.bf16.msra.mxu1 %v10073_v13  ;;  %7774 = vmatprep.subr.bf16.mxu0 %v10080_v14  ;;  %v8234_v13 = vrot.slane %v8233_v7, 1  ;;  %v10114_v14 = vcombine.high %v1588_v57, %v1592_v62  ;;  %v10121_v20 = vcombine.low %v1596_v8, %v1600_v2  ;;  %v1612_v41 = vld [vmem:[%s14354_s3 + $0x1e58] sm:$0xff] }
 0x505   :  { %8102 = vmatprep.subr.bf16.mxu1 %v10082_v58  ;;  %v8248_v58 = vrot.slane %v8247_v61, 1  ;;  %v8214_v6 = vmul.f32 %v13946_v18, %v13946_v18  ;;  %v1632_v11 = vld [vmem:[%s14354_s3 + $0x1ef8] sm:$0xff] }
 0x507   :  { %7775 = vmatpush1.bf16.msra.mxu0 %v10079_v47  ;;  %v10120_v47 = vcombine.high %v1595_v26, %v1599_v16  ;;  %v8249_v36 = vadd.f32 %v8248_v58, %v8247_v61  ;;  %v8222_v48 = vsel %vm246_vm2, %v8214_v6, 0.0  ;;  %v8237_v61 = vrot.slane %v8236_v46, 4  ;;  %v1644_v6 = vld [vmem:[%s14354_s3 + $0x1f58] sm:$0xff] }
 0x508   :  { %8103 = vmatpush1.bf16.msra.mxu1 %v10081_v59  ;;  %7776 = vmatprep.subr.bf16.mxu0 %v10088_v1  ;;  %v8235_v59 = vadd.f32 %v8234_v13, %v8233_v7  ;;  %v10122_v1 = vcombine.high %v1596_v8, %v1600_v2  ;;  %v1620_v7 = vld [vmem:[%s14354_s3 + $0x1e98] sm:$0xff]  ;;  %v8223_v25 = vrot.slane %v8222_v48, 4  ;;  %v1635_v2 = vld [vmem:[%s14354_s3 + $0x1f10] sm:$0xff] }
 0x509   :  { %8104 = vmatprep.subr.bf16.mxu1 %v10090_v15  ;;  %v1604_v15 = vld [vmem:[%s14354_s3 + $0x1e18] sm:$0xff]  ;;  %v8281_v44 = vmul.f32 0.5, %v8249_v36  ;;  %v8238_v26 = vadd.f32 %v8237_v61, %v8236_v46  ;;  %v1663_v61 = vld [vmem:[%s14354_s3 + $0x1ff0] sm:$0xff] }
 0x50a   :  { %v10130_v35 = vcombine.high %v1604_v15, %v1608_v19  ;;  %v10129_v49 = vcombine.low %v1604_v15, %v1608_v19  ;;  %v8224_v13 = vadd.f32 %v8223_v25, %v8222_v48  ;;  %v1643_v19 = vld [vmem:[%s14354_s3 + $0x1f50] sm:$0xff]  ;;  %v1652_v46 = vld [vmem:[%s14354_s3 + $0x1f98] sm:$0xff] }
 0x50b   :  { %7777 = vmatpush1.bf16.msra.mxu0 %v10087_v17  ;;  %v8279_v17 = vmul.f32 0.5, %v8235_v59  ;;  %v8289_v55 = vadd.f32 1e-05, %v8281_v44  ;;  %v8239_v30 = vrot.slane %v8238_v26, 2  ;;  %v1655_v48 = vld [vmem:[%s14354_s3 + $0x1fb0] sm:$0xff] }
 0x50c   :  { %8105 = vmatpush1.bf16.msra.mxu1 %v10089_v56  ;;  %7778 = vmatprep.subr.bf16.mxu0 %v10096_v37  ;;  %v1611_v56 = vld [vmem:[%s14354_s3 + $0x1e50] sm:$0xff]  ;;  %v8225_v59 = vrot.slane %v8224_v13, 2 }
 0x50d   :  { %8106 = vmatprep.subr.bf16.mxu1 %v10098_v42  ;;  %v1615_v37 = vld [vmem:[%s14354_s3 + $0x1e70] sm:$0xff]  ;;  %v1616_v42 = vld [vmem:[%s14354_s3 + $0x1e78] sm:$0xff] }
 0x50e   :  { %v10136_v50 = vcombine.high %v1611_v56, %v1615_v37  ;;  %v10138_v10 = vcombine.high %v1612_v41, %v1616_v42  ;;  %v10135_v33 = vcombine.low %v1611_v56, %v1615_v37  ;;  %v10137_v57 = vcombine.low %v1612_v41, %v1616_v42 }
 0x50f   :  { %7779 = vmatpush1.bf16.msra.mxu0 %v10095_v22  ;;  %v8287_v22 = vadd.f32 1e-05, %v8279_v17  ;;  %v8226_v17 = vadd.f32 %v8225_v59, %v8224_v13  ;;  %v8240_v37 = vadd.f32 %v8239_v30, %v8238_v26  ;;  %v10473_v59 = vld [vmem:[%s14358_s7 + $0xc0] sm:$0xff]  }
 0x510   :  { %8107 = vmatpush1.bf16.msra.mxu1 %v10097_v54  ;;  %7780 = vmatprep.subr.bf16.mxu0 %v10104_v53  ;;  %v1619_v54 = vld [vmem:[%s14354_s3 + $0x1e90] sm:$0xff] }
 0x511   :  { %8108 = vmatprep.subr.bf16.mxu1 %v10106_v52  ;;  %v1623_v53 = vld [vmem:[%s14354_s3 + $0x1eb0] sm:$0xff]  ;;  %v1624_v52 = vld [vmem:[%s14354_s3 + $0x1eb8] sm:$0xff]  ;;  %10536 = vrsqrt.f32 %v8287_v22 }
 0x512   :  { %v10144_v62 = vcombine.high %v1619_v54, %v1623_v53  ;;  %10538 = vrsqrt.f32 %v8289_v55  ;;  %v10145_v16 = vcombine.low %v1620_v7, %v1624_v52  ;;  %v1656_v22 = vld [vmem:[%s14354_s3 + $0x1fb8] sm:$0xff] }
 0x513   :  { %7781 = vmatpush1.bf16.msra.mxu0 %v10103_v63  ;;  %v10146_v63 = vcombine.high %v1620_v7, %v1624_v52  ;;  %v8241_v7 = vrot.slane %v8240_v37, 1  ;;  %v10177_v26 = vcombine.low %v1652_v46, %v1656_v22 }
 0x514   :  { %8109 = vmatpush1.bf16.msra.mxu1 %v10105_v5  ;;  %7782 = vmatprep.subr.bf16.mxu0 %v10112_v60  ;;  %v1631_v5 = vld [vmem:[%s14354_s3 + $0x1ef0] sm:$0xff]  ;;  %v1628_v60 = vld [vmem:[%s14354_s3 + $0x1ed8] sm:$0xff] }
 0x515   :  { %8110 = vmatprep.subr.bf16.mxu1 %v10114_v14  ;;  %v10143_v14 = vcombine.low %v1619_v54, %v1623_v53  ;;  %v10152_v58 = vcombine.high %v1627_v3, %v1631_v5  ;;  %v10154_v8 = vcombine.high %v1628_v60, %v1632_v11  ;;  %v10153_v0 = vcombine.low %v1628_v60, %v1632_v11 }
 0x516   :  { %v8326_v53 = vrot.slane %v14032_v29, %v10920_v24 }
 0x517   :  { %7783 = vmatpush1.bf16.msra.mxu0 %v10111_v27  ;;  %v1639_v27 = vld [vmem:[%s14354_s3 + $0x1f30] sm:$0xff] }
 0x518   :  { %8111 = vmatpush1.bf16.msra.mxu1 %v10113_v9  ;;  %7784 = vmatprep.subr.bf16.mxu0 %v10120_v47  ;;  %v1636_v9 = vld [vmem:[%s14354_s3 + $0x1f18] sm:$0xff]  ;;  %v10160_v36 = vcombine.high %v1635_v2, %v1639_v27 }
 0x519   :  { %8112 = vmatprep.subr.bf16.mxu1 %v10122_v1  ;;  %v1640_v47 = vld [vmem:[%s14354_s3 + $0x1f38] sm:$0xff]  ;;  %v10151_v1 = vcombine.low %v1627_v3, %v1631_v5 }
 0x51a   :  { %v10162_v15 = vcombine.high %v1636_v9, %v1640_v47  ;;  %v10161_v44 = vcombine.low %v1636_v9, %v1640_v47 }
 0x51b   :  { %7785 = vmatpush1.bf16.msra.mxu0 %v10119_v31  ;;  %v1647_v31 = vld [vmem:[%s14354_s3 + $0x1f70] sm:$0xff] }
 0x51c   :  { %8113 = vmatpush1.bf16.msra.mxu1 %v10121_v20  ;;  %7786 = vmatprep.subr.bf16.mxu0 %v10128_v34  ;;  %v1648_v20 = vld [vmem:[%s14354_s3 + $0x1f78] sm:$0xff]  ;;  %v10537_v34 = vpop.eup %10536  ;;  %v10168_v41 = vcombine.high %v1643_v19, %v1647_v31  ;;  %v10167_v55 = vcombine.low %v1643_v19, %v1647_v31  ;;  %v10475_v19 = vld [vmem:[%s14358_s7 + $0x80] sm:$0xff]   ;;  %v10476_v31 = vld [vmem:[%s14358_s7 + $0x48] sm:$0xff]  }
 0x51d   :  { %8114 = vmatprep.subr.bf16.mxu1 %v10130_v35  ;;  %v10159_v35 = vcombine.low %v1635_v2, %v1639_v27  ;;  %v10539_v56 = vpop.eup %10538  ;;  %v10170_v42 = vcombine.high %v1644_v6, %v1648_v20  ;;  %v10169_v52 = vcombine.low %v1644_v6, %v1648_v20  ;;  %v10477_v20 = vld [vmem:[%s14358_s7 + $0xc8] sm:$0xff]  }
 0x51e   :  { %v8305_v54 = vmul.f32 %v10539_v56, %v13849_v38  ;;  %v1659_v38 = vld [vmem:[%s14354_s3 + $0x1fd0] sm:$0xff] }
 0x51f   :  { %7787 = vmatpush1.bf16.msra.mxu0 %v10127_v51  ;;  %v1651_v51 = vld [vmem:[%s14354_s3 + $0x1f90] sm:$0xff]  ;;  %v10183_v27 = vcombine.low %v1659_v38, %v1663_v61 }
 0x520   :  { %8115 = vmatpush1.bf16.msra.mxu1 %v10129_v49  ;;  %7788 = vmatprep.subr.bf16.mxu0 %v10136_v50  ;;  %v8303_v49 = vmul.f32 %v10537_v34, %v13840_v43  ;;  %v8318_v50 = vrot.slane %v14032_v29, %v10917_v23  ;;  %v14055_v43 = vld [vmem:[%s14357_s6] sm:$0xff]  ;;  %v10176_v25 = vcombine.high %v1651_v51, %v1655_v48  ;;  %v10480_v56 = vld [vmem:[%s14358_s7 + $0x50] sm:$0xff]  }
 0x521   :  { %8116 = vmatprep.subr.bf16.mxu1 %v10138_v10  ;;  %v8227_v10 = vrot.slane %v8226_v17, 1  ;;  %v8367_v3 = vrot.slane %v14055_v43, %v10917_v23  ;;  %v8354_v60 = vmul.f32 %v8326_v53, %v8305_v54  ;;  %v10175_v11 = vcombine.low %v1651_v51, %v1655_v48  ;;  %v10486_v51 = vld [vmem:[%s14358_s7 + $0x18] sm:$0xff]  }
 0x522   :  { %v8375_v13 = vrot.slane %v14055_v43, %v10920_v24  ;;  %v10472_v24 = vld [vmem:[%s14358_s7 + $0x40] sm:$0xff]   ;;  %v10487_v48 = vld [vmem:[%s14358_s7 + $0x98] sm:$0xff]   ;;  %v8314_v53 = vrot.slane %v14032_v29, %v10909_v21 }
 0x523   :  { %7789 = vmatpush1.bf16.msra.mxu0 %v10135_v33  ;;  %v10178_v33 = vcombine.high %v1652_v46, %v1656_v22  ;;  %v8228_v5 = vadd.f32 %v8227_v10, %v8226_v17  ;;  %v10478_v17 = vld [vmem:[%s14358_s7 + $0x8] sm:$0xff]   ;;  %v10489_v46 = vld [vmem:[%s14358_s7 + $0xe0] sm:$0xff]  }
 0x524   :  { %8117 = vmatpush1.bf16.msra.mxu1 %v10137_v57  ;;  %7790 = vmatprep.subr.bf16.mxu0 %v10144_v62  ;;  %v8352_v57 = vmul.f32 %v8318_v50, %v8303_v49  ;;  %v1660_v62 = vld [vmem:[%s14354_s3 + $0x1fd8] sm:$0xff]  ;;  %v8403_v9 = vadd.f32 %v8375_v13, %v8354_v60  ;;  %v10488_v49 = vld [vmem:[%s14358_s7 + $0x60] sm:$0xff]  }
 0x525   :  { %8118 = vmatprep.subr.bf16.mxu1 %v10146_v63  ;;  %v1664_v63 = vld [vmem:[%s14354_s3 + $0x1ff8] sm:$0xff]  ;;  %v8278_v2 = vmul.f32 0.5, %v8228_v5  ;;  %v10490_v10 = vld [vmem:[%s14358_s7 + $0x20] sm:$0xff]   ;;  %v10498_v5 = vld [vmem:[%s14358_s7 + $0x30] sm:$0xff]  }
 0x526   :  { %v10185_v47 = vcombine.low %v1660_v62, %v1664_v63  ;;  %v10500_v60 = vld [vmem:[%s14358_s7 + $0x78] sm:$0xff]  }
 0x527   :  { %7791 = vmatpush1.bf16.msra.mxu0 %v10143_v14  ;;  %v8242_v14 = vadd.f32 %v8241_v7, %v8240_v37  ;;  %v8286_v30 = vadd.f32 1e-05, %v8278_v2  ;;  %v10482_v37 = vld [vmem:[%s14358_s7 + $0x10] sm:$0xff]   ;;  %v10492_v7 = vld [vmem:[%s14358_s7 + $0x68] sm:$0xff]  }
 0x528   :  { %8119 = vmatpush1.bf16.msra.mxu1 %v10145_v16  ;;  %7792 = vmatprep.subr.bf16.mxu0 %v10152_v58  ;;  %v10184_v16 = vcombine.high %v1659_v38, %v1663_v61  ;;  %v10186_v58 = vcombine.high %v1660_v62, %v1664_v63  ;;  %v10496_v61 = vld [vmem:[%s14358_s7 + $0x70] sm:$0xff]  }
 0x529   :  { %8120 = vmatprep.subr.bf16.mxu1 %v10154_v8  ;;  %v8401_v8 = vadd.f32 %v8367_v3, %v8352_v57  ;;  %v8280_v23 = vmul.f32 0.5, %v8242_v14  ;;  %10540 = vrsqrt.f32 %v8286_v30  ;;  %v8363_v57 = vrot.slane %v14055_v43, %v10909_v21  ;;  %v10497_v63 = vld [vmem:[%s14358_s7 + $0xf0] sm:$0xff]   ;;  %v10502_v14 = vld [vmem:[%s14358_s7 + $0x38] sm:$0xff]   ;;  %v10511_v30 = vld [vmem:[%s14358_s7 + $0x188] sm:$0xff]  }
 0x52a   :  { %v8371_v3 = vrot.slane %v14055_v43, %v10992_v4  ;;  %v10499_v21 = vld [vmem:[%s14358_s7 + $0xb0] sm:$0xff]  }
 0x52b   :  { %7793 = vmatpush1.bf16.msra.mxu0 %v10151_v1  ;;  %v8409_v1 = vmax.f32 %v8401_v8, 0.0 }
 0x52c   :  { %8121 = vmatpush1.bf16.msra.mxu1 %v10153_v0  ;;  %7794 = vmatprep.subr.bf16.mxu0 %v10160_v36  ;;  %v10474_v0 = vld [vmem:[%s14358_s7] sm:$0xff]   ;;  %v8411_v36 = vmax.f32 %v8403_v9, 0.0 }
 0x52d   :  { %8122 = vmatprep.subr.bf16.mxu1 %v10162_v15  ;;  %v8288_v15 = vadd.f32 1e-05, %v8280_v23  ;;  %v8417_v6 = vpack.c.bf16 %v8409_v1, %v8409_v1  ;;  %v10505_v9 = vld [vmem:[%s14358_s7 + $0x1c0] sm:$0xff]   ;;  %v10510_v1 = vld [vmem:[%s14358_s7 + $0x108] sm:$0xff]  }
 0x52e   :  { %v8419_v34 = vpack.c.bf16 %v8411_v36, %v8411_v36  ;;  %v10506_v23 = vld [vmem:[%s14358_s7 + $0x100] sm:$0xff]   ;;  %v10513_v36 = vld [vmem:[%s14358_s7 + $0x1d0] sm:$0xff]  }
 0x52f   :  { %7795 = vmatpush1.bf16.msra.mxu0 %v10159_v35  ;;  %10542 = vrsqrt.f32 %v8288_v15  ;;  %v10479_v35 = vld [vmem:[%s14358_s7 + $0x88] sm:$0xff]   ;;  %v10514_v15 = vld [vmem:[%s14358_s7 + $0x110] sm:$0xff]  }
 0x530   :  { %8123 = vmatpush1.bf16.msra.mxu1 %v10161_v44  ;;  %7796 = vmatprep.subr.bf16.mxu0 %v10168_v41  ;;  %v10483_v44 = vld [vmem:[%s14358_s7 + $0x90] sm:$0xff]   ;;  %v10484_v41 = vld [vmem:[%s14358_s7 + $0x58] sm:$0xff]  }
 0x531   :  { %8124 = vmatprep.subr.bf16.mxu1 %v10170_v42  ;;  %v10485_v42 = vld [vmem:[%s14358_s7 + $0xd8] sm:$0xff]  }
 0x533   :  { %7797 = vmatpush1.bf16.msra.mxu0 %v10167_v55  ;;  %v10541_v50 = vpop.eup %10540  ;;  %v10491_v55 = vld [vmem:[%s14358_s7 + $0xa0] sm:$0xff]  }
 0x534   :  { %8125 = vmatpush1.bf16.msra.mxu1 %v10169_v52  ;;  %7798 = vmatprep.subr.bf16.mxu0 %v10176_v25  ;;  %v8302_v54 = vmul.f32 %v10541_v50, %v13946_v18  ;;  %v8322_v25 = vrot.slane %v14032_v29, %v10992_v4  ;;  %v10493_v18 = vld [vmem:[%s14358_s7 + $0xe8] sm:$0xff]   ;;  %v10501_v4 = vld [vmem:[%s14358_s7 + $0xf8] sm:$0xff]   ;;  %v10531_v50 = vld [vmem:[%s14358_s7 + $0x1b0] sm:$0xff]  }
 0x535   :  { %8126 = vmatprep.subr.bf16.mxu1 %v10178_v33  ;;  %v10494_v33 = vld [vmem:[%s14358_s7 + $0x28] sm:$0xff]  }
 0x536   :  { %v8351_v38 = vmul.f32 %v8314_v53, %v8302_v54  ;;  %v10535_v54 = vld [vmem:[%s14358_s7 + $0x1b8] sm:$0xff]   ;;  %v10556_v53 = vld [vmem:[%s14355_s4] sm:$0xff] }
 0x537   :  { %7799 = vmatpush1.bf16.msra.mxu0 %v10175_v11 }
 0x538   :  { %8127 = vmatpush1.bf16.msra.mxu1 %v10177_v26  ;;  %7800 = vmatprep.subr.bf16.mxu0 %v10184_v16  ;;  %v8400_v11 = vadd.f32 %v8363_v57, %v8351_v38  ;;  %v10503_v26 = vld [vmem:[%s14358_s7 + $0xb8] sm:$0xff]  }
 0x539   :  { %8128 = vmatprep.subr.bf16.mxu1 %v10186_v58  ;;  %v10543_v22 = vpop.eup %10542 }
 0x53a   :  { %v8304_v52 = vmul.f32 %v10543_v22, %v13949_v28  ;;  %v10495_v28 = vld [vmem:[%s14358_s7 + $0xa8] sm:$0xff]   ;;  %v8408_v16 = vmax.f32 %v8400_v11, 0.0  ;;  %v10533_v22 = vld [vmem:[%s14358_s7 + $0x1f8] sm:$0xff]  }
 0x53b   :  { %7801 = vmatpush1.bf16.msra.mxu0 %v10183_v27  ;;  %v10504_v27 = vld [vmem:[%s14358_s7 + $0x140] sm:$0xff]  }
 0x53c   :  { %8129 = vmatpush1.bf16.msra.mxu1 %v10185_v47  ;;  %10254 = vmatprep.subr.bf16.mxu0 %v10472_v24  ;;  %v8353_v62 = vmul.f32 %v8322_v25, %v8304_v52  ;;  %v8416_v8 = vpack.c.bf16 %v8408_v16, %v8408_v16  ;;  %v10507_v47 = vld [vmem:[%s14358_s7 + $0x180] sm:$0xff]   ;;  %v10508_v24 = vld [vmem:[%s14358_s7 + $0x148] sm:$0xff]   ;;  %v1690_v52 = vrot.slane %v10556_v53, %v11037_v40 }
 0x53d   :  { %10276 = vmatprep.subr.bf16.mxu1 %v10473_v59  ;;  %v10509_v59 = vld [vmem:[%s14358_s7 + $0x1c8] sm:$0xff]   ;;  %v1698_v25 = vrot.slane %v10556_v53, %v11040_v45 }
 0x53e   :  { %7803 = vmatmul.mubr.bf16.vlgmr.msra.gmra.mrb[20].mxu0 %v12442_v12  ;;  %v8402_v13 = vadd.f32 %v8371_v3, %v8353_v62 }
 0x53f   :  { %8131 = vmatmul.mubr.bf16.vlgmr.msra.gmra.mrb[20].mxu1 %v12442_v12  ;;  %10255 = vmatpush3.bf16.msra.mxu0 %v10474_v0  ;;  %v10481_v12 = vld [vmem:[%s14358_s7 + $0xd0] sm:$0xff]  }
 0x540   :  { %8975 = vmatprep.mubr.bf16.mxu0 %v8417_v6  ;;  %10277 = vmatpush3.bf16.msra.mxu1 %v10475_v19  ;;  %v8410_v58 = vmax.f32 %v8402_v13, 0.0  ;;  %v10512_v0 = vld [vmem:[%s14358_s7 + $0x150] sm:$0xff]   ;;  %v10517_v6 = vld [vmem:[%s14358_s7 + $0x1d8] sm:$0xff]  }
 0x541   :  { %9015 = vmatprep.mubr.bf16.mxu1 %v8419_v34  ;;  %10256 = vmatprep.subr.bf16.mxu0 %v10476_v31  ;;  %v10515_v19 = vld [vmem:[%s14358_s7 + $0x190] sm:$0xff]   ;;  %v10516_v31 = vld [vmem:[%s14358_s7 + $0x158] sm:$0xff]  }
 0x542   :  { %10278 = vmatprep.subr.bf16.mxu1 %v10477_v20  ;;  %v8418_v2 = vpack.c.bf16 %v8410_v58, %v8410_v58  ;;  %v10518_v20 = vld [vmem:[%s14358_s7 + $0x118] sm:$0xff]  }
 0x543   :  { %10257 = vmatpush3.bf16.msra.mxu0 %v10478_v17  ;;  %v10519_v34 = vld [vmem:[%s14358_s7 + $0x198] sm:$0xff]   ;;  %v10520_v17 = vld [vmem:[%s14358_s7 + $0x160] sm:$0xff]  }
 0x544   :  { %10279 = vmatpush3.bf16.msra.mxu1 %v10479_v35  ;;  %10258 = vmatprep.subr.bf16.mxu0 %v10480_v56  ;;  %v10521_v35 = vld [vmem:[%s14358_s7 + $0x1e0] sm:$0xff]  }
 0x545   :  { %10280 = vmatprep.subr.bf16.mxu1 %v10481_v12  ;;  %v10522_v56 = vld [vmem:[%s14358_s7 + $0x120] sm:$0xff]  }
 0x546   :  { %v10523_v12 = vld [vmem:[%s14358_s7 + $0x1a0] sm:$0xff]  }
 0x547   :  { %10259 = vmatpush3.bf16.msra.mxu0 %v10482_v37  ;;  %v10524_v37 = vld [vmem:[%s14358_s7 + $0x168] sm:$0xff]  }
 0x548   :  { %10281 = vmatpush3.bf16.msra.mxu1 %v10483_v44  ;;  %10260 = vmatprep.subr.bf16.mxu0 %v10484_v41  ;;  %v10525_v44 = vld [vmem:[%s14358_s7 + $0x1e8] sm:$0xff]  }
 0x549   :  { %10282 = vmatprep.subr.bf16.mxu1 %v10485_v42  ;;  %v10526_v41 = vld [vmem:[%s14358_s7 + $0x128] sm:$0xff]  }
 0x54a   :  { %v10527_v42 = vld [vmem:[%s14358_s7 + $0x1a8] sm:$0xff]  }
 0x54b   :  { %10261 = vmatpush3.bf16.msra.mxu0 %v10486_v51  ;;  %v10528_v51 = vld [vmem:[%s14358_s7 + $0x170] sm:$0xff]  }
 0x54c   :  { %10283 = vmatpush3.bf16.msra.mxu1 %v10487_v48  ;;  %10262 = vmatprep.subr.bf16.mxu0 %v10488_v49  ;;  %v10529_v48 = vld [vmem:[%s14358_s7 + $0x1f0] sm:$0xff]  }
 0x54d   :  { %10284 = vmatprep.subr.bf16.mxu1 %v10489_v46  ;;  %v10530_v49 = vld [vmem:[%s14358_s7 + $0x130] sm:$0xff]   ;;  %v10532_v46 = vld [vmem:[%s14358_s7 + $0x178] sm:$0xff]  }
 0x54f   :  { %10263 = vmatpush3.bf16.msra.mxu0 %v10490_v10  ;;  %v10534_v10 = vld [vmem:[%s14358_s7 + $0x138] sm:$0xff]  }
 0x550   :  { %10285 = vmatpush3.bf16.msra.mxu1 %v10491_v55  ;;  %10264 = vmatprep.subr.bf16.mxu0 %v10492_v7  ;;  %v1686_v55 = vrot.slane %v10556_v53, %v11020_v32  ;;  %v1694_v7 = vrot.slane %v10556_v53, %v11034_v39 }
 0x551   :  { %10286 = vmatprep.subr.bf16.mxu1 %v10493_v18 }
 0x553   :  { %10265 = vmatpush3.bf16.msra.mxu0 %v10494_v33 }
 0x554   :  { %10287 = vmatpush3.bf16.msra.mxu1 %v10495_v28  ;;  %10266 = vmatprep.subr.bf16.mxu0 %v10496_v61 }
 0x555   :  { %10288 = vmatprep.subr.bf16.mxu1 %v10497_v63 }
 0x557   :  { %10267 = vmatpush3.bf16.msra.mxu0 %v10498_v5 }
 0x558   :  { %10289 = vmatpush3.bf16.msra.mxu1 %v10499_v21  ;;  %10268 = vmatprep.subr.bf16.mxu0 %v10500_v60 }
 0x559   :  { %10290 = vmatprep.subr.bf16.mxu1 %v10501_v4 }
 0x55b   :  { %10269 = vmatpush3.bf16.msra.mxu0 %v10502_v14 }
 0x55c   :  { %10291 = vmatpush3.bf16.msra.mxu1 %v10503_v26  ;;  %10298 = vmatprep.subr.bf16.mxu0 %v10504_v27 }
 0x55d   :  { %10320 = vmatprep.subr.bf16.mxu1 %v10505_v9 }
 0x55e   :  { %8976 = vmatmul.mubr.bf16.vlgmr.msra.gmra.mrb[24].mxu0 %v8416_v8 }
 0x55f   :  { %9016 = vmatmul.mubr.bf16.vlgmr.msra.gmra.mrb[24].mxu1 %v8418_v2  ;;  %10299 = vmatpush3.bf16.msra.mxu0 %v10506_v23 }
 0x560   :  { %10321 = vmatpush3.bf16.msra.mxu1 %v10507_v47  ;;  %10300 = vmatprep.subr.bf16.mxu0 %v10508_v24 }
 0x561   :  { %10322 = vmatprep.subr.bf16.mxu1 %v10509_v59 }
 0x563   :  { %10301 = vmatpush3.bf16.msra.mxu0 %v10510_v1 }
 0x564   :  { %10323 = vmatpush3.bf16.msra.mxu1 %v10511_v30  ;;  %10302 = vmatprep.subr.bf16.mxu0 %v10512_v0 }
 0x565   :  { %10324 = vmatprep.subr.bf16.mxu1 %v10513_v36 }
 0x567   :  { %10303 = vmatpush3.bf16.msra.mxu0 %v10514_v15 }
 0x568   :  { %10325 = vmatpush3.bf16.msra.mxu1 %v10515_v19  ;;  %10304 = vmatprep.subr.bf16.mxu0 %v10516_v31 }
 0x569   :  { %10326 = vmatprep.subr.bf16.mxu1 %v10517_v6 }
 0x56b   :  { %10305 = vmatpush3.bf16.msra.mxu0 %v10518_v20 }
 0x56c   :  { %10327 = vmatpush3.bf16.msra.mxu1 %v10519_v34  ;;  %10306 = vmatprep.subr.bf16.mxu0 %v10520_v17 }
 0x56d   :  { %10328 = vmatprep.subr.bf16.mxu1 %v10521_v35 }
 0x56f   :  { %10307 = vmatpush3.bf16.msra.mxu0 %v10522_v56 }
 0x570   :  { %10329 = vmatpush3.bf16.msra.mxu1 %v10523_v12  ;;  %10308 = vmatprep.subr.bf16.mxu0 %v10524_v37 }
 0x571   :  { %10330 = vmatprep.subr.bf16.mxu1 %v10525_v44 }
 0x573   :  { %10309 = vmatpush3.bf16.msra.mxu0 %v10526_v41 }
 0x574   :  { %10331 = vmatpush3.bf16.msra.mxu1 %v10527_v42  ;;  %10310 = vmatprep.subr.bf16.mxu0 %v10528_v51 }
 0x575   :  { %10332 = vmatprep.subr.bf16.mxu1 %v10529_v48 }
 0x577   :  { %10311 = vmatpush3.bf16.msra.mxu0 %v10530_v49 }
 0x578   :  { %10333 = vmatpush3.bf16.msra.mxu1 %v10531_v50  ;;  %10312 = vmatprep.subr.bf16.mxu0 %v10532_v46 }
 0x579   :  { %10334 = vmatprep.subr.bf16.mxu1 %v10533_v22 }
 0x57b   :  { %10313 = vmatpush3.bf16.msra.mxu0 %v10534_v10 }
 0x57c   :  { %10335 = vmatpush3.bf16.msra.mxu1 %v10535_v54 }
 0x611   :  { %v7804_v18 = vpop.f32.mrb[20].mxu0 }
 0x612   :  { %v10346_v33 = vadd.f32 %v7804_v18, %v1686_v55  ;;  %v8132_v38 = vpop.f32.mrb[20].mxu1  ;;  %v7806_v28 = vpop.f32.mrb[21].mxu0 }
 0x613   :  { %v10348_v61 = vadd.f32 %v8132_v38, %v1694_v7  ;;  %v10347_v57 = vadd.f32 %v7806_v28, %v1690_v52  ;;  %v8134_v62 = vpop.f32.mrb[21].mxu1  ;;  %v7808_v63 = vpop.f32.mrb[22].mxu0 }
 0x614   :  { %v8169_v3 = vsel %vm246_vm2, %v10346_v33, 0.0  ;;  %v10349_v5 = vadd.f32 %v8134_v62, %v1698_v25  ;;  %v8136_v21 = vpop.f32.mrb[22].mxu1  ;;  %v7809_v60 = vpop.f32.mrb[23].mxu0 }
 0x615   :  { %v8170_v11 = vrot.slane %v8169_v3, 4  ;;  %v8183_v4 = vsel %vm246_vm2, %v10348_v61, 0.0  ;;  %v8176_v13 = vsel %vm246_vm2, %v10347_v57, 0.0  ;;  %v8137_v14 = vpop.f32.mrb[23].mxu1 }
 0x616   :  { %v8184_v26 = vrot.slane %v8183_v4, 4  ;;  %v8177_v16 = vrot.slane %v8176_v13, 4  ;;  %v8190_v58 = vsel %vm246_vm2, %v10349_v5, 0.0 }
 0x617   :  { %v8171_v8 = vadd.f32 %v8170_v11, %v8169_v3  ;;  %v8191_v2 = vrot.slane %v8190_v58, 4 }
 0x618   :  { %v8185_v27 = vadd.f32 %v8184_v26, %v8183_v4  ;;  %v8178_v9 = vadd.f32 %v8177_v16, %v8176_v13 }
 0x619   :  { %v8172_v23 = vrot.slane %v8171_v8, 2  ;;  %v8192_v47 = vadd.f32 %v8191_v2, %v8190_v58 }
 0x61a   :  { %v8186_v24 = vrot.slane %v8185_v27, 2  ;;  %v8179_v59 = vrot.slane %v8178_v9, 2 }
 0x61b   :  { %v8173_v1 = vadd.f32 %v8172_v23, %v8171_v8  ;;  %v8193_v30 = vrot.slane %v8192_v47, 2 }
 0x61c   :  { %v8187_v0 = vadd.f32 %v8186_v24, %v8185_v27  ;;  %v8180_v36 = vadd.f32 %v8179_v59, %v8178_v9  ;;  %v10187_v27 = vld [vmem:[%s14359_s8] ss:$0 sm:$0xff] }
 0x61d   :  { %v8174_v15 = vrot.slane %v8173_v1, 1  ;;  %v8194_v19 = vadd.f32 %v8193_v30, %v8192_v47 }
 0x61e   :  { %v8188_v31 = vrot.slane %v8187_v0, 1  ;;  %v8181_v6 = vrot.slane %v8180_v36, 1 }
 0x61f   :  { %v8175_v20 = vadd.f32 %v8174_v15, %v8173_v1  ;;  %v8195_v34 = vrot.slane %v8194_v19, 1 }
 0x620   :  { %v8189_v17 = vadd.f32 %v8188_v31, %v8187_v0  ;;  %v8182_v35 = vadd.f32 %v8181_v6, %v8180_v36 }
 0x621   :  { %v8202_v56 = vmul.f32 0.5, %v8175_v20  ;;  %v8196_v12 = vadd.f32 %v8195_v34, %v8194_v19 }
 0x622   :  { %v8204_v37 = vmul.f32 0.5, %v8189_v17  ;;  %v8203_v44 = vmul.f32 0.5, %v8182_v35 }
 0x623   :  { %v14288_v41 = vsub.f32 %v10346_v33, %v8202_v56  ;;  %v8205_v42 = vmul.f32 0.5, %v8196_v12 }
 0x624   :  { %v14290_v51 = vsub.f32 %v10348_v61, %v8204_v37  ;;  %v14292_v48 = vsub.f32 %v10347_v57, %v8203_v44 }
 0x625   :  { %v8218_v49 = vmul.f32 %v14288_v41, %v14288_v41  ;;  %v14296_v50 = vsub.f32 %v10349_v5, %v8205_v42  ;;  %v8330_v42 = vrot.slane %v14032_v29, %v11020_v32 }
 0x626   :  { %v8220_v46 = vmul.f32 %v14290_v51, %v14290_v51  ;;  %v8219_v22 = vmul.f32 %v14292_v48, %v14292_v48 }
 0x627   :  { %v8250_v10 = vsel %vm246_vm2, %v8218_v49, 0.0  ;;  %v8221_v54 = vmul.f32 %v14296_v50, %v14296_v50 }
 0x628   :  { %v8251_v53 = vrot.slane %v8250_v10, 4  ;;  %v8264_v55 = vsel %vm246_vm2, %v8220_v46, 0.0  ;;  %v8257_v7 = vsel %vm246_vm2, %v8219_v22, 0.0  ;;  %v8338_v46 = vrot.slane %v14032_v29, %v11034_v39 }
 0x629   :  { %v8265_v52 = vrot.slane %v8264_v55, 4  ;;  %v8258_v25 = vrot.slane %v8257_v7, 4  ;;  %v8271_v18 = vsel %vm246_vm2, %v8221_v54, 0.0  ;;  %v8334_v54 = vrot.slane %v14032_v29, %v11037_v40 }
 0x62a   :  { %v8252_v33 = vadd.f32 %v8251_v53, %v8250_v10  ;;  %v8272_v38 = vrot.slane %v8271_v18, 4  ;;  %v8379_v53 = vrot.slane %v14055_v43, %v11020_v32  ;;  %v8391_v32 = vrot.slane %v14055_v43, %v11040_v45 }
 0x62b   :  { %v8266_v28 = vadd.f32 %v8265_v52, %v8264_v55  ;;  %v8259_v61 = vadd.f32 %v8258_v25, %v8257_v7  ;;  %v8342_v52 = vrot.slane %v14032_v29, %v11040_v45  ;;  %v8387_v25 = vrot.slane %v14055_v43, %v11034_v39 }
 0x62c   :  { %v8253_v57 = vrot.slane %v8252_v33, 2  ;;  %v8273_v62 = vadd.f32 %v8272_v38, %v8271_v18 }
 0x62d   :  { %v8267_v63 = vrot.slane %v8266_v28, 2  ;;  %v8260_v3 = vrot.slane %v8259_v61, 2 }
 0x62e   :  { %v8254_v5 = vadd.f32 %v8253_v57, %v8252_v33  ;;  %v8274_v21 = vrot.slane %v8273_v62, 2 }
 0x62f   :  { %v8268_v60 = vadd.f32 %v8267_v63, %v8266_v28  ;;  %v8261_v11 = vadd.f32 %v8260_v3, %v8259_v61 }
 0x630   :  { %v8255_v4 = vrot.slane %v8254_v5, 1  ;;  %v8275_v13 = vadd.f32 %v8274_v21, %v8273_v62 }
 0x631   :  { %v8269_v14 = vrot.slane %v8268_v60, 1  ;;  %v8262_v26 = vrot.slane %v8261_v11, 1  ;;  %v10270_v16 = vpop.f32.mrb[24].mxu0 }
 0x632   :  { %v8256_v58 = vadd.f32 %v8255_v4, %v8254_v5  ;;  %v8276_v8 = vrot.slane %v8275_v13, 1  ;;  %v10292_v2 = vpop.f32.mrb[24].mxu1  ;;  %v10271_v9 = vpop.f32.mrb[25].mxu0 }
 0x633   :  { %v8270_v23 = vadd.f32 %v8269_v14, %v8268_v60  ;;  %v8263_v47 = vadd.f32 %v8262_v26, %v8261_v11  ;;  %v10272_v24 = vadd.f32 %v10271_v9, %v10270_v16  ;;  %v10293_v59 = vpop.f32.mrb[25].mxu1  ;;  %v10273_v1 = vpop.f32.mrb[26].mxu0 }
 0x634   :  { %v8282_v30 = vmul.f32 0.5, %v8256_v58  ;;  %v8277_v0 = vadd.f32 %v8276_v8, %v8275_v13  ;;  %v10294_v36 = vadd.f32 %v10293_v59, %v10292_v2  ;;  %v10295_v15 = vpop.f32.mrb[26].mxu1  ;;  %v10274_v19 = vpop.f32.mrb[27].mxu0 }
 0x635   :  { %v8284_v31 = vmul.f32 0.5, %v8270_v23  ;;  %v8283_v6 = vmul.f32 0.5, %v8263_v47  ;;  %v8978_v20 = vadd.f32 %v10272_v24, %v10187_v27  ;;  %v10296_v34 = vpop.f32.mrb[27].mxu1 }
 0x636   :  { %v8290_v17 = vadd.f32 1e-05, %v8282_v30  ;;  %v8285_v35 = vmul.f32 0.5, %v8277_v0 }
 0x637   :  { %v8292_v56 = vadd.f32 1e-05, %v8284_v31  ;;  %v8291_v12 = vadd.f32 1e-05, %v8283_v6  ;;  %v9018_v37 = vadd.f32 %v10294_v36, %v8978_v20 }
 0x638   :  { %10544 = vrsqrt.f32 %v8290_v17  ;;  %v8293_v44 = vadd.f32 1e-05, %v8285_v35 }
 0x639   :  { %10546 = vrsqrt.f32 %v8292_v56 }
 0x63a   :  { %10548 = vrsqrt.f32 %v8291_v12 }
 0x63b   :  { %10550 = vrsqrt.f32 %v8293_v44 }
 0x642   :  { %v10545_v49 = vpop.eup %10544 }
 0x643   :  { %v10547_v22 = vpop.eup %10546  ;;  %v8306_v10 = vmul.f32 %v10545_v49, %v14288_v41  ;;  %v8383_v41 = vrot.slane %v14055_v43, %v11037_v40 }
 0x644   :  { %v10549_v55 = vpop.eup %10548  ;;  %v8308_v7 = vmul.f32 %v10547_v22, %v14290_v51 }
 0x645   :  { %v10551_v18 = vpop.eup %10550  ;;  %v8355_v33 = vmul.f32 %v8330_v42, %v8306_v10  ;;  %v8307_v38 = vmul.f32 %v10549_v55, %v14292_v48  ;;  %v10252_v42 = vld [vmem:[%s14360_s9] ss:$0 sm:$0xff] }
 0x646   :  { %v8357_v28 = vmul.f32 %v8338_v46, %v8308_v7  ;;  %v8309_v61 = vmul.f32 %v10551_v18, %v14296_v50  ;;  %v10253_v46 = vld [vmem:[%s14361_s10] ss:$0 sm:$0xff] }
 0x647   :  { %v8356_v51 = vmul.f32 %v8334_v54, %v8307_v38  ;;  %v8404_v57 = vadd.f32 %v8379_v53, %v8355_v33 }
 0x648   :  { %v8358_v62 = vmul.f32 %v8342_v52, %v8309_v61  ;;  %v8406_v29 = vadd.f32 %v8387_v25, %v8357_v28 }
 0x649   :  { %v8405_v63 = vadd.f32 %v8383_v41, %v8356_v51  ;;  %v8412_v39 = vmax.f32 %v8404_v57, 0.0 }
 0x64a   :  { %v8407_v3 = vadd.f32 %v8391_v32, %v8358_v62  ;;  %v8414_v21 = vmax.f32 %v8406_v29, 0.0 }
 0x64b   :  { %v8413_v5 = vmax.f32 %v8405_v63, 0.0  ;;  %v8420_v4 = vpack.c.bf16 %v8412_v39, %v8412_v39 }
 0x64c   :  { %v8415_v60 = vmax.f32 %v8407_v3, 0.0  ;;  %v8422_v40 = vpack.c.bf16 %v8414_v21, %v8414_v21 }
 0x64d   :  { %v8421_v48 = vpack.c.bf16 %v8413_v5, %v8413_v5 }
 0x64e   :  { %v8423_v11 = vpack.c.bf16 %v8415_v60, %v8415_v60 }
 0x64f   :  { %9055 = vmatprep.mubr.bf16.mxu0 %v8421_v48 }
 0x650   :  { %9095 = vmatprep.mubr.bf16.mxu1 %v8423_v11  ;;  %9056 = vmatmul.mubr.bf16.vlgmr.msra.gmra.mrb[28].mxu0 %v8420_v4 }
 0x651   :  { %9096 = vmatmul.mubr.bf16.vlgmr.msra.gmra.mrb[28].mxu1 %v8422_v40 }
 0x723   :  { %v10314_v50 = vpop.f32.mrb[28].mxu0 }
 0x724   :  { %v10336_v45 = vpop.f32.mrb[28].mxu1  ;;  %v10315_v43 = vpop.f32.mrb[29].mxu0 }
 0x725   :  { %v10316_v13 = vadd.f32 %v10315_v43, %v10314_v50  ;;  %v10337_v14 = vpop.f32.mrb[29].mxu1  ;;  %v10317_v26 = vpop.f32.mrb[30].mxu0 }
 0x726   :  { %v10338_v16 = vadd.f32 %v10337_v14, %v10336_v45  ;;  %v10339_v58 = vpop.f32.mrb[30].mxu1  ;;  %v10318_v8 = vpop.f32.mrb[31].mxu0 }
 0x727   :  { %v9058_v2 = vadd.f32 %v10316_v13, %v9018_v37  ;;  %v10340_v27 = vpop.f32.mrb[31].mxu1 }
 0x729   :  { %v9098_v9 = vadd.f32 %v10338_v16, %v9058_v2 }
 0x72b   :  { %v9105_v23 = vsel %vm246_vm2, %v9098_v9, 0.0 }
 0x72c   :  { %v9106_v47 = vrot.slane %v9105_v23, 4 }
 0x72e   :  { %v9107_v24 = vadd.f32 %v9106_v47, %v9105_v23 }
 0x730   :  { %v9108_v59 = vrot.slane %v9107_v24, 2 }
 0x732   :  { %v9109_v1 = vadd.f32 %v9108_v59, %v9107_v24 }
 0x734   :  { %v9110_v30 = vrot.slane %v9109_v1, 1 }
 0x736   :  { %v9111_v0 = vadd.f32 %v9110_v30, %v9109_v1 }
 0x738   :  { %v9112_v36 = vmul.f32 0.5, %v9111_v0 }
 0x73a   :  { %v9113_v15 = vsub.f32 %v9098_v9, %v9112_v36 }
 0x73c   :  { %v9114_v19 = vmul.f32 %v9113_v15, %v9113_v15 }
 0x73e   :  { %v9115_v31 = vsel %vm246_vm2, %v9114_v19, 0.0 }
 0x73f   :  { %v9116_v6 = vrot.slane %v9115_v31, 4 }
 0x741   :  { %v9117_v20 = vadd.f32 %v9116_v6, %v9115_v31 }
 0x743   :  { %v9118_v34 = vrot.slane %v9117_v20, 2 }
 0x745   :  { %v9119_v17 = vadd.f32 %v9118_v34, %v9117_v20 }
 0x747   :  { %v9120_v35 = vrot.slane %v9119_v17, 1 }
 0x749   :  { %v9121_v56 = vadd.f32 %v9120_v35, %v9119_v17 }
 0x74b   :  { %v9122_v12 = vmul.f32 0.5, %v9121_v56 }
 0x74d   :  { %v9123_v37 = vadd.f32 1e-05, %v9122_v12 }
 0x74f   :  { %10552 = vrsqrt.f32 %v9123_v37 }
 0x759   :  { %v10553_v44 = vpop.eup %10552 }
 0x75a   :  { %v9125_v49 = vmul.f32 %v10553_v44, %v9113_v15 }
 0x75c   :  { %v9132_v22 = vmul.f32 %v10252_v42, %v9125_v49 }
 0x75e   :  { %v9139_v10 = vadd.f32 %v10253_v46, %v9132_v22 }
 0x760   :  { %9140 = vst [vmem:[#allocation2] sm:$0x3] %v9139_v10 }
 0x761   :  { %10568 = shalt.err (!%p10565_p4)
}
 0x762   :  { %s10569_s12 = scalar_lea.hbm %s14362_s11, 32 }
 0x763   :  { %p10570_p5 = scmp.ne.s32.totalorder %s14362_s11, %s10569_s12  ;;  %p10573_p6 = scmp.lt.u32.totalorder %s10569_s12, %s14362_s11 }
 0x765   :  { %p10575_p7 = pnand %p10573_p6, %p10570_p5 }
 0x767   :  { %10578 = shalt.err (!%p10575_p7)
}
 0x768   :  { %9150 = dma.vmem_to_hbm [thread:$0]  %s9148_s2, 32, %s14362_s11, [#allocation3]  }
 0x769   :  { %10579 = dma.done.wait [#allocation3], 32  }
 0x76a   :  { %10580 = vsyncadd [#allocation3], 4294967264 }
 0x76b   :  { %9154 = vsyncpa [#allocation3], 1 }

</bundles_post_ra>
